<compile_context>
chip_gen: v7x
topology: tpu7x:2x2x1
jax: 0.10.0
libtpu: 0.0.40
codegen_flags: <defaults>
</compile_context>

<pallas_src>
import jax
import jax.numpy as jnp
from jax.experimental import pallas as pl
from jax.experimental.pallas import tpu as pltpu

STATE_DIM = 3
ACTION_DIM = 1
H1 = 400
H2 = 300
# Zero-padded hidden dims (lane/MXU aligned).  400 -> 512, 300 -> 384.
H1_PAD = 512
H2_PAD = 384


def _round_up(n, m):
    return ((n + m - 1) // m) * m


def actor_kernel(x_ref, w1_ref, b1_ref, w2_ref, b2_ref, w3_ref, b3_ref, o_ref):
    # Batch-in-lanes layout: x_ref is (STATE_DIM, TB); activations (feat, TB).
    xT = x_ref[...]                                           # (3, TB)  f32

    # ---- Layer 1: K=3 contraction -> 3 outer-product FMAs on the VPU --------
    # w1_ref[:, d] goes along sublanes, xT[d, :] along lanes (cheap broadcasts).
    h = w1_ref[:, 0:1] * xT[0:1, :]
    for d in range(1, STATE_DIM):                             # static unroll
        h = h + w1_ref[:, d:d + 1] * xT[d:d + 1, :]
    h = jnp.maximum(h + b1_ref[...], 0.0)                     # (H1_PAD, TB) f32

    # ---- Layer 2: the one real matmul -> bf16 MXU, f32 accumulation ---------
    h2 = jnp.dot(w2_ref[...], h.astype(jnp.bfloat16),
                 preferred_element_type=jnp.float32)          # (H2_PAD, TB) f32
    h2 = jnp.maximum(h2 + b2_ref[...], 0.0)

    # ---- Layer 3: single output row -> VPU multiply + sublane reduction -----
    a = jnp.sum(h2 * w3_ref[...], axis=0, keepdims=True) + b3_ref[0, 0]
    o_ref[...] = jnp.tanh(a)                                  # (1, TB), lane-dense


def prepare_params(params):
    """Pad / transpose / bf16-cast torch-layout params ONCE (hoisted out of the
    per-call path).  Padding is numerically inert: padded weights/biases are 0,
    ReLU(0)=0, and padded rows of downstream weights are 0."""
    w1, b1, w2, b2, w3, b3 = params
    w1t = jnp.pad(w1.T, ((0, H1_PAD - H1), (0, 0)))                    # (512, 3)   f32
    b1t = jnp.pad(b1.reshape(H1, 1), ((0, H1_PAD - H1), (0, 0)))       # (512, 1)   f32
    w2t = jnp.pad(w2.T, ((0, H2_PAD - H2), (0, H1_PAD - H1)))          # (384, 512)
    w2t = w2t.astype(jnp.bfloat16)                                     # bf16 MXU operand
    b2t = jnp.pad(b2.reshape(H2, 1), ((0, H2_PAD - H2), (0, 0)))       # (384, 1)   f32
    w3t = jnp.pad(w3, ((0, H2_PAD - H2), (0, 0)))                      # (384, 1)   f32
    b3t = b3.reshape(1, 1)                                             # (1, 1)     f32
    return w1t, b1t, w2t, b2t, w3t, b3t


def actor_net_forward(x, kernel_params, tile_b=2048):
    """x: (B, STATE_DIM) f32 -> (B, ACTION_DIM) f32.

    kernel_params must come from prepare_params().  tile_b=2048 keeps the
    f32 intermediates (~13 MiB) comfortably inside v7x's 64 MiB VMEM; it can be
    raised to 4096 on v5e/v6e.
    """
    B = x.shape[0]
    w1t, b1t, w2t, b2t, w3t, b3t = kernel_params

    # Lane-dense batch tiles must be multiples of 128.
    tile_b = max(128, (min(tile_b, _round_up(B, 128)) // 128) * 128)
    # Prefer a grid of >= 2 tiles when the batch allows it, so the "parallel"
    # batch axis can be sharded over both v7x TensorCores.
    b_pad128 = _round_up(B, 128)
    if b_pad128 >= 2 * 128:
        tile_b = min(tile_b, _round_up(b_pad128 // 2, 128))
    b_pad = _round_up(B, tile_b)

    # Batch-in-lanes: transpose x to (STATE_DIM, b_pad).
    xT = jnp.pad(x, ((0, b_pad - B), (0, 0))).T
    grid = (b_pad // tile_b,)

    out = pl.pallas_call(
        actor_kernel,
        out_shape=jax.ShapeDtypeStruct((1, b_pad), jnp.float32),
        grid=grid,
        in_specs=[
            # batch-tiled activations (double-buffered by the pipeline)
            pl.BlockSpec((STATE_DIM, tile_b), lambda i: (0, i)),
            # weights / biases: constant index_map -> fetched once, VMEM-resident
            pl.BlockSpec((H1_PAD, STATE_DIM), lambda i: (0, 0)),
            pl.BlockSpec((H1_PAD, 1), lambda i: (0, 0)),
            pl.BlockSpec((H2_PAD, H1_PAD), lambda i: (0, 0)),
            pl.BlockSpec((H2_PAD, 1), lambda i: (0, 0)),
            pl.BlockSpec((H2_PAD, 1), lambda i: (0, 0)),
            pl.BlockSpec((1, 1), lambda i: (0, 0)),
        ],
        # Lane-dense output: (1, tile_b) blocks -> unmasked full-lane stores.
        out_specs=pl.BlockSpec((1, tile_b), lambda i: (0, i)),
        compiler_params=pltpu.CompilerParams(
            dimension_semantics=("parallel",),      # megacore batch sharding
            vmem_limit_bytes=48 * 1024 * 1024,      # headroom below v7x's 64 MiB
        ),
    )(xT, w1t, b1t, w2t, b2t, w3t, b3t)

    return out[0, :B].reshape(B, ACTION_DIM)


def init_params(key):
    """Torch-style init: U(-1/sqrt(fan_in), 1/sqrt(fan_in)).

    Weights stored as (in_features, out_features); biases as (1, out_features).
    """
    ks = jax.random.split(key, 6)

    def uniform(k, shape, fan_in):
        bound = 1.0 / jnp.sqrt(jnp.float32(fan_in))
        return jax.random.uniform(k, shape, jnp.float32, -bound, bound)

    w1 = uniform(ks[0], (STATE_DIM, H1), STATE_DIM)
    b1 = uniform(ks[1], (1, H1), STATE_DIM)
    w2 = uniform(ks[2], (H1, H2), H1)
    b2 = uniform(ks[3], (1, H2), H1)
    w3 = uniform(ks[4], (H2, ACTION_DIM), H2)
    b3 = uniform(ks[5], (1, ACTION_DIM), H2)
    return (w1, b1, w2, b2, w3, b3)


def reference_forward(x, params):
    w1, b1, w2, b2, w3, b3 = params
    h = jnp.maximum(x @ w1 + b1, 0.0)
    h = jnp.maximum(h @ w2 + b2, 0.0)
    return jnp.tanh(h @ w3 + b3)


if __name__ == "__main__":
    key = jax.random.PRNGKey(0)
    k_params, k_x = jax.random.split(key)

    params = init_params(k_params)
    kparams = prepare_params(params)            # pad/transpose/bf16 once

    B = 200  # not a multiple of the batch tile: exercises padding + a 2-step grid
    x = jax.random.normal(k_x, (B, STATE_DIM), jnp.float32)

    forward = jax.jit(actor_net_forward)
    out = forward(x, kparams)
    out = jax.block_until_ready(out)

    ref = reference_forward(x, params)          # full-f32 reference
    assert out.shape == (B, ACTION_DIM)
    # Tolerance loosened for the bf16 layer-2 MXU operands (f32 accumulation).
    assert jnp.allclose(out, ref, atol=2e-2, rtol=2e-2)

    print("KERNEL_OK")
</pallas_src>

<mosaic_0001>
module attributes {stable_mosaic.version = 11 : i64} {
  func.func @actor_kernel(%arg0: i32, %arg1: memref<3x128xf32, #tpu.memory_space<vmem>>, %arg2: memref<512x3xf32, #tpu.memory_space<vmem>>, %arg3: memref<512x1xf32, #tpu.memory_space<vmem>>, %arg4: memref<384x512xbf16, #tpu.memory_space<vmem>>, %arg5: memref<384x1xf32, #tpu.memory_space<vmem>>, %arg6: memref<384x1xf32, #tpu.memory_space<vmem>>, %arg7: memref<1x1xf32, #tpu.memory_space<vmem>>, %arg8: memref<1x128xf32, #tpu.memory_space<vmem>>) attributes {dimension_semantics = [#tpu.dimension_semantics<parallel>], iteration_bounds = array<i64: 2>, scalar_prefetch = 0 : i64, scratch_operands = 0 : i64, tpu.core_type = #tpu.core_type<tc>, window_params = [{transform_indices = @transform_0, window_bounds = array<i64: 3, 128>}, {pipeline_mode = #tpu.pipeline_mode<synchronous>, transform_indices = @transform_1, window_bounds = array<i64: 512, 3>}, {pipeline_mode = #tpu.pipeline_mode<synchronous>, transform_indices = @transform_2, window_bounds = array<i64: 512, 1>}, {pipeline_mode = #tpu.pipeline_mode<synchronous>, transform_indices = @transform_3, window_bounds = array<i64: 384, 512>}, {pipeline_mode = #tpu.pipeline_mode<synchronous>, transform_indices = @transform_4, window_bounds = array<i64: 384, 1>}, {pipeline_mode = #tpu.pipeline_mode<synchronous>, transform_indices = @transform_5, window_bounds = array<i64: 384, 1>}, {pipeline_mode = #tpu.pipeline_mode<synchronous>, transform_indices = @transform_6, window_bounds = array<i64: 1, 1>}, {transform_indices = @transform_7, window_bounds = array<i64: 1, 128>}]} {
    %c0 = arith.constant 0 : index
    %c0_0 = arith.constant 0 : index
    %0 = vector.load %arg1[%c0, %c0_0] : memref<3x128xf32, #tpu.memory_space<vmem>>, vector<3x128xf32>
    %c0_1 = arith.constant 0 : index
    %c0_2 = arith.constant 0 : index
    %1 = vector.load %arg2[%c0_1, %c0_2] : memref<512x3xf32, #tpu.memory_space<vmem>>, vector<512x1xf32>
    %2 = vector.extract_strided_slice %0 {offsets = [0, 0], sizes = [1, 128], strides = [1, 1]} : vector<3x128xf32> to vector<1x128xf32>
    %3 = vector.broadcast %1 : vector<512x1xf32> to vector<512x128xf32>
    %4 = vector.broadcast %2 : vector<1x128xf32> to vector<512x128xf32>
    %5 = arith.mulf %3, %4 : vector<512x128xf32>
    %c0_3 = arith.constant 0 : index
    %c1 = arith.constant 1 : index
    %6 = vector.load %arg2[%c0_3, %c1] : memref<512x3xf32, #tpu.memory_space<vmem>>, vector<512x1xf32>
    %7 = vector.extract_strided_slice %0 {offsets = [1, 0], sizes = [1, 128], strides = [1, 1]} : vector<3x128xf32> to vector<1x128xf32>
    %8 = vector.broadcast %6 : vector<512x1xf32> to vector<512x128xf32>
    %9 = vector.broadcast %7 : vector<1x128xf32> to vector<512x128xf32>
    %10 = arith.mulf %8, %9 : vector<512x128xf32>
    %11 = arith.addf %5, %10 : vector<512x128xf32>
    %c0_4 = arith.constant 0 : index
    %c2 = arith.constant 2 : index
    %12 = vector.load %arg2[%c0_4, %c2] : memref<512x3xf32, #tpu.memory_space<vmem>>, vector<512x1xf32>
    %13 = vector.extract_strided_slice %0 {offsets = [2, 0], sizes = [1, 128], strides = [1, 1]} : vector<3x128xf32> to vector<1x128xf32>
    %14 = vector.broadcast %12 : vector<512x1xf32> to vector<512x128xf32>
    %15 = vector.broadcast %13 : vector<1x128xf32> to vector<512x128xf32>
    %16 = arith.mulf %14, %15 : vector<512x128xf32>
    %17 = arith.addf %11, %16 : vector<512x128xf32>
    %c0_5 = arith.constant 0 : index
    %c0_6 = arith.constant 0 : index
    %18 = vector.load %arg3[%c0_5, %c0_6] : memref<512x1xf32, #tpu.memory_space<vmem>>, vector<512x1xf32>
    %19 = vector.broadcast %18 : vector<512x1xf32> to vector<512x128xf32>
    %20 = arith.addf %17, %19 : vector<512x128xf32>
    %cst = arith.constant 0.000000e+00 : f32
    %21 = vector.broadcast %cst : f32 to vector<512x128xf32>
    %22 = arith.maximumf %20, %21 : vector<512x128xf32>
    %c0_7 = arith.constant 0 : index
    %c0_8 = arith.constant 0 : index
    %23 = vector.load %arg4[%c0_7, %c0_8] : memref<384x512xbf16, #tpu.memory_space<vmem>>, vector<384x512xbf16>
    %24 = arith.truncf %22 : vector<512x128xf32> to vector<512x128xbf16>
    %cst_9 = arith.constant dense<0.000000e+00> : vector<384x128xf32>
    %25 = tpu.matmul %23, %24, %cst_9 {dimension_numbers = #tpu.dot_dimension_numbers<[1], [0], [0], [1], [0, 0, 1, 1], [], []>} : vector<384x512xbf16>, vector<512x128xbf16>, vector<384x128xf32> -> vector<384x128xf32>
    %c0_10 = arith.constant 0 : index
    %c0_11 = arith.constant 0 : index
    %26 = vector.load %arg5[%c0_10, %c0_11] : memref<384x1xf32, #tpu.memory_space<vmem>>, vector<384x1xf32>
    %27 = vector.broadcast %26 : vector<384x1xf32> to vector<384x128xf32>
    %28 = arith.addf %25, %27 : vector<384x128xf32>
    %cst_12 = arith.constant 0.000000e+00 : f32
    %29 = vector.broadcast %cst_12 : f32 to vector<384x128xf32>
    %30 = arith.maximumf %28, %29 : vector<384x128xf32>
    %c0_13 = arith.constant 0 : index
    %c0_14 = arith.constant 0 : index
    %31 = vector.load %arg6[%c0_13, %c0_14] : memref<384x1xf32, #tpu.memory_space<vmem>>, vector<384x1xf32>
    %32 = vector.broadcast %31 : vector<384x1xf32> to vector<384x128xf32>
    %33 = arith.mulf %30, %32 : vector<384x128xf32>
    %cst_15 = arith.constant dense<0.000000e+00> : vector<128xf32>
    %34 = vector.multi_reduction <add>, %33, %cst_15 [0] : vector<384x128xf32> to vector<128xf32>
    %35 = vector.shape_cast %34 : vector<128xf32> to vector<1x128xf32>
    %c0_16 = arith.constant 0 : index
    %c0_17 = arith.constant 0 : index
    %36 = vector.load %arg7[%c0_16, %c0_17] : memref<1x1xf32, #tpu.memory_space<vmem>>, vector<1x1xf32>
    %37 = vector.extract %36[0, 0] : f32 from vector<1x1xf32>
    %38 = vector.broadcast %37 : f32 to vector<1x128xf32>
    %39 = arith.addf %35, %38 : vector<1x128xf32>
    %40 = math.tanh %39 : vector<1x128xf32>
    %c0_18 = arith.constant 0 : index
    %c0_19 = arith.constant 0 : index
    %41 = vector.load %arg8[%c0_18, %c0_19] : memref<1x128xf32, #tpu.memory_space<vmem>>, vector<1x128xf32>
    tpu.vector_store %arg8[%c0_18, %c0_19], %40 {strides = array<i32>} : memref<1x128xf32, #tpu.memory_space<vmem>>, vector<1x128xf32>,
    return
  }
  func.func @transform_0(%arg0: i32) -> (i32, i32) {
    %c0_i32 = arith.constant 0 : i32
    %c0_i32_0 = arith.constant 0 : i32
    return %c0_i32, %arg0 : i32, i32
  }
  func.func @transform_1(%arg0: i32) -> (i32, i32) {
    %c0_i32 = arith.constant 0 : i32
    %c0_i32_0 = arith.constant 0 : i32
    %c0_i32_1 = arith.constant 0 : i32
    return %c0_i32, %c0_i32_0 : i32, i32
  }
  func.func @transform_2(%arg0: i32) -> (i32, i32) {
    %c0_i32 = arith.constant 0 : i32
    %c0_i32_0 = arith.constant 0 : i32
    %c0_i32_1 = arith.constant 0 : i32
    return %c0_i32, %c0_i32_0 : i32, i32
  }
  func.func @transform_3(%arg0: i32) -> (i32, i32) {
    %c0_i32 = arith.constant 0 : i32
    %c0_i32_0 = arith.constant 0 : i32
    %c0_i32_1 = arith.constant 0 : i32
    return %c0_i32, %c0_i32_0 : i32, i32
  }
  func.func @transform_4(%arg0: i32) -> (i32, i32) {
    %c0_i32 = arith.constant 0 : i32
    %c0_i32_0 = arith.constant 0 : i32
    %c0_i32_1 = arith.constant 0 : i32
    return %c0_i32, %c0_i32_0 : i32, i32
  }
  func.func @transform_5(%arg0: i32) -> (i32, i32) {
    %c0_i32 = arith.constant 0 : i32
    %c0_i32_0 = arith.constant 0 : i32
    %c0_i32_1 = arith.constant 0 : i32
    return %c0_i32, %c0_i32_0 : i32, i32
  }
  func.func @transform_6(%arg0: i32) -> (i32, i32) {
    %c0_i32 = arith.constant 0 : i32
    %c0_i32_0 = arith.constant 0 : i32
    %c0_i32_1 = arith.constant 0 : i32
    return %c0_i32, %c0_i32_0 : i32, i32
  }
  func.func @transform_7(%arg0: i32) -> (i32, i32) {
    %c0_i32 = arith.constant 0 : i32
    %c0_i32_0 = arith.constant 0 : i32
    return %c0_i32, %arg0 : i32, i32
  }
}

</mosaic_0001>

<bundles_post_ra>
// kernel: actor_net_forward.1
= control target key start
LH: loop header
LB: loop body
LE: loop exit
PB: predicated region body
PF: predicated region fallthrough
CT: control target
= control target key end

     0   :  { %s4272_s26 = smov 0   ;;  %s6594_s0 = inlined_call_operand.vmem [shape: f32[3,256], index: 0, kind: input, shape index: {}]   ;;  %s6595_s1 = inlined_call_operand.vmem [shape: f32[512,3], index: 1, kind: input, shape index: {}]   ;;  %s6596_s2 = inlined_call_operand.vmem [shape: f32[512,1], index: 2, kind: input, shape index: {}]   ;;  %s6597_s3 = inlined_call_operand.vmem [shape: bf16[384,512], index: 3, kind: input, shape index: {}]   ;;  %s6598_s4 = inlined_call_operand.vmem [shape: f32[384,1], index: 4, kind: input, shape index: {}]   ;;  %s6599_s5 = inlined_call_operand.vmem [shape: f32[384,1], index: 5, kind: input, shape index: {}]   ;;  %s6600_s6 = inlined_call_operand.<no memory space> [shape: f32[1,1], index: 6, kind: input, shape index: {}]   ;;  %s6601_s7 = inlined_call_operand.vmem [shape: f32[1,256], index: 7, kind: output, shape index: {}]  }
   0x1   :  { %v12_v0 = vstv %s6600_s6 }
   0x2   :  { %13 = vst [vmem:[#allocation2] sm:$0x1] %v12_v0 }
   0x3 LB: > { %s3852_s27 = sadd.s32 4294967295, %s4224_s26   ;;  %p3856_p0 = scmp.ge.s32.totalorder %s4224_s26, 1  ;;  %s4224_s26 = sphi %s4272_s26, %s19_s26  }
   0x4   : > { %p238_p1 = scmp.lt.s32.totalorder %s4224_s26, 3 }
   0x6   : > { %p239_p2 = pnand %p3856_p0, %p238_p1 }
   0x8   : > { %242 = sbr.rel (%p239_p2) target bundleno = 1101 (0x44d), region = 48 }
   0xf   : > { %v4283_v1 = vld [vmem:[%s6595_s1 + $0x10] sm:$0xff]  ;;  %v4288_v2 = vld [vmem:[%s6595_s1] sm:$0xff]  ;;  %v4226_v3 = vmov 1   ;;  %v6603_v4 = vmov 0   ;;  %v4297_v5 = vld [vmem:[%s6595_s1 + $0x18] sm:$0xff]  ;;  %v6602_v39 = vmov 2  }
  0x10   : > { %4066 = vset.pattern.permute.xlu0 %v4226_v3  ;;  %4065 = vset.pattern.permute.xlu1 %v6603_v4  ;;  %v4306_v6 = vld [vmem:[%s6595_s1 + $0x28] sm:$0xff]  ;;  %v4313_v7 = vld [vmem:[%s6595_s1 + $0x38] sm:$0xff]  ;;  %v4529_v40 = vld [vmem:[%s6595_s1 + $0x20] sm:$0xff]  ;;  %p267_p3 = scmp.lt.s32.totalorder %s3852_s27, 1 }
  0x11   : > { %352 = vperm.xlu1 %4065, %v4283_v1   ;;  %729 = vperm.xlu0 %4066, %v4288_v2   ;;  %v4320_v8 = vld [vmem:[%s6595_s1 + $0x48] sm:$0xff]  ;;  %v4327_v9 = vld [vmem:[%s6595_s1 + $0x58] sm:$0xff]  ;;  %v4540_v43 = vld [vmem:[%s6595_s1 + $0x30] sm:$0xff] }
  0x12   : > { %2912 = vmatprep.subr.bf16.mxu1 %v6603_v4  ;;  %3137 = vmatprep.subr.bf16.mxu0 %v6603_v4  ;;  %v4334_v10 = vld [vmem:[%s6595_s1 + $0x68] sm:$0xff]  ;;  %v4341_v11 = vld [vmem:[%s6595_s1 + $0x78] sm:$0xff]  ;;  %v4551_v46 = vld [vmem:[%s6595_s1 + $0x40] sm:$0xff]  ;;  %s6946_s27 = smov (!%p267_p3, %s3852_s27), 1 }
  0x13   : > { %v4348_v12 = vld [vmem:[%s6595_s1 + $0x88] sm:$0xff]  ;;  %v4355_v13 = vld [vmem:[%s6595_s1 + $0x98] sm:$0xff]  ;;  %v4562_v49 = vld [vmem:[%s6595_s1 + $0x50] sm:$0xff]  ;;  %s3857_s6 = sshll.u32 %s6946_s27, 2 }
  0x14   : > { %v4362_v14 = vld [vmem:[%s6595_s1 + $0xa8] sm:$0xff]  ;;  %v4369_v15 = vld [vmem:[%s6595_s1 + $0xb8] sm:$0xff]  ;;  %v4573_v52 = vld [vmem:[%s6595_s1 + $0x60] sm:$0xff]  ;;  %s270_s13 = scalar_lea.vmem %s6594_s0, %s3857_s6 }
  0x15   : > { %357 = vperm.xlu1 %4065, %v4297_v5   ;;  %741 = vperm.xlu0 %4066, %v4297_v5   ;;  %v4376_v16 = vld [vmem:[%s6595_s1 + $0xc8] sm:$0xff]  ;;  %v4383_v17 = vld [vmem:[%s6595_s1 + $0xd8] sm:$0xff]  ;;  %v4584_v55 = vld [vmem:[%s6595_s1 + $0x70] sm:$0xff] }
  0x16   : > { %v4390_v18 = vld [vmem:[%s6595_s1 + $0xe8] sm:$0xff]  ;;  %v4397_v19 = vld [vmem:[%s6595_s1 + $0xf8] sm:$0xff]  ;;  %v4595_v58 = vld [vmem:[%s6595_s1 + $0x80] sm:$0xff] }
  0x17   : > { %v4404_v20 = vld [vmem:[%s6595_s1 + $0x108] sm:$0xff]  ;;  %v4411_v21 = vld [vmem:[%s6595_s1 + $0x118] sm:$0xff]  ;;  %v4606_v61 = vld [vmem:[%s6595_s1 + $0x90] sm:$0xff] }
  0x18   : > { %v4418_v22 = vld [vmem:[%s6595_s1 + $0x128] sm:$0xff]  ;;  %v4425_v23 = vld [vmem:[%s6595_s1 + $0x138] sm:$0xff]  ;;  %v4617_v0 = vld [vmem:[%s6595_s1 + $0xa0] sm:$0xff] }
  0x19   : > { %367 = vperm.xlu1 %4065, %v4306_v6   ;;  %749 = vperm.xlu0 %4066, %v4306_v6   ;;  %v4432_v24 = vld [vmem:[%s6595_s1 + $0x148] sm:$0xff]  ;;  %v4439_v25 = vld [vmem:[%s6595_s1 + $0x158] sm:$0xff]  ;;  %v4628_v4 = vld [vmem:[%s6595_s1 + $0xb0] sm:$0xff] }
  0x1a   : > { %v4446_v26 = vld [vmem:[%s6595_s1 + $0x168] sm:$0xff]  ;;  %v4453_v27 = vld [vmem:[%s6595_s1 + $0x178] sm:$0xff] }
  0x1b   : > { %v4460_v28 = vld [vmem:[%s6595_s1 + $0x188] sm:$0xff]  ;;  %v4467_v29 = vld [vmem:[%s6595_s1 + $0x198] sm:$0xff] }
  0x1c   : > { %v4474_v30 = vld [vmem:[%s6595_s1 + $0x1a8] sm:$0xff]  ;;  %v4481_v31 = vld [vmem:[%s6595_s1 + $0x1b8] sm:$0xff] }
  0x1d   : > { %377 = vperm.xlu1 %4065, %v4313_v7   ;;  %757 = vperm.xlu0 %4066, %v4313_v7   ;;  %6612 = vst [vmem:[#allocation3_spill] sm:$0xff] %v4481_v31  ;;  %v4488_v32 = vld [vmem:[%s6595_s1 + $0x1c8] sm:$0xff]  ;;  %v4495_v33 = vld [vmem:[%s6595_s1 + $0x1d8] sm:$0xff] }
  0x1e   : > { %6613 = vst [vmem:[#allocation4_spill] sm:$0xff] %v4488_v32  ;;  %6614 = vst [vmem:[#allocation5_spill] sm:$0xff] %v4495_v33  ;;  %v4502_v34 = vld [vmem:[%s6595_s1 + $0x1e8] sm:$0xff]  ;;  %v4509_v35 = vld [vmem:[%s6595_s1 + $0x1f8] sm:$0xff] }
  0x1f   : > { %6615 = vst [vmem:[#allocation6_spill] sm:$0xff] %v4502_v34  ;;  %6616 = vst [vmem:[#allocation7_spill] sm:$0xff] %v4509_v35  ;;  %v4516_v36 = vld [vmem:[%s6595_s1 + $0x8] sm:$0xff] }
  0x21   : > { %387 = vperm.xlu1 %4065, %v4320_v8   ;;  %765 = vperm.xlu0 %4066, %v4320_v8  }
  0x25   : > { %397 = vperm.xlu1 %4065, %v4327_v9   ;;  %773 = vperm.xlu0 %4066, %v4327_v9  }
  0x29   : > { %407 = vperm.xlu1 %4065, %v4334_v10   ;;  %781 = vperm.xlu0 %4066, %v4334_v10  }
  0x2d   : > { %417 = vperm.xlu1 %4065, %v4341_v11   ;;  %789 = vperm.xlu0 %4066, %v4341_v11  }
  0x31   : > { %427 = vperm.xlu1 %4065, %v4348_v12   ;;  %797 = vperm.xlu0 %4066, %v4348_v12  }
  0x35   : > { %437 = vperm.xlu1 %4065, %v4355_v13   ;;  %805 = vperm.xlu0 %4066, %v4355_v13  }
  0x39   : > { %447 = vperm.xlu1 %4065, %v4362_v14   ;;  %813 = vperm.xlu0 %4066, %v4362_v14  }
  0x3d   : > { %457 = vperm.xlu1 %4065, %v4369_v15   ;;  %821 = vperm.xlu0 %4066, %v4369_v15  }
  0x41   : > { %467 = vperm.xlu1 %4065, %v4376_v16   ;;  %829 = vperm.xlu0 %4066, %v4376_v16  }
  0x45   : > { %477 = vperm.xlu1 %4065, %v4383_v17   ;;  %837 = vperm.xlu0 %4066, %v4383_v17  }
  0x49   : > { %487 = vperm.xlu1 %4065, %v4390_v18   ;;  %845 = vperm.xlu0 %4066, %v4390_v18  }
  0x4d   : > { %497 = vperm.xlu1 %4065, %v4397_v19   ;;  %853 = vperm.xlu0 %4066, %v4397_v19  }
  0x51   : > { %507 = vperm.xlu1 %4065, %v4404_v20   ;;  %861 = vperm.xlu0 %4066, %v4404_v20  }
  0x55   : > { %517 = vperm.xlu1 %4065, %v4411_v21   ;;  %869 = vperm.xlu0 %4066, %v4411_v21  }
  0x59   : > { %527 = vperm.xlu1 %4065, %v4418_v22   ;;  %877 = vperm.xlu0 %4066, %v4418_v22  }
  0x5d   : > { %537 = vperm.xlu1 %4065, %v4425_v23   ;;  %885 = vperm.xlu0 %4066, %v4425_v23  }
  0x61   : > { %547 = vperm.xlu1 %4065, %v4432_v24   ;;  %893 = vperm.xlu0 %4066, %v4432_v24  }
  0x65   : > { %557 = vperm.xlu1 %4065, %v4439_v25   ;;  %901 = vperm.xlu0 %4066, %v4439_v25  }
  0x69   : > { %567 = vperm.xlu1 %4065, %v4446_v26   ;;  %909 = vperm.xlu0 %4066, %v4446_v26  }
  0x6d   : > { %577 = vperm.xlu1 %4065, %v4453_v27   ;;  %917 = vperm.xlu0 %4066, %v4453_v27  }
  0x71   : > { %587 = vperm.xlu1 %4065, %v4460_v28   ;;  %925 = vperm.xlu0 %4066, %v4460_v28  }
  0x75   : > { %597 = vperm.xlu1 %4065, %v4467_v29   ;;  %933 = vperm.xlu0 %4066, %v4467_v29  }
  0x79   : > { %607 = vperm.xlu1 %4065, %v4474_v30   ;;  %941 = vperm.xlu0 %4066, %v4474_v30  }
  0x7d   : > { %617 = vperm.xlu1 %4065, %v4481_v31   ;;  %949 = vperm.xlu0 %4066, %v4481_v31  }
  0x81   : > { %627 = vperm.xlu1 %4065, %v4488_v32   ;;  %957 = vperm.xlu0 %4066, %v4488_v32  }
  0x85   : > { %637 = vperm.xlu1 %4065, %v4495_v33   ;;  %965 = vperm.xlu0 %4066, %v4495_v33  }
  0x89   : > { %647 = vperm.xlu1 %4065, %v4502_v34   ;;  %973 = vperm.xlu0 %4066, %v4502_v34  }
  0x8d   : > { %657 = vperm.xlu1 %4065, %v4509_v35   ;;  %981 = vperm.xlu0 %4066, %v4509_v35  }
  0x90   : > { %v4518_v37 = vpop.permute.xlu1 %352  ;;  %v4520_v38 = vpop.permute.xlu0 %729 }
  0x91   : > { %6617 = vst [vmem:[#allocation8_spill] sm:$0xff] %v4518_v37  ;;  %6618 = vst [vmem:[#allocation9_spill] sm:$0xff] %v4520_v38  ;;  %4067 = vset.pattern.permute.xlu1 %v4226_v3  ;;  %4069 = vset.pattern.permute.xlu0 %v6602_v39 }
  0x92   : > { %733 = vperm.xlu1 %4067, %v4516_v36   ;;  %1121 = vperm.xlu0 %4069, %v4516_v36  }
  0x94   : > { %v4531_v41 = vpop.permute.xlu1 %357  ;;  %v4533_v42 = vpop.permute.xlu0 %741 }
  0x95   : > { %6619 = vst [vmem:[#allocation10_spill] sm:$0xff] %v4531_v41  ;;  %6620 = vst [vmem:[#allocation11_spill] sm:$0xff] %v4533_v42 }
  0x96   : > { %737 = vperm.xlu1 %4067, %v4283_v1   ;;  %1133 = vperm.xlu0 %4069, %v4529_v40  }
  0x98   : > { %v4542_v44 = vpop.permute.xlu1 %367  ;;  %v4544_v45 = vpop.permute.xlu0 %749 }
  0x99   : > { %6621 = vst [vmem:[#allocation12_spill] sm:$0xff] %v4542_v44  ;;  %6622 = vst [vmem:[#allocation13_spill] sm:$0xff] %v4544_v45 }
  0x9a   : > { %745 = vperm.xlu1 %4067, %v4529_v40   ;;  %1141 = vperm.xlu0 %4069, %v4540_v43  }
  0x9c   : > { %v4553_v47 = vpop.permute.xlu1 %377  ;;  %v4555_v48 = vpop.permute.xlu0 %757 }
  0x9d   : > { %6623 = vst [vmem:[#allocation14_spill] sm:$0xff] %v4553_v47  ;;  %6624 = vst [vmem:[#allocation15_spill] sm:$0xff] %v4555_v48 }
  0x9e   : > { %753 = vperm.xlu1 %4067, %v4540_v43   ;;  %1149 = vperm.xlu0 %4069, %v4551_v46  }
  0xa0   : > { %v4564_v50 = vpop.permute.xlu1 %387  ;;  %v4566_v51 = vpop.permute.xlu0 %765 }
  0xa1   : > { %6625 = vst [vmem:[#allocation16_spill] sm:$0xff] %v4564_v50  ;;  %6626 = vst [vmem:[#allocation17_spill] sm:$0xff] %v4566_v51 }
  0xa2   : > { %761 = vperm.xlu1 %4067, %v4551_v46   ;;  %1157 = vperm.xlu0 %4069, %v4562_v49  }
  0xa4   : > { %v4575_v53 = vpop.permute.xlu1 %397  ;;  %v4577_v54 = vpop.permute.xlu0 %773 }
  0xa5   : > { %6627 = vst [vmem:[#allocation18_spill] sm:$0xff] %v4575_v53  ;;  %6628 = vst [vmem:[#allocation19_spill] sm:$0xff] %v4577_v54 }
  0xa6   : > { %769 = vperm.xlu1 %4067, %v4562_v49   ;;  %1165 = vperm.xlu0 %4069, %v4573_v52  }
  0xa8   : > { %v4586_v56 = vpop.permute.xlu1 %407  ;;  %v4588_v57 = vpop.permute.xlu0 %781 }
  0xa9   : > { %6629 = vst [vmem:[#allocation20_spill] sm:$0xff] %v4586_v56  ;;  %6630 = vst [vmem:[#allocation21_spill] sm:$0xff] %v4588_v57 }
  0xaa   : > { %777 = vperm.xlu1 %4067, %v4573_v52   ;;  %1173 = vperm.xlu0 %4069, %v4584_v55  }
  0xac   : > { %v4597_v59 = vpop.permute.xlu1 %417  ;;  %v4599_v60 = vpop.permute.xlu0 %789 }
  0xad   : > { %6631 = vst [vmem:[#allocation22_spill] sm:$0xff] %v4597_v59  ;;  %6632 = vst [vmem:[#allocation23_spill] sm:$0xff] %v4599_v60 }
  0xae   : > { %785 = vperm.xlu1 %4067, %v4584_v55   ;;  %1181 = vperm.xlu0 %4069, %v4595_v58  }
  0xb0   : > { %v4608_v62 = vpop.permute.xlu1 %427  ;;  %v4610_v63 = vpop.permute.xlu0 %797 }
  0xb1   : > { %6633 = vst [vmem:[#allocation24_spill] sm:$0xff] %v4608_v62  ;;  %6634 = vst [vmem:[#allocation25_spill] sm:$0xff] %v4610_v63 }
  0xb2   : > { %793 = vperm.xlu1 %4067, %v4595_v58   ;;  %1189 = vperm.xlu0 %4069, %v4606_v61  }
  0xb4   : > { %v4619_v3 = vpop.permute.xlu1 %437  ;;  %v4621_v39 = vpop.permute.xlu0 %805 }
  0xb5   : > { %6635 = vst [vmem:[#allocation26_spill] sm:$0xff] %v4619_v3  ;;  %6636 = vst [vmem:[#allocation27_spill] sm:$0xff] %v4621_v39  ;;  %v4639_v39 = vld [vmem:[%s6595_s1 + $0xc0] sm:$0xff] }
  0xb6   : > { %801 = vperm.xlu1 %4067, %v4606_v61   ;;  %1197 = vperm.xlu0 %4069, %v4617_v0  }
  0xb8   : > { %v4630_v63 = vpop.permute.xlu1 %447  ;;  %v4632_v62 = vpop.permute.xlu0 %813 }
  0xb9   : > { %6637 = vst [vmem:[#allocation28_spill] sm:$0xff] %v4630_v63  ;;  %6638 = vst [vmem:[#allocation29_spill] sm:$0xff] %v4632_v62  ;;  %v4650_v62 = vld [vmem:[%s6595_s1 + $0xd0] sm:$0xff] }
  0xba   : > { %809 = vperm.xlu1 %4067, %v4617_v0   ;;  %1205 = vperm.xlu0 %4069, %v4628_v4  }
  0xbc   : > { %v4641_v3 = vpop.permute.xlu1 %457  ;;  %v4643_v60 = vpop.permute.xlu0 %821 }
  0xbd   : > { %6639 = vst [vmem:[#allocation30_spill] sm:$0xff] %v4641_v3  ;;  %6640 = vst [vmem:[#allocation31_spill] sm:$0xff] %v4643_v60  ;;  %v4661_v60 = vld [vmem:[%s6595_s1 + $0xe0] sm:$0xff] }
  0xbe   : > { %817 = vperm.xlu1 %4067, %v4628_v4   ;;  %1213 = vperm.xlu0 %4069, %v4639_v39  }
  0xc0   : > { %v4652_v63 = vpop.permute.xlu1 %467  ;;  %v4654_v59 = vpop.permute.xlu0 %829 }
  0xc1   : > { %6641 = vst [vmem:[#allocation32_spill] sm:$0xff] %v4652_v63  ;;  %6642 = vst [vmem:[#allocation33_spill] sm:$0xff] %v4654_v59  ;;  %v4672_v59 = vld [vmem:[%s6595_s1 + $0xf0] sm:$0xff] }
  0xc2   : > { %825 = vperm.xlu1 %4067, %v4639_v39   ;;  %1221 = vperm.xlu0 %4069, %v4650_v62  }
  0xc4   : > { %v4663_v3 = vpop.permute.xlu1 %477  ;;  %v4665_v57 = vpop.permute.xlu0 %837 }
  0xc5   : > { %6643 = vst [vmem:[#allocation34_spill] sm:$0xff] %v4663_v3  ;;  %6644 = vst [vmem:[#allocation35_spill] sm:$0xff] %v4665_v57  ;;  %v4683_v57 = vld [vmem:[%s6595_s1 + $0x100] sm:$0xff] }
  0xc6   : > { %833 = vperm.xlu1 %4067, %v4650_v62   ;;  %1229 = vperm.xlu0 %4069, %v4661_v60  }
  0xc8   : > { %v4674_v63 = vpop.permute.xlu1 %487  ;;  %v4676_v56 = vpop.permute.xlu0 %845 }
  0xc9   : > { %6645 = vst [vmem:[#allocation36_spill] sm:$0xff] %v4674_v63  ;;  %6646 = vst [vmem:[#allocation37_spill] sm:$0xff] %v4676_v56  ;;  %v4694_v56 = vld [vmem:[%s6595_s1 + $0x110] sm:$0xff] }
  0xca   : > { %841 = vperm.xlu1 %4067, %v4661_v60   ;;  %1237 = vperm.xlu0 %4069, %v4672_v59  }
  0xcc   : > { %v4685_v3 = vpop.permute.xlu1 %497  ;;  %v4687_v54 = vpop.permute.xlu0 %853 }
  0xcd   : > { %6647 = vst [vmem:[#allocation38_spill] sm:$0xff] %v4685_v3  ;;  %6648 = vst [vmem:[#allocation39_spill] sm:$0xff] %v4687_v54  ;;  %v4705_v54 = vld [vmem:[%s6595_s1 + $0x120] sm:$0xff] }
  0xce   : > { %849 = vperm.xlu1 %4067, %v4672_v59   ;;  %1245 = vperm.xlu0 %4069, %v4683_v57  }
  0xd0   : > { %v4696_v63 = vpop.permute.xlu1 %507  ;;  %v4698_v53 = vpop.permute.xlu0 %861 }
  0xd1   : > { %6649 = vst [vmem:[#allocation40_spill] sm:$0xff] %v4696_v63  ;;  %6650 = vst [vmem:[#allocation41_spill] sm:$0xff] %v4698_v53  ;;  %v4716_v53 = vld [vmem:[%s6595_s1 + $0x130] sm:$0xff] }
  0xd2   : > { %857 = vperm.xlu1 %4067, %v4683_v57   ;;  %1253 = vperm.xlu0 %4069, %v4694_v56  }
  0xd4   : > { %v4707_v3 = vpop.permute.xlu1 %517  ;;  %v4709_v51 = vpop.permute.xlu0 %869 }
  0xd5   : > { %6651 = vst [vmem:[#allocation42_spill] sm:$0xff] %v4707_v3  ;;  %6652 = vst [vmem:[#allocation43_spill] sm:$0xff] %v4709_v51  ;;  %v4727_v51 = vld [vmem:[%s6595_s1 + $0x140] sm:$0xff] }
  0xd6   : > { %865 = vperm.xlu1 %4067, %v4694_v56   ;;  %1261 = vperm.xlu0 %4069, %v4705_v54  }
  0xd8   : > { %v4718_v63 = vpop.permute.xlu1 %527  ;;  %v4720_v50 = vpop.permute.xlu0 %877 }
  0xd9   : > { %6653 = vst [vmem:[#allocation44_spill] sm:$0xff] %v4718_v63  ;;  %6654 = vst [vmem:[#allocation45_spill] sm:$0xff] %v4720_v50  ;;  %v4738_v50 = vld [vmem:[%s6595_s1 + $0x150] sm:$0xff] }
  0xda   : > { %873 = vperm.xlu1 %4067, %v4705_v54   ;;  %1269 = vperm.xlu0 %4069, %v4716_v53  }
  0xdc   : > { %v4729_v3 = vpop.permute.xlu1 %537  ;;  %v4731_v48 = vpop.permute.xlu0 %885 }
  0xdd   : > { %6655 = vst [vmem:[#allocation46_spill] sm:$0xff] %v4729_v3  ;;  %6656 = vst [vmem:[#allocation47_spill] sm:$0xff] %v4731_v48  ;;  %v4749_v48 = vld [vmem:[%s6595_s1 + $0x160] sm:$0xff] }
  0xde   : > { %881 = vperm.xlu1 %4067, %v4716_v53   ;;  %1277 = vperm.xlu0 %4069, %v4727_v51  }
  0xe0   : > { %v4740_v63 = vpop.permute.xlu1 %547  ;;  %v4742_v47 = vpop.permute.xlu0 %893 }
  0xe1   : > { %6657 = vst [vmem:[#allocation48_spill] sm:$0xff] %v4740_v63  ;;  %6658 = vst [vmem:[#allocation49_spill] sm:$0xff] %v4742_v47  ;;  %v4760_v47 = vld [vmem:[%s6595_s1 + $0x170] sm:$0xff] }
  0xe2   : > { %889 = vperm.xlu1 %4067, %v4727_v51   ;;  %1285 = vperm.xlu0 %4069, %v4738_v50  }
  0xe4   : > { %v4751_v3 = vpop.permute.xlu1 %557  ;;  %v4753_v37 = vpop.permute.xlu0 %901 }
  0xe5   : > { %6659 = vst [vmem:[#allocation50_spill] sm:$0xff] %v4751_v3  ;;  %6660 = vst [vmem:[#allocation51_spill] sm:$0xff] %v4753_v37  ;;  %v4771_v37 = vld [vmem:[%s6595_s1 + $0x180] sm:$0xff] }
  0xe6   : > { %897 = vperm.xlu1 %4067, %v4738_v50   ;;  %1293 = vperm.xlu0 %4069, %v4749_v48  }
  0xe8   : > { %v4762_v63 = vpop.permute.xlu1 %567  ;;  %v4764_v45 = vpop.permute.xlu0 %909 }
  0xe9   : > { %6661 = vst [vmem:[#allocation52_spill] sm:$0xff] %v4762_v63  ;;  %6662 = vst [vmem:[#allocation53_spill] sm:$0xff] %v4764_v45  ;;  %v4782_v45 = vld [vmem:[%s6595_s1 + $0x190] sm:$0xff] }
  0xea   : > { %905 = vperm.xlu1 %4067, %v4749_v48   ;;  %1301 = vperm.xlu0 %4069, %v4760_v47  }
  0xec   : > { %v4773_v3 = vpop.permute.xlu1 %577  ;;  %v4775_v44 = vpop.permute.xlu0 %917 }
  0xed   : > { %6663 = vst [vmem:[#allocation54_spill] sm:$0xff] %v4773_v3  ;;  %6664 = vst [vmem:[#allocation55_spill] sm:$0xff] %v4775_v44  ;;  %v4793_v44 = vld [vmem:[%s6595_s1 + $0x1a0] sm:$0xff] }
  0xee   : > { %913 = vperm.xlu1 %4067, %v4760_v47   ;;  %1309 = vperm.xlu0 %4069, %v4771_v37  }
  0xf0   : > { %v4784_v63 = vpop.permute.xlu1 %587  ;;  %v4786_v42 = vpop.permute.xlu0 %925 }
  0xf1   : > { %6665 = vst [vmem:[#allocation56_spill] sm:$0xff] %v4784_v63  ;;  %6666 = vst [vmem:[#allocation57_spill] sm:$0xff] %v4786_v42  ;;  %v4804_v42 = vld [vmem:[%s6595_s1 + $0x1b0] sm:$0xff] }
  0xf2   : > { %921 = vperm.xlu1 %4067, %v4771_v37   ;;  %1317 = vperm.xlu0 %4069, %v4782_v45  }
  0xf4   : > { %v4795_v3 = vpop.permute.xlu1 %597  ;;  %v4797_v41 = vpop.permute.xlu0 %933 }
  0xf5   : > { %6667 = vst [vmem:[#allocation58_spill] sm:$0xff] %v4795_v3  ;;  %6668 = vst [vmem:[#allocation59_spill] sm:$0xff] %v4797_v41  ;;  %v4815_v41 = vld [vmem:[%s6595_s1 + $0x1c0] sm:$0xff] }
  0xf6   : > { %929 = vperm.xlu1 %4067, %v4782_v45   ;;  %1325 = vperm.xlu0 %4069, %v4793_v44   ;;  %6671 = vst [vmem:[#allocation62_spill] sm:$0xff] %v4815_v41 }
  0xf8   : > { %v4806_v63 = vpop.permute.xlu1 %607  ;;  %v4808_v38 = vpop.permute.xlu0 %941 }
  0xf9   : > { %6669 = vst [vmem:[#allocation60_spill] sm:$0xff] %v4806_v63  ;;  %6670 = vst [vmem:[#allocation61_spill] sm:$0xff] %v4808_v38  ;;  %v4826_v38 = vld [vmem:[%s6595_s1 + $0x1d0] sm:$0xff] }
  0xfa   : > { %937 = vperm.xlu1 %4067, %v4793_v44   ;;  %1333 = vperm.xlu0 %4069, %v4804_v42   ;;  %6674 = vst [vmem:[#allocation65_spill] sm:$0xff] %v4826_v38 }
  0xfc   : > { %v4817_v3 = vpop.permute.xlu1 %617  ;;  %v4819_v35 = vpop.permute.xlu0 %949 }
  0xfd   : > { %6672 = vst [vmem:[#allocation63_spill] sm:$0xff] %v4817_v3  ;;  %6673 = vst [vmem:[#allocation64_spill] sm:$0xff] %v4819_v35  ;;  %v4837_v35 = vld [vmem:[%s6595_s1 + $0x1e0] sm:$0xff] }
  0xfe   : > { %945 = vperm.xlu1 %4067, %v4804_v42   ;;  %1341 = vperm.xlu0 %4069, %v4815_v41  }
 0x100   : > { %v4828_v63 = vpop.permute.xlu1 %627  ;;  %v4830_v34 = vpop.permute.xlu0 %957 }
 0x101   : > { %6675 = vst [vmem:[#allocation66_spill] sm:$0xff] %v4828_v63  ;;  %6676 = vst [vmem:[#allocation67_spill] sm:$0xff] %v4830_v34  ;;  %v4848_v34 = vld [vmem:[%s6595_s1 + $0x1f0] sm:$0xff] }
 0x102   : > { %953 = vperm.xlu1 %4067, %v4815_v41   ;;  %1349 = vperm.xlu0 %4069, %v4826_v38  }
 0x104   : > { %v4839_v3 = vpop.permute.xlu1 %637  ;;  %v4841_v33 = vpop.permute.xlu0 %965 }
 0x105   : > { %6677 = vst [vmem:[#allocation68_spill] sm:$0xff] %v4839_v3  ;;  %6678 = vst [vmem:[#allocation69_spill] sm:$0xff] %v4841_v33 }
 0x106   : > { %961 = vperm.xlu1 %4067, %v4826_v38   ;;  %1357 = vperm.xlu0 %4069, %v4837_v35   ;;  %v6683_v38 = vmov 0  }
 0x108   : > { %v4850_v63 = vpop.permute.xlu1 %647  ;;  %v4852_v32 = vpop.permute.xlu0 %973 }
 0x109   : > { %6679 = vst [vmem:[#allocation70_spill] sm:$0xff] %v4850_v63  ;;  %6680 = vst [vmem:[#allocation71_spill] sm:$0xff] %v4852_v32  ;;  %v6684_v63 = vmov 2  }
 0x10a   : > { %969 = vperm.xlu1 %4067, %v4837_v35   ;;  %1365 = vperm.xlu0 %4069, %v4848_v34  }
 0x10c   : > { %v4856_v3 = vpop.permute.xlu1 %657  ;;  %v4858_v33 = vpop.permute.xlu0 %981 }
 0x10d   : > { %6681 = vst [vmem:[#allocation72_spill] sm:$0xff] %v4856_v3  ;;  %6682 = vst [vmem:[#allocation73_spill] sm:$0xff] %v4858_v33 }
 0x10e   : > { %977 = vperm.xlu1 %4067, %v4848_v34   ;;  %4070 = vset.pattern.permute.xlu0 %v6683_v38 }
 0x10f   : > { %342 = vperm.xlu0 %4070, %v4288_v2  }
 0x111   : > { %v4863_v31 = vpop.permute.xlu1 %733  ;;  %v4865_v41 = vpop.permute.xlu0 %1121 }
 0x112   : > { %4068 = vset.pattern.permute.xlu1 %v6684_v63 }
 0x113   : > { %1117 = vperm.xlu1 %4068, %v4288_v2   ;;  %347 = vperm.xlu0 %4070, %v4516_v36  }
 0x115   : > { %v4870_v32 = vpop.permute.xlu1 %737  ;;  %v4872_v3 = vpop.permute.xlu0 %1133 }
 0x117   : > { %1125 = vperm.xlu1 %4068, %v4283_v1   ;;  %362 = vperm.xlu0 %4070, %v4529_v40  }
 0x119   : > { %v4876_v33 = vpop.permute.xlu1 %745  ;;  %v4878_v38 = vpop.permute.xlu0 %1141 }
 0x11b   : > { %1129 = vperm.xlu1 %4068, %v4297_v5   ;;  %372 = vperm.xlu0 %4070, %v4540_v43  }
 0x11d   : > { %v4882_v63 = vpop.permute.xlu1 %753  ;;  %v4884_v2 = vpop.permute.xlu0 %1149 }
 0x11f   : > { %1137 = vperm.xlu1 %4068, %v4306_v6   ;;  %382 = vperm.xlu0 %4070, %v4551_v46  }
 0x121   : > { %v4888_v36 = vpop.permute.xlu1 %761  ;;  %v4890_v1 = vpop.permute.xlu0 %1157 }
 0x123   : > { %1145 = vperm.xlu1 %4068, %v4313_v7   ;;  %392 = vperm.xlu0 %4070, %v4562_v49  }
 0x125   : > { %v4894_v40 = vpop.permute.xlu1 %769  ;;  %v4896_v5 = vpop.permute.xlu0 %1165 }
 0x127   : > { %1153 = vperm.xlu1 %4068, %v4320_v8   ;;  %402 = vperm.xlu0 %4070, %v4573_v52  }
 0x129   : > { %v4900_v43 = vpop.permute.xlu1 %777  ;;  %v4902_v6 = vpop.permute.xlu0 %1173 }
 0x12b   : > { %1161 = vperm.xlu1 %4068, %v4327_v9   ;;  %412 = vperm.xlu0 %4070, %v4584_v55  }
 0x12d   : > { %v4906_v46 = vpop.permute.xlu1 %785  ;;  %v4908_v7 = vpop.permute.xlu0 %1181 }
 0x12f   : > { %1169 = vperm.xlu1 %4068, %v4334_v10   ;;  %422 = vperm.xlu0 %4070, %v4595_v58  }
 0x131   : > { %v4912_v49 = vpop.permute.xlu1 %793  ;;  %v4914_v8 = vpop.permute.xlu0 %1189 }
 0x132   : > { %6685 = vst [vmem:[#allocation74_spill] sm:$0xff] %v4914_v8 }
 0x133   : > { %1177 = vperm.xlu1 %4068, %v4341_v11   ;;  %432 = vperm.xlu0 %4070, %v4606_v61  }
 0x135   : > { %v4918_v52 = vpop.permute.xlu1 %801  ;;  %v4920_v9 = vpop.permute.xlu0 %1197 }
 0x136   : > { %6686 = vst [vmem:[#allocation75_spill] sm:$0xff] %v4918_v52  ;;  %6687 = vst [vmem:[#allocation76_spill] sm:$0xff] %v4920_v9  ;;  %v1527_v52 = vld [vmem:[%s6596_s2 + $0xb8] sm:$0xff] }
 0x137   : > { %1185 = vperm.xlu1 %4068, %v4348_v12   ;;  %442 = vperm.xlu0 %4070, %v4617_v0  }
 0x139   : > { %v4924_v55 = vpop.permute.xlu1 %809  ;;  %v4926_v10 = vpop.permute.xlu0 %1205 }
 0x13a   : > { %6688 = vst [vmem:[#allocation77_spill] sm:$0xff] %v4924_v55  ;;  %6689 = vst [vmem:[#allocation78_spill] sm:$0xff] %v4926_v10 }
 0x13b   : > { %1193 = vperm.xlu1 %4068, %v4355_v13   ;;  %452 = vperm.xlu0 %4070, %v4628_v4  }
 0x13d   : > { %v4930_v58 = vpop.permute.xlu1 %817  ;;  %v4932_v11 = vpop.permute.xlu0 %1213 }
 0x13e   : > { %6690 = vst [vmem:[#allocation79_spill] sm:$0xff] %v4930_v58  ;;  %6691 = vst [vmem:[#allocation80_spill] sm:$0xff] %v4932_v11 }
 0x13f   : > { %1201 = vperm.xlu1 %4068, %v4362_v14   ;;  %462 = vperm.xlu0 %4070, %v4639_v39  }
 0x141   : > { %v4936_v61 = vpop.permute.xlu1 %825  ;;  %v4938_v12 = vpop.permute.xlu0 %1221 }
 0x142   : > { %6692 = vst [vmem:[#allocation81_spill] sm:$0xff] %v4936_v61  ;;  %6693 = vst [vmem:[#allocation82_spill] sm:$0xff] %v4938_v12 }
 0x143   : > { %1209 = vperm.xlu1 %4068, %v4369_v15   ;;  %472 = vperm.xlu0 %4070, %v4650_v62  }
 0x145   : > { %v4942_v0 = vpop.permute.xlu1 %833  ;;  %v4944_v13 = vpop.permute.xlu0 %1229 }
 0x146   : > { %6694 = vst [vmem:[#allocation83_spill] sm:$0xff] %v4942_v0  ;;  %6695 = vst [vmem:[#allocation84_spill] sm:$0xff] %v4944_v13 }
 0x147   : > { %1217 = vperm.xlu1 %4068, %v4376_v16   ;;  %482 = vperm.xlu0 %4070, %v4661_v60  }
 0x149   : > { %v4948_v4 = vpop.permute.xlu1 %841  ;;  %v4950_v14 = vpop.permute.xlu0 %1237 }
 0x14a   : > { %6696 = vst [vmem:[#allocation85_spill] sm:$0xff] %v4948_v4  ;;  %6697 = vst [vmem:[#allocation86_spill] sm:$0xff] %v4950_v14 }
 0x14b   : > { %1225 = vperm.xlu1 %4068, %v4383_v17   ;;  %492 = vperm.xlu0 %4070, %v4672_v59  }
 0x14d   : > { %v4954_v39 = vpop.permute.xlu1 %849  ;;  %v4956_v15 = vpop.permute.xlu0 %1245 }
 0x14e   : > { %6698 = vst [vmem:[#allocation87_spill] sm:$0xff] %v4954_v39  ;;  %v6726_v39 = vld [vmem:[#allocation65_spill] sm:$0xff] }
 0x14f   : > { %1233 = vperm.xlu1 %4068, %v4390_v18   ;;  %502 = vperm.xlu0 %4070, %v4683_v57  }
 0x151   : > { %v4960_v62 = vpop.permute.xlu1 %857  ;;  %v4962_v16 = vpop.permute.xlu0 %1253 }
 0x152   : > { %6699 = vst [vmem:[#allocation88_spill] sm:$0xff] %v4962_v16 }
 0x153   : > { %1241 = vperm.xlu1 %4068, %v4397_v19   ;;  %512 = vperm.xlu0 %4070, %v4694_v56  }
 0x155   : > { %v4966_v60 = vpop.permute.xlu1 %865  ;;  %v4968_v17 = vpop.permute.xlu0 %1261 }
 0x156   : > { %6700 = vst [vmem:[#allocation89_spill] sm:$0xff] %v4966_v60  ;;  %6701 = vst [vmem:[#allocation90_spill] sm:$0xff] %v4968_v17 }
 0x157   : > { %1249 = vperm.xlu1 %4068, %v4404_v20   ;;  %522 = vperm.xlu0 %4070, %v4705_v54  }
 0x159   : > { %v4972_v59 = vpop.permute.xlu1 %873  ;;  %v4974_v18 = vpop.permute.xlu0 %1269 }
 0x15a   : > { %6702 = vst [vmem:[#allocation91_spill] sm:$0xff] %v4972_v59  ;;  %6703 = vst [vmem:[#allocation92_spill] sm:$0xff] %v4974_v18  ;;  %v6785_v59 = vld [vmem:[#allocation13_spill] sm:$0xff] }
 0x15b   : > { %1257 = vperm.xlu1 %4068, %v4411_v21   ;;  %532 = vperm.xlu0 %4070, %v4716_v53  }
 0x15d   : > { %v4978_v57 = vpop.permute.xlu1 %881  ;;  %v4980_v19 = vpop.permute.xlu0 %1277 }
 0x15e   : > { %6704 = vst [vmem:[#allocation93_spill] sm:$0xff] %v4978_v57  ;;  %6705 = vst [vmem:[#allocation94_spill] sm:$0xff] %v4980_v19 }
 0x15f   : > { %1265 = vperm.xlu1 %4068, %v4418_v22   ;;  %542 = vperm.xlu0 %4070, %v4727_v51  }
 0x161   : > { %v4984_v56 = vpop.permute.xlu1 %889  ;;  %v4986_v20 = vpop.permute.xlu0 %1285 }
 0x162   : > { %6706 = vst [vmem:[#allocation95_spill] sm:$0xff] %v4984_v56  ;;  %6707 = vst [vmem:[#allocation96_spill] sm:$0xff] %v4986_v20 }
 0x163   : > { %1273 = vperm.xlu1 %4068, %v4425_v23   ;;  %552 = vperm.xlu0 %4070, %v4738_v50  }
 0x165   : > { %v4990_v54 = vpop.permute.xlu1 %897  ;;  %v4992_v21 = vpop.permute.xlu0 %1293 }
 0x166   : > { %6708 = vst [vmem:[#allocation97_spill] sm:$0xff] %v4990_v54  ;;  %6709 = vst [vmem:[#allocation98_spill] sm:$0xff] %v4992_v21  ;;  %v1525_v21 = vld [vmem:[%s6596_s2 + $0xa8] sm:$0xff]  ;;  %v1559_v54 = vld [vmem:[%s6596_s2 + $0x1b8] sm:$0xff] }
 0x167   : > { %1281 = vperm.xlu1 %4068, %v4432_v24   ;;  %562 = vperm.xlu0 %4070, %v4749_v48  }
 0x169   : > { %v4996_v53 = vpop.permute.xlu1 %905  ;;  %v4998_v22 = vpop.permute.xlu0 %1301 }
 0x16a   : > { %6710 = vst [vmem:[#allocation99_spill] sm:$0xff] %v4996_v53  ;;  %6711 = vst [vmem:[#allocation100_spill] sm:$0xff] %v4998_v22  ;;  %v1557_v53 = vld [vmem:[%s6596_s2 + $0x1a8] sm:$0xff] }
 0x16b   : > { %1289 = vperm.xlu1 %4068, %v4439_v25   ;;  %572 = vperm.xlu0 %4070, %v4760_v47  }
 0x16d   : > { %v5002_v51 = vpop.permute.xlu1 %913  ;;  %v5004_v23 = vpop.permute.xlu0 %1309 }
 0x16e   : > { %6712 = vst [vmem:[#allocation101_spill] sm:$0xff] %v5002_v51  ;;  %6713 = vst [vmem:[#allocation102_spill] sm:$0xff] %v5004_v23 }
 0x16f   : > { %1297 = vperm.xlu1 %4068, %v4446_v26   ;;  %582 = vperm.xlu0 %4070, %v4771_v37  }
 0x171   : > { %v5008_v50 = vpop.permute.xlu1 %921  ;;  %v5010_v24 = vpop.permute.xlu0 %1317 }
 0x172   : > { %6714 = vst [vmem:[#allocation103_spill] sm:$0xff] %v5008_v50  ;;  %6715 = vst [vmem:[#allocation104_spill] sm:$0xff] %v5010_v24  ;;  %v1538_v24 = vld [vmem:[%s6596_s2 + $0x110] sm:$0xff] }
 0x173   : > { %1305 = vperm.xlu1 %4068, %v4453_v27   ;;  %592 = vperm.xlu0 %4070, %v4782_v45   ;;  %v6722_v45 = vld [vmem:[#allocation62_spill] sm:$0xff] }
 0x175   : > { %v5014_v48 = vpop.permute.xlu1 %929  ;;  %v5016_v25 = vpop.permute.xlu0 %1325 }
 0x176   : > { %6716 = vst [vmem:[#allocation105_spill] sm:$0xff] %v5014_v48  ;;  %6717 = vst [vmem:[#allocation106_spill] sm:$0xff] %v5016_v25  ;;  %v1521_v25 = vld [vmem:[%s6596_s2 + $0x88] sm:$0xff]  ;;  %v1540_v48 = vld [vmem:[%s6596_s2 + $0x120] sm:$0xff] }
 0x177   : > { %1313 = vperm.xlu1 %4068, %v4460_v28   ;;  %602 = vperm.xlu0 %4070, %v4793_v44   ;;  %v6725_v44 = vld [vmem:[#allocation3_spill] sm:$0xff] }
 0x179   : > { %v5020_v47 = vpop.permute.xlu1 %937  ;;  %v5022_v26 = vpop.permute.xlu0 %1333 }
 0x17a   : > { %6718 = vst [vmem:[#allocation107_spill] sm:$0xff] %v5020_v47  ;;  %6719 = vst [vmem:[#allocation108_spill] sm:$0xff] %v5022_v26  ;;  %v1517_v26 = vld [vmem:[%s6596_s2 + $0x68] sm:$0xff]  ;;  %v1536_v47 = vld [vmem:[%s6596_s2 + $0x100] sm:$0xff] }
 0x17b   : > { %1321 = vperm.xlu1 %4068, %v4467_v29   ;;  %612 = vperm.xlu0 %4070, %v4804_v42   ;;  %v6729_v42 = vld [vmem:[#allocation4_spill] sm:$0xff] }
 0x17d   : > { %v5026_v37 = vpop.permute.xlu1 %945  ;;  %v5028_v27 = vpop.permute.xlu0 %1341 }
 0x17e   : > { %6720 = vst [vmem:[#allocation109_spill] sm:$0xff] %v5026_v37  ;;  %6721 = vst [vmem:[#allocation110_spill] sm:$0xff] %v5028_v27  ;;  %v1513_v27 = vld [vmem:[%s6596_s2 + $0x48] sm:$0xff]  ;;  %v1519_v37 = vld [vmem:[%s6596_s2 + $0x78] sm:$0xff] }
 0x17f   : > { %1329 = vperm.xlu1 %4068, %v4474_v30   ;;  %622 = vperm.xlu0 %4070, %v6722_v45   ;;  %v6732_v45 = vld [vmem:[#allocation5_spill] sm:$0xff] }
 0x181   : > { %v5032_v14 = vpop.permute.xlu1 %953  ;;  %v5034_v28 = vpop.permute.xlu0 %1349 }
 0x182   : > { %6723 = vst [vmem:[#allocation62_spill] sm:$0xff] %v5032_v14  ;;  %6724 = vst [vmem:[#allocation111_spill] sm:$0xff] %v5034_v28  ;;  %v1515_v14 = vld [vmem:[%s6596_s2 + $0x58] sm:$0xff] }
 0x183   : > { %1337 = vperm.xlu1 %4068, %v6725_v44   ;;  %632 = vperm.xlu0 %4070, %v6726_v39   ;;  %v1504_v39 = vld [vmem:[%s6596_s2] sm:$0xff] }
 0x185   : > { %v5038_v13 = vpop.permute.xlu1 %961  ;;  %v5040_v29 = vpop.permute.xlu0 %1357 }
 0x186   : > { %6727 = vst [vmem:[#allocation3_spill] sm:$0xff] %v5038_v13  ;;  %6728 = vst [vmem:[#allocation65_spill] sm:$0xff] %v5040_v29  ;;  %v6734_v29 = vld [vmem:[#allocation6_spill] sm:$0xff] }
 0x187   : > { %1345 = vperm.xlu1 %4068, %v6729_v42   ;;  %642 = vperm.xlu0 %4070, %v4837_v35   ;;  %v1507_v35 = vld [vmem:[%s6596_s2 + $0x18] sm:$0xff] }
 0x189   : > { %v5044_v4 = vpop.permute.xlu1 %969  ;;  %v5046_v30 = vpop.permute.xlu0 %1365 }
 0x18a   : > { %6730 = vst [vmem:[#allocation4_spill] sm:$0xff] %v5044_v4  ;;  %6731 = vst [vmem:[#allocation112_spill] sm:$0xff] %v5046_v30  ;;  %v1509_v30 = vld [vmem:[%s6596_s2 + $0x28] sm:$0xff]  ;;  %v6736_v4 = vmov 0  }
 0x18b   : > { %1353 = vperm.xlu1 %4068, %v6732_v45   ;;  %652 = vperm.xlu0 %4070, %v4848_v34   ;;  %v6735_v34 = vld [vmem:[#allocation7_spill] sm:$0xff] }
 0x18d   : > { %v5053_v44 = vpop.permute.xlu1 %977 }
 0x18e   : > { %6733 = vst [vmem:[#allocation5_spill] sm:$0xff] %v5053_v44  ;;  %v5055_v28 = vpop.permute.xlu0 %342 }
 0x18f   : > { %1361 = vperm.xlu1 %4068, %v6734_v29   ;;  %1570 = vperm.xlu0 %4070, %v1504_v39   ;;  %v1505_v29 = vld [vmem:[%s6596_s2 + $0x8] sm:$0xff] }
 0x192   : > { %v5061_v42 = vpop.permute.xlu1 %1117  ;;  %v5063_v45 = vpop.permute.xlu0 %347 }
 0x193   : > { %1369 = vperm.xlu1 %4068, %v6735_v34   ;;  %1585 = vperm.xlu0 %4070, %v1507_v35   ;;  %v1511_v35 = vld [vmem:[%s6596_s2 + $0x38] sm:$0xff]  ;;  %v1506_v34 = vld [vmem:[%s6596_s2 + $0x10] sm:$0xff] }
 0x196   : > { %v5072_v39 = vpop.permute.xlu1 %1125  ;;  %v5074_v44 = vpop.permute.xlu0 %362 }
 0x197   : > { %4071 = vset.pattern.permute.xlu1 %v6736_v4  ;;  %1595 = vperm.xlu0 %4070, %v1509_v30   ;;  %v1508_v30 = vld [vmem:[%s6596_s2 + $0x20] sm:$0xff] }
 0x198   : > { %1575 = vperm.xlu1 %4071, %v1505_v29  }
 0x19a   : > { %v5083_v13 = vpop.permute.xlu1 %1129  ;;  %v5085_v12 = vpop.permute.xlu0 %372 }
 0x19b   : > { %1605 = vperm.xlu0 %4070, %v1511_v35   ;;  %v1510_v35 = vld [vmem:[%s6596_s2 + $0x30] sm:$0xff] }
 0x19c   : > { %1580 = vperm.xlu1 %4071, %v1506_v34  }
 0x19e   : > { %v5093_v29 = vpop.permute.xlu1 %1137  ;;  %v5095_v0 = vpop.permute.xlu0 %382 }
 0x19f   : > { %1615 = vperm.xlu0 %4070, %v1513_v27   ;;  %v1512_v27 = vld [vmem:[%s6596_s2 + $0x40] sm:$0xff] }
 0x1a0   : > { %1590 = vperm.xlu1 %4071, %v1508_v30  }
 0x1a2   : > { %v5103_v34 = vpop.permute.xlu1 %1145  ;;  %v5105_v11 = vpop.permute.xlu0 %392 }
 0x1a3   : > { %1625 = vperm.xlu0 %4070, %v1515_v14   ;;  %v1514_v14 = vld [vmem:[%s6596_s2 + $0x50] sm:$0xff] }
 0x1a4   : > { %1600 = vperm.xlu1 %4071, %v1510_v35  }
 0x1a6   : > { %v5113_v30 = vpop.permute.xlu1 %1153  ;;  %v5115_v61 = vpop.permute.xlu0 %402 }
 0x1a7   : > { %1635 = vperm.xlu0 %4070, %v1517_v26   ;;  %v1516_v26 = vld [vmem:[%s6596_s2 + $0x60] sm:$0xff] }
 0x1a8   : > { %1610 = vperm.xlu1 %4071, %v1512_v27  }
 0x1aa   : > { %v5123_v35 = vpop.permute.xlu1 %1161  ;;  %v5125_v10 = vpop.permute.xlu0 %412 }
 0x1ab   : > { %1645 = vperm.xlu0 %4070, %v1519_v37   ;;  %v1518_v37 = vld [vmem:[%s6596_s2 + $0x70] sm:$0xff] }
 0x1ac   : > { %1620 = vperm.xlu1 %4071, %v1514_v14  }
 0x1ae   : > { %v5133_v27 = vpop.permute.xlu1 %1169  ;;  %v5135_v58 = vpop.permute.xlu0 %422 }
 0x1af   : > { %1655 = vperm.xlu0 %4070, %v1521_v25   ;;  %v1520_v25 = vld [vmem:[%s6596_s2 + $0x80] sm:$0xff] }
 0x1b0   : > { %1630 = vperm.xlu1 %4071, %v1516_v26  }
 0x1b2   : > { %v5143_v14 = vpop.permute.xlu1 %1177  ;;  %v5145_v9 = vpop.permute.xlu0 %432 }
 0x1b3   : > { %6737 = vst [vmem:[#allocation6_spill] sm:$0xff] %v5145_v9  ;;  %1730 = vperm.xlu0 %4070, %v1536_v47   ;;  %v1522_v47 = vld [vmem:[%s6596_s2 + $0x90] sm:$0xff] }
 0x1b4   : > { %1640 = vperm.xlu1 %4071, %v1518_v37  }
 0x1b6   : > { %v5153_v26 = vpop.permute.xlu1 %1185  ;;  %v5155_v55 = vpop.permute.xlu0 %442 }
 0x1b7   : > { %6738 = vst [vmem:[#allocation7_spill] sm:$0xff] %v5155_v55  ;;  %1740 = vperm.xlu0 %4070, %v1538_v24   ;;  %v1542_v55 = vld [vmem:[%s6596_s2 + $0x130] sm:$0xff]  ;;  %v1537_v24 = vld [vmem:[%s6596_s2 + $0x108] sm:$0xff] }
 0x1b8   : > { %1650 = vperm.xlu1 %4071, %v1520_v25  }
 0x1ba   : > { %v5163_v37 = vpop.permute.xlu1 %1193  ;;  %v5165_v23 = vpop.permute.xlu0 %452 }
 0x1bb   : > { %6739 = vst [vmem:[#allocation113_spill] sm:$0xff] %v5163_v37  ;;  %6740 = vst [vmem:[#allocation114_spill] sm:$0xff] %v5165_v23  ;;  %1750 = vperm.xlu0 %4070, %v1540_v48   ;;  %v1544_v23 = vld [vmem:[%s6596_s2 + $0x140] sm:$0xff]  ;;  %v1539_v48 = vld [vmem:[%s6596_s2 + $0x118] sm:$0xff] }
 0x1bc   : > { %1660 = vperm.xlu1 %4071, %v1522_v47  }
 0x1be   : > { %v5173_v25 = vpop.permute.xlu1 %1201  ;;  %v5175_v50 = vpop.permute.xlu0 %462 }
 0x1bf   : > { %6741 = vst [vmem:[#allocation115_spill] sm:$0xff] %v5173_v25  ;;  %6742 = vst [vmem:[#allocation116_spill] sm:$0xff] %v5175_v50  ;;  %1760 = vperm.xlu0 %4070, %v1542_v55   ;;  %v1546_v50 = vld [vmem:[%s6596_s2 + $0x150] sm:$0xff]  ;;  %v1541_v55 = vld [vmem:[%s6596_s2 + $0x128] sm:$0xff] }
 0x1c0   : > { %1735 = vperm.xlu1 %4071, %v1537_v24  }
 0x1c2   : > { %v5183_v47 = vpop.permute.xlu1 %1209  ;;  %v5185_v22 = vpop.permute.xlu0 %472 }
 0x1c3   : > { %6743 = vst [vmem:[#allocation117_spill] sm:$0xff] %v5183_v47  ;;  %6744 = vst [vmem:[#allocation118_spill] sm:$0xff] %v5185_v22  ;;  %1770 = vperm.xlu0 %4070, %v1544_v23   ;;  %v1548_v22 = vld [vmem:[%s6596_s2 + $0x160] sm:$0xff]  ;;  %v1543_v23 = vld [vmem:[%s6596_s2 + $0x138] sm:$0xff] }
 0x1c4   : > { %1745 = vperm.xlu1 %4071, %v1539_v48  }
 0x1c6   : > { %v5193_v24 = vpop.permute.xlu1 %1217  ;;  %v5195_v25 = vpop.permute.xlu0 %482 }
 0x1c7   : > { %6745 = vst [vmem:[#allocation119_spill] sm:$0xff] %v5193_v24  ;;  %6746 = vst [vmem:[#allocation120_spill] sm:$0xff] %v5195_v25  ;;  %1780 = vperm.xlu0 %4070, %v1546_v50   ;;  %v1550_v25 = vld [vmem:[%s6596_s2 + $0x170] sm:$0xff]  ;;  %v1545_v50 = vld [vmem:[%s6596_s2 + $0x148] sm:$0xff] }
 0x1c8   : > { %1755 = vperm.xlu1 %4071, %v1541_v55  }
 0x1ca   : > { %v5203_v48 = vpop.permute.xlu1 %1225  ;;  %v5205_v47 = vpop.permute.xlu0 %492 }
 0x1cb   : > { %6747 = vst [vmem:[#allocation121_spill] sm:$0xff] %v5203_v48  ;;  %6748 = vst [vmem:[#allocation122_spill] sm:$0xff] %v5205_v47  ;;  %1790 = vperm.xlu0 %4070, %v1548_v22   ;;  %v1552_v47 = vld [vmem:[%s6596_s2 + $0x180] sm:$0xff]  ;;  %v1547_v22 = vld [vmem:[%s6596_s2 + $0x158] sm:$0xff] }
 0x1cc   : > { %1765 = vperm.xlu1 %4071, %v1543_v23  }
 0x1ce   : > { %v5213_v55 = vpop.permute.xlu1 %1233  ;;  %v5215_v24 = vpop.permute.xlu0 %502 }
 0x1cf   : > { %6749 = vst [vmem:[#allocation123_spill] sm:$0xff] %v5213_v55  ;;  %1800 = vperm.xlu0 %4070, %v1550_v25   ;;  %v1523_v55 = vld [vmem:[%s6596_s2 + $0x98] sm:$0xff]  ;;  %v1549_v25 = vld [vmem:[%s6596_s2 + $0x168] sm:$0xff] }
 0x1d0   : > { %1775 = vperm.xlu1 %4071, %v1545_v50  }
 0x1d2   : > { %v5223_v23 = vpop.permute.xlu1 %1241  ;;  %v5225_v48 = vpop.permute.xlu0 %512 }
 0x1d3   : > { %6750 = vst [vmem:[#allocation124_spill] sm:$0xff] %v5223_v23  ;;  %1810 = vperm.xlu0 %4070, %v1552_v47   ;;  %v1555_v23 = vld [vmem:[%s6596_s2 + $0x198] sm:$0xff] }
 0x1d4   : > { %1785 = vperm.xlu1 %4071, %v1547_v22   ;;  %v1551_v47 = vld [vmem:[%s6596_s2 + $0x178] sm:$0xff] }
 0x1d6   : > { %v5233_v50 = vpop.permute.xlu1 %1249  ;;  %v5235_v37 = vpop.permute.xlu0 %522 }
 0x1d7   : > { %6751 = vst [vmem:[#allocation125_spill] sm:$0xff] %v5233_v50  ;;  %6752 = vst [vmem:[#allocation126_spill] sm:$0xff] %v5235_v37  ;;  %1665 = vperm.xlu0 %4070, %v1523_v55   ;;  %v1553_v55 = vld [vmem:[%s6596_s2 + $0x188] sm:$0xff] }
 0x1d8   : > { %1795 = vperm.xlu1 %4071, %v1549_v25  }
 0x1da   : > { %v5243_v22 = vpop.permute.xlu1 %1257  ;;  %v5245_v51 = vpop.permute.xlu0 %532 }
 0x1db   : > { %6753 = vst [vmem:[#allocation127_spill] sm:$0xff] %v5243_v22  ;;  %6754 = vst [vmem:[#allocation128_spill] sm:$0xff] %v5245_v51  ;;  %1825 = vperm.xlu0 %4070, %v1555_v23   ;;  %v1554_v23 = vld [vmem:[%s6596_s2 + $0x190] sm:$0xff] }
 0x1dc   : > { %1805 = vperm.xlu1 %4071, %v1551_v47  }
 0x1de   : > { %v5253_v25 = vpop.permute.xlu1 %1265  ;;  %v5255_v8 = vpop.permute.xlu0 %542 }
 0x1df   : > { %6755 = vst [vmem:[#allocation129_spill] sm:$0xff] %v5253_v25  ;;  %6756 = vst [vmem:[#allocation130_spill] sm:$0xff] %v5255_v8  ;;  %1675 = vperm.xlu0 %4070, %v1525_v21   ;;  %v1524_v21 = vld [vmem:[%s6596_s2 + $0xa0] sm:$0xff] }
 0x1e0   : > { %1815 = vperm.xlu1 %4071, %v1553_v55  }
 0x1e2   : > { %v5263_v47 = vpop.permute.xlu1 %1273  ;;  %v5265_v20 = vpop.permute.xlu0 %552 }
 0x1e3   : > { %6757 = vst [vmem:[#allocation131_spill] sm:$0xff] %v5263_v47  ;;  %6758 = vst [vmem:[#allocation132_spill] sm:$0xff] %v5265_v20  ;;  %1835 = vperm.xlu0 %4070, %v1557_v53   ;;  %v1556_v53 = vld [vmem:[%s6596_s2 + $0x1a0] sm:$0xff] }
 0x1e4   : > { %1820 = vperm.xlu1 %4071, %v1554_v23  }
 0x1e6   : > { %v5273_v55 = vpop.permute.xlu1 %1281  ;;  %v5275_v9 = vpop.permute.xlu0 %562 }
 0x1e7   : > { %6759 = vst [vmem:[#allocation133_spill] sm:$0xff] %v5273_v55  ;;  %6760 = vst [vmem:[#allocation134_spill] sm:$0xff] %v5275_v9  ;;  %1685 = vperm.xlu0 %4070, %v1527_v52   ;;  %v1529_v9 = vld [vmem:[%s6596_s2 + $0xc8] sm:$0xff]  ;;  %v1526_v52 = vld [vmem:[%s6596_s2 + $0xb0] sm:$0xff] }
 0x1e8   : > { %1670 = vperm.xlu1 %4071, %v1524_v21  }
 0x1ea   : > { %v5283_v23 = vpop.permute.xlu1 %1289  ;;  %v5285_v19 = vpop.permute.xlu0 %572 }
 0x1eb   : > { %6761 = vst [vmem:[#allocation135_spill] sm:$0xff] %v5283_v23  ;;  %6762 = vst [vmem:[#allocation136_spill] sm:$0xff] %v5285_v19  ;;  %1845 = vperm.xlu0 %4070, %v1559_v54   ;;  %v1561_v19 = vld [vmem:[%s6596_s2 + $0x1c8] sm:$0xff]  ;;  %v1558_v54 = vld [vmem:[%s6596_s2 + $0x1b0] sm:$0xff] }
 0x1ec   : > { %1830 = vperm.xlu1 %4071, %v1556_v53  }
 0x1ee   : > { %v5293_v21 = vpop.permute.xlu1 %1297  ;;  %v5295_v55 = vpop.permute.xlu0 %582 }
 0x1ef   : > { %6763 = vst [vmem:[#allocation137_spill] sm:$0xff] %v5293_v21  ;;  %6764 = vst [vmem:[#allocation138_spill] sm:$0xff] %v5295_v55  ;;  %1695 = vperm.xlu0 %4070, %v1529_v9   ;;  %v1531_v9 = vld [vmem:[%s6596_s2 + $0xd8] sm:$0xff] }
 0x1f0   : > { %1680 = vperm.xlu1 %4071, %v1526_v52   ;;  %v1528_v52 = vld [vmem:[%s6596_s2 + $0xc0] sm:$0xff] }
 0x1f2   : > { %v5303_v53 = vpop.permute.xlu1 %1305  ;;  %v5305_v23 = vpop.permute.xlu0 %592 }
 0x1f3   : > { %6765 = vst [vmem:[#allocation139_spill] sm:$0xff] %v5303_v53  ;;  %6766 = vst [vmem:[#allocation140_spill] sm:$0xff] %v5305_v23  ;;  %1855 = vperm.xlu0 %4070, %v1561_v19   ;;  %v1563_v19 = vld [vmem:[%s6596_s2 + $0x1d8] sm:$0xff] }
 0x1f4   : > { %1840 = vperm.xlu1 %4071, %v1558_v54   ;;  %v1560_v54 = vld [vmem:[%s6596_s2 + $0x1c0] sm:$0xff] }
 0x1f6   : > { %v5313_v55 = vpop.permute.xlu1 %1313  ;;  %v5315_v21 = vpop.permute.xlu0 %602 }
 0x1f7   : > { %6767 = vst [vmem:[#allocation141_spill] sm:$0xff] %v5313_v55  ;;  %6768 = vst [vmem:[#allocation142_spill] sm:$0xff] %v5315_v21  ;;  %1705 = vperm.xlu0 %4070, %v1531_v9   ;;  %v1533_v9 = vld [vmem:[%s6596_s2 + $0xe8] sm:$0xff] }
 0x1f8   : > { %1690 = vperm.xlu1 %4071, %v1528_v52   ;;  %v1530_v52 = vld [vmem:[%s6596_s2 + $0xd0] sm:$0xff] }
 0x1fa   : > { %v5323_v23 = vpop.permute.xlu1 %1321  ;;  %v5325_v53 = vpop.permute.xlu0 %612 }
 0x1fb   : > { %6769 = vst [vmem:[#allocation143_spill] sm:$0xff] %v5323_v23  ;;  %6770 = vst [vmem:[#allocation144_spill] sm:$0xff] %v5325_v53  ;;  %1865 = vperm.xlu0 %4070, %v1563_v19   ;;  %v660_v53 = vlaneseq  ;;  %v1565_v19 = vld [vmem:[%s6596_s2 + $0x1e8] sm:$0xff] }
 0x1fc   : > { %1850 = vperm.xlu1 %4071, %v1560_v54   ;;  %v1562_v54 = vld [vmem:[%s6596_s2 + $0x1d0] sm:$0xff] }
 0x1fe   : > { %v5335_v21 = vpop.permute.xlu1 %1329  ;;  %v5337_v55 = vpop.permute.xlu0 %622 }
 0x1ff   : > { %6771 = vst [vmem:[#allocation145_spill] sm:$0xff] %v5335_v21  ;;  %6772 = vst [vmem:[#allocation146_spill] sm:$0xff] %v5337_v55  ;;  %1715 = vperm.xlu0 %4070, %v1533_v9   ;;  %v661_v55 = vshrl.u32 %v660_v53, 7  ;;  %v1535_v9 = vld [vmem:[%s6596_s2 + $0xf8] sm:$0xff] }
 0x200   : > { %1700 = vperm.xlu1 %4071, %v1530_v52   ;;  %v1532_v52 = vld [vmem:[%s6596_s2 + $0xe0] sm:$0xff]  ;;  %v1567_v53 = vld [vmem:[%s6596_s2 + $0x1f8] sm:$0xff] }
 0x201   : > { %v986_v47 = vsub.s32 1, %v661_v55  ;;  %v1374_v56 = vsub.s32 2, %v661_v55 }
 0x202   : > { %v5349_v23 = vpop.permute.xlu1 %1337  ;;  %v5351_v21 = vpop.permute.xlu0 %632 }
 0x203   : > { %6773 = vst [vmem:[#allocation147_spill] sm:$0xff] %v5349_v23  ;;  %6774 = vst [vmem:[#allocation148_spill] sm:$0xff] %v5351_v21  ;;  %1875 = vperm.xlu0 %4070, %v1565_v19   ;;  %v662_v19 = vsub.s32 0, %v661_v55  ;;  %v1564_v21 = vld [vmem:[%s6596_s2 + $0x1e0] sm:$0xff] }
 0x204   : > { %1860 = vperm.xlu1 %4071, %v1562_v54   ;;  %v275_v54 = vld [vmem:[%s270_s13] sm:$0x7]  ;;  %s273_s13 = scalar_lea.vmem %s6601_s7, %s6946_s27 }
 0x205   : > { %v5387_v25 = vrot.slane %v275_v54, %v1374_v56 }
 0x206   : > { %v5363_v20 = vpop.permute.xlu1 %1345  ;;  %v5365_v23 = vpop.permute.xlu0 %642 }
 0x207   : > { %6775 = vst [vmem:[#allocation149_spill] sm:$0xff] %v5363_v20  ;;  %6776 = vst [vmem:[#allocation150_spill] sm:$0xff] %v5365_v23  ;;  %1725 = vperm.xlu0 %4070, %v1535_v9   ;;  %v5377_v23 = vrot.slane %v275_v54, %v662_v19  ;;  %v2145_v9 = vld [vmem:[%s6598_s4 + $0x8] sm:$0xff]  ;;  %v5385_v20 = vrot.slane %v275_v54, %v986_v47  ;;  %v1376_v56 = vmul.f32 %v5387_v25, %v5061_v42  ;;  %v6781_v47 = vld [vmem:[#allocation10_spill] sm:$0xff] }
 0x208   : > { %1710 = vperm.xlu1 %4071, %v1532_v52   ;;  %v1534_v52 = vld [vmem:[%s6596_s2 + $0xf0] sm:$0xff]  ;;  %v1377_v22 = vmul.f32 %v5387_v25, %v4865_v41 }
 0x209   : > { %v664_v55 = vmul.f32 %v5377_v23, %v5055_v28  ;;  %v665_v19 = vmul.f32 %v5377_v23, %v5063_v45  ;;  %v989_v57 = vmul.f32 %v5385_v20, %v4863_v31  ;;  %v2147_v28 = vld [vmem:[%s6598_s4 + $0x18] sm:$0xff]  ;;  %v1566_v45 = vld [vmem:[%s6596_s2 + $0x1f0] sm:$0xff]  ;;  %v667_v54 = vmul.f32 %v5377_v23, %v6781_v47 }
 0x20a   : > { %v5373_v18 = vpop.permute.xlu1 %1353  ;;  %v5375_v8 = vpop.permute.xlu0 %652  ;;  %v993_v16 = vmul.f32 %v5385_v20, %v6785_v59  ;;  %v990_v47 = vmul.f32 %v5385_v20, %v4870_v32  ;;  %v6787_v59 = vld [vmem:[#allocation14_spill] sm:$0xff]  ;;  %v668_v32 = vmul.f32 %v5377_v23, %v5074_v44  ;;  %v1381_v44 = vmul.f32 %v5387_v25, %v5093_v29  ;;  %v2146_v29 = vld [vmem:[%s6598_s4 + $0x10] sm:$0xff] }
 0x20b   : > { %6777 = vst [vmem:[#allocation151_spill] sm:$0xff] %v5373_v18  ;;  %6778 = vst [vmem:[#allocation152_spill] sm:$0xff] %v5375_v8  ;;  %1885 = vperm.xlu0 %4070, %v1567_v53   ;;  %v6780_v8 = vld [vmem:[#allocation9_spill] sm:$0xff]  ;;  %v1053_v31 = vadd.f32 %v989_v57, %v665_v19  ;;  %v6786_v19 = vld [vmem:[#allocation8_spill] sm:$0xff] }
 0x20c   : > { %1870 = vperm.xlu1 %4071, %v1564_v21   ;;  %v988_v18 = vmul.f32 %v5385_v20, %v6780_v8 }
 0x20e   : > { %v5393_v53 = vpop.permute.xlu1 %1361  ;;  %v1571_v21 = vpop.permute.xlu0 %1570 }
 0x20f   : > { %6779 = vst [vmem:[#allocation153_spill] sm:$0xff] %v5393_v53  ;;  %2199 = vperm.xlu0 %4070, %v2145_v9   ;;  %v6782_v9 = vld [vmem:[#allocation11_spill] sm:$0xff]  ;;  %v1052_v53 = vadd.f32 %v988_v18, %v664_v55  ;;  %v1379_v18 = vmul.f32 %v5387_v25, %v5083_v13 }
 0x210   : > { %1720 = vperm.xlu1 %4071, %v1534_v52   ;;  %v991_v8 = vmul.f32 %v5385_v20, %v6782_v9  ;;  %v6784_v52 = vld [vmem:[#allocation12_spill] sm:$0xff]  ;;  %v666_v9 = vmul.f32 %v5377_v23, %v6786_v19  ;;  %v2144_v13 = vld [vmem:[%s6598_s4] sm:$0xff]  ;;  %v1441_v19 = vadd.f32 %v1377_v22, %v1053_v31 }
 0x211   : > { %v669_v51 = vmul.f32 %v5377_v23, %v6784_v52  ;;  %v1440_v57 = vadd.f32 %v1376_v56, %v1052_v53  ;;  %v2149_v55 = vld [vmem:[%s6598_s4 + $0x28] sm:$0xff]  ;;  %v1378_v56 = vmul.f32 %v5387_v25, %v5072_v39  ;;  %v2151_v39 = vld [vmem:[%s6598_s4 + $0x38] sm:$0xff] }
 0x212   : > { %v5411_v17 = vpop.permute.xlu1 %1369  ;;  %v1586_v42 = vpop.permute.xlu0 %1585  ;;  %v6788_v52 = vld [vmem:[#allocation15_spill] sm:$0xff]  ;;  %v1055_v53 = vadd.f32 %v991_v8, %v667_v54  ;;  %v1054_v54 = vadd.f32 %v990_v47, %v666_v9  ;;  %v6790_v9 = vld [vmem:[#allocation17_spill] sm:$0xff] }
 0x213   : > { %6783 = vst [vmem:[#allocation9_spill] sm:$0xff] %v5411_v17  ;;  %2209 = vperm.xlu0 %4070, %v2147_v28   ;;  %v671_v28 = vmul.f32 %v5377_v23, %v6787_v59  ;;  %v995_v41 = vmul.f32 %v5385_v20, %v6788_v52  ;;  %v4074_v59 = vld [vmem:[%s6597_s3 + $0x4] ss:$16 sps:$4 sm:$0xff]   ;;  %v1057_v37 = vadd.f32 %v993_v16, %v669_v51 }
 0x214   : > { %1880 = vperm.xlu1 %4071, %v1566_v45   ;;  %v1888_v45 = vadd.f32 %v1571_v21, %v1440_v57  ;;  %v992_v52 = vmul.f32 %v5385_v20, %v4876_v33  ;;  %v1443_v8 = vadd.f32 %v1379_v18, %v1055_v53  ;;  %2944 = vmatprep.mubr.bf16.mxu1 %v4074_v59  ;;  %v6789_v21 = vld [vmem:[#allocation16_spill] sm:$0xff] }
 0x215   : > { %v1059_v22 = vadd.f32 %v995_v41, %v671_v28  ;;  %v673_v16 = vmul.f32 %v5377_v23, %v6789_v21  ;;  %v670_v33 = vmul.f32 %v5377_v23, %v5085_v12  ;;  %v1442_v57 = vadd.f32 %v1378_v56, %v1054_v54  ;;  %v2153_v56 = vld [vmem:[%s6598_s4 + $0x48] sm:$0xff] }
 0x216   : > { %v1596_v17 = vpop.permute.xlu0 %1595  ;;  %v1056_v51 = vadd.f32 %v992_v52, %v668_v32  ;;  %v1952_v31 = vmax.f32 %v1888_v45, 0.0  ;;  %v997_v28 = vmul.f32 %v5385_v20, %v6790_v9  ;;  %v1380_v41 = vmul.f32 %v5387_v25, %v4872_v3  ;;  %v6791_v45 = vld [vmem:[#allocation18_spill] sm:$0xff]  ;;  %v2150_v9 = vld [vmem:[%s6598_s4 + $0x30] sm:$0xff] }
 0x217   : > { %v1576_v50 = vpop.permute.xlu1 %1575  ;;  %2219 = vperm.xlu0 %4070, %v2149_v55   ;;  %v4077_v55 = vld [vmem:[%s6597_s3 + $0xc] ss:$16 sps:$4 sm:$0xff]   ;;  %v994_v12 = vmul.f32 %v5385_v20, %v4882_v63  ;;  %v1445_v32 = vadd.f32 %v1381_v44, %v1057_v37  ;;  %v675_v3 = vmul.f32 %v5377_v23, %v6791_v45  ;;  %v672_v59 = vmul.f32 %v5377_v23, %v5095_v0 }
 0x218   : > { %v1889_v60 = vadd.f32 %v1576_v50, %v1441_v19  ;;  %2194 = vperm.xlu1 %4071, %v2144_v13   ;;  %v1891_v50 = vadd.f32 %v1586_v42, %v1443_v8  ;;  %3169 = vmatprep.mubr.bf16.mxu0 %v4077_v55  ;;  %v6792_v19 = vld [vmem:[#allocation19_spill] sm:$0xff]  ;;  %v1061_v21 = vadd.f32 %v997_v28, %v673_v16  ;;  %v2155_v16 = vld [vmem:[%s6598_s4 + $0x58] sm:$0xff] }
 0x219   : > { %v999_v63 = vmul.f32 %v5385_v20, %v6792_v19  ;;  %v1058_v37 = vadd.f32 %v994_v12, %v670_v33  ;;  %v1893_v44 = vadd.f32 %v1596_v17, %v1445_v32  ;;  %v996_v33 = vmul.f32 %v5385_v20, %v4888_v36  ;;  %v6794_v32 = vld [vmem:[#allocation21_spill] sm:$0xff]  ;;  %v6795_v19 = vld [vmem:[#allocation22_spill] sm:$0xff] }
 0x21a   : > { %v1953_v47 = vmax.f32 %v1889_v60, 0.0  ;;  %v1606_v18 = vpop.permute.xlu0 %1605  ;;  %v1383_v60 = vmul.f32 %v5387_v25, %v5103_v34  ;;  %v2148_v34 = vld [vmem:[%s6598_s4 + $0x20] sm:$0xff]  ;;  %v1955_v52 = vmax.f32 %v1891_v50, 0.0  ;;  %v1385_v0 = vmul.f32 %v5387_v25, %v5113_v30 }
 0x21b   : > { %v1581_v13 = vpop.permute.xlu1 %1580  ;;  %2229 = vperm.xlu0 %4070, %v2151_v39   ;;  %v1444_v39 = vadd.f32 %v1380_v41, %v1056_v51  ;;  %v1063_v51 = vadd.f32 %v999_v63, %v675_v3  ;;  %v1060_v36 = vadd.f32 %v996_v33, %v672_v59  ;;  %v674_v30 = vmul.f32 %v5377_v23, %v5105_v11  ;;  %v2157_v3 = vld [vmem:[%s6598_s4 + $0x68] sm:$0xff] }
 0x21c   : > { %v1890_v42 = vadd.f32 %v1581_v13, %v1442_v57  ;;  %2204 = vperm.xlu1 %4071, %v2146_v29   ;;  %v2112_v53 = vpack.c.bf16 %v1953_v47, %v1952_v31  ;;  %v1382_v29 = vmul.f32 %v5387_v25, %v4878_v38  ;;  %v1447_v50 = vadd.f32 %v1383_v60, %v1059_v22  ;;  %v6793_v38 = vld [vmem:[#allocation20_spill] sm:$0xff]  ;;  %v6796_v63 = vld [vmem:[#allocation23_spill] sm:$0xff] }
 0x21d   : > { %v677_v57 = vmul.f32 %v5377_v23, %v6793_v38  ;;  %v1957_v22 = vmax.f32 %v1893_v44, 0.0  ;;  %v1001_v13 = vmul.f32 %v5385_v20, %v6794_v32  ;;  %v1384_v60 = vmul.f32 %v5387_v25, %v4884_v2 }
 0x21e   : > { %v1954_v54 = vmax.f32 %v1890_v42, 0.0  ;;  %v1616_v8 = vpop.permute.xlu0 %1615  ;;  %2913 = vmatpush1.bf16.msra.mxu1 %v2112_v53  ;;  %v1446_v55 = vadd.f32 %v1382_v29, %v1058_v37  ;;  %v1895_v28 = vadd.f32 %v1606_v18, %v1447_v50  ;;  %v998_v42 = vmul.f32 %v5385_v20, %v4894_v40 }
 0x21f   : > { %v1591_v31 = vpop.permute.xlu1 %1590  ;;  %2239 = vperm.xlu0 %4070, %v2153_v56   ;;  %2914 = vmatprep.subr.bf16.mxu1 %v6736_v4  ;;  %v1387_v11 = vmul.f32 %v5387_v25, %v5123_v35  ;;  %v1449_v18 = vadd.f32 %v1385_v0, %v1061_v21  ;;  %v679_v2 = vmul.f32 %v5377_v23, %v6795_v19  ;;  %v2152_v35 = vld [vmem:[%s6598_s4 + $0x40] sm:$0xff] }
 0x220   : > { %v1892_v17 = vadd.f32 %v1591_v31, %v1444_v39  ;;  %2214 = vperm.xlu1 %4071, %v2148_v34   ;;  %v2113_v47 = vpack.c.bf16 %v1955_v52, %v1954_v54  ;;  %v1003_v40 = vmul.f32 %v5385_v20, %v6796_v63  ;;  %v676_v37 = vmul.f32 %v5377_v23, %v5115_v61 }
 0x221   : > { %v1448_v59 = vadd.f32 %v1384_v60, %v1060_v36  ;;  %v1062_v34 = vadd.f32 %v998_v42, %v674_v30  ;;  %v1959_v52 = vmax.f32 %v1895_v28, 0.0  ;;  %v1897_v44 = vadd.f32 %v1616_v8, %v1449_v18  ;;  %v6798_v30 = vld [vmem:[#allocation25_spill] sm:$0xff]  ;;  %v2161_v42 = vld [vmem:[%s6598_s4 + $0x88] sm:$0xff] }
 0x222   : > { %v1956_v41 = vmax.f32 %v1892_v17, 0.0  ;;  %v1626_v12 = vpop.permute.xlu0 %1625  ;;  %2915 = vmatpush1.bf16.msra.mxu1 %v2113_v47  ;;  %v1065_v21 = vadd.f32 %v1001_v13, %v677_v57  ;;  %v1386_v29 = vmul.f32 %v5387_v25, %v4890_v1  ;;  %v1000_v33 = vmul.f32 %v5385_v20, %v4900_v43  ;;  %v2159_v17 = vld [vmem:[%s6598_s4 + $0x78] sm:$0xff]  ;;  %v6797_v1 = vld [vmem:[#allocation24_spill] sm:$0xff] }
 0x223   : > { %v1601_v53 = vpop.permute.xlu1 %1600  ;;  %2249 = vperm.xlu0 %4070, %v2155_v16   ;;  %2916 = vmatprep.subr.bf16.mxu1 %v6736_v4  ;;  %v1389_v61 = vmul.f32 %v5387_v25, %v5133_v27  ;;  %v1451_v0 = vadd.f32 %v1387_v11, %v1063_v51  ;;  %v1067_v47 = vadd.f32 %v1003_v40, %v679_v2  ;;  %v2154_v27 = vld [vmem:[%s6598_s4 + $0x50] sm:$0xff]  ;;  %v1961_v51 = vmax.f32 %v1897_v44, 0.0  ;;  %v6800_v11 = vld [vmem:[#allocation27_spill] sm:$0xff]  ;;  %v2163_v44 = vld [vmem:[%s6598_s4 + $0x98] sm:$0xff] }
 0x224   : > { %v1894_v56 = vadd.f32 %v1601_v53, %v1446_v55  ;;  %2224 = vperm.xlu1 %4071, %v2150_v9   ;;  %v2114_v45 = vpack.c.bf16 %v1957_v22, %v1956_v41  ;;  %v681_v16 = vmul.f32 %v5377_v23, %v6797_v1  ;;  %v1064_v43 = vadd.f32 %v1000_v33, %v676_v37  ;;  %v6799_v53 = vld [vmem:[#allocation26_spill] sm:$0xff] }
 0x225   : > { %v678_v38 = vmul.f32 %v5377_v23, %v5125_v10  ;;  %v1899_v57 = vadd.f32 %v1626_v12, %v1451_v0  ;;  %v1450_v9 = vadd.f32 %v1386_v29, %v1062_v34  ;;  %v1005_v22 = vmul.f32 %v5385_v20, %v6798_v30  ;;  %v2158_v29 = vld [vmem:[%s6598_s4 + $0x70] sm:$0xff]  ;;  %v6806_v30 = vld [vmem:[#allocation43_spill] sm:$0xff] }
 0x226   : > { %v1958_v54 = vmax.f32 %v1894_v56, 0.0  ;;  %v1636_v39 = vpop.permute.xlu0 %1635  ;;  %2917 = vmatpush1.bf16.msra.mxu1 %v2114_v45  ;;  %v1388_v28 = vmul.f32 %v5387_v25, %v4896_v5  ;;  %v1002_v41 = vmul.f32 %v5385_v20, %v4906_v46  ;;  %v1391_v12 = vmul.f32 %v5387_v25, %v5143_v14  ;;  %v2156_v14 = vld [vmem:[%s6598_s4 + $0x60] sm:$0xff] }
 0x227   : > { %v1611_v31 = vpop.permute.xlu1 %1610  ;;  %2259 = vperm.xlu0 %4070, %v2157_v3   ;;  %2918 = vmatprep.subr.bf16.mxu1 %v6736_v4  ;;  %v1453_v32 = vadd.f32 %v1389_v61, %v1065_v21  ;;  %v683_v5 = vmul.f32 %v5377_v23, %v6799_v53  ;;  %v1007_v46 = vmul.f32 %v5385_v20, %v6800_v11  ;;  %v1963_v3 = vmax.f32 %v1899_v57, 0.0  ;;  %v2165_v57 = vld [vmem:[%s6598_s4 + $0xa8] sm:$0xff]  ;;  %v6808_v53 = vld [vmem:[#allocation45_spill] sm:$0xff]  ;;  %v6809_v11 = vld [vmem:[#allocation46_spill] sm:$0xff] }
 0x228   : > { %v1896_v50 = vadd.f32 %v1611_v31, %v1448_v59  ;;  %2234 = vperm.xlu1 %4071, %v2152_v35   ;;  %v2115_v8 = vpack.c.bf16 %v1959_v52, %v1958_v54  ;;  %v1066_v18 = vadd.f32 %v1002_v41, %v678_v38  ;;  %v1452_v56 = vadd.f32 %v1388_v28, %v1064_v43  ;;  %v2160_v28 = vld [vmem:[%s6598_s4 + $0x80] sm:$0xff] }
 0x229   : > { %v680_v45 = vmul.f32 %v5377_v23, %v5135_v58  ;;  %v1901_v19 = vadd.f32 %v1636_v39, %v1453_v32  ;;  %v1390_v40 = vmul.f32 %v5387_v25, %v4902_v6  ;;  %v1004_v37 = vmul.f32 %v5385_v20, %v4912_v49  ;;  %v6801_v39 = vld [vmem:[#allocation28_spill] sm:$0xff] }
 0x22a   : > { %v1960_v36 = vmax.f32 %v1896_v50, 0.0  ;;  %v1646_v55 = vpop.permute.xlu0 %1645  ;;  %2919 = vmatpush1.bf16.msra.mxu1 %v2115_v8  ;;  %v1393_v35 = vmul.f32 %v5387_v25, %v5153_v26  ;;  %v1455_v34 = vadd.f32 %v1391_v12, %v1067_v47  ;;  %v1069_v54 = vadd.f32 %v1005_v22, %v681_v16  ;;  %v6802_v50 = vld [vmem:[#allocation29_spill] sm:$0xff] }
 0x22b   : > { %v1621_v10 = vpop.permute.xlu1 %1620  ;;  %2269 = vperm.xlu0 %4070, %v2159_v17   ;;  %2920 = vmatprep.subr.bf16.mxu1 %v6736_v4  ;;  %v5565_v6 = vadd.f32 %v1007_v46, %v683_v5  ;;  %v685_v49 = vmul.f32 %v5377_v23, %v6801_v39  ;;  %v1454_v21 = vadd.f32 %v1390_v40, %v1066_v18  ;;  %v1965_v33 = vmax.f32 %v1901_v19, 0.0  ;;  %v6803_v17 = vld [vmem:[#allocation40_spill] sm:$0xff]  ;;  %v6810_v19 = vld [vmem:[#allocation47_spill] sm:$0xff] }
 0x22c   : > { %v1898_v13 = vadd.f32 %v1621_v10, %v1450_v9  ;;  %2244 = vperm.xlu1 %4071, %v2154_v27   ;;  %v2116_v60 = vpack.c.bf16 %v1961_v51, %v1960_v36  ;;  %v1068_v26 = vadd.f32 %v1004_v37, %v680_v45  ;;  %v1903_v31 = vadd.f32 %v1646_v55, %v1455_v34  ;;  %v6804_v36 = vld [vmem:[#allocation41_spill] sm:$0xff]  ;;  %v6805_v9 = vld [vmem:[#allocation42_spill] sm:$0xff] }
 0x22d   : > { %v1009_v8 = vmul.f32 %v5385_v20, %v6802_v50  ;;  %v697_v47 = vmul.f32 %v5377_v23, %v6803_v17  ;;  %v1392_v1 = vmul.f32 %v5387_v25, %v4908_v7  ;;  %v696_v43 = vmul.f32 %v5377_v23, %v5215_v24  ;;  %v6812_v37 = vld [vmem:[#allocation49_spill] sm:$0xff] }
 0x22e   : > { %v1962_v2 = vmax.f32 %v1898_v13, 0.0  ;;  %v1656_v63 = vpop.permute.xlu0 %1655  ;;  %2921 = vmatpush1.bf16.msra.mxu1 %v2116_v60  ;;  %v1457_v38 = vadd.f32 %v1393_v35, %v1069_v54  ;;  %v1021_v55 = vmul.f32 %v5385_v20, %v6804_v36  ;;  %v699_v7 = vmul.f32 %v5377_v23, %v6805_v9  ;;  %v6807_v60 = vld [vmem:[#allocation44_spill] sm:$0xff]  ;;  %v6813_v34 = vld [vmem:[#allocation89_spill] sm:$0xff]  ;;  %v6818_v36 = vld [vmem:[#allocation91_spill] sm:$0xff] }
 0x22f   : > { %v1631_v59 = vpop.permute.xlu1 %1630  ;;  %2279 = vperm.xlu0 %4070, %v2161_v42   ;;  %2922 = vmatprep.subr.bf16.mxu1 %v6736_v4  ;;  %v1023_v22 = vmul.f32 %v5385_v20, %v6806_v30  ;;  %v1020_v24 = vmul.f32 %v5385_v20, %v4960_v62  ;;  %v1967_v41 = vmax.f32 %v1903_v31, 0.0  ;;  %v1456_v13 = vadd.f32 %v1392_v1, %v1068_v26 }
 0x230   : > { %v1900_v58 = vadd.f32 %v1631_v59, %v1452_v56  ;;  %2254 = vperm.xlu1 %4071, %v2156_v14   ;;  %v2117_v52 = vpack.c.bf16 %v1963_v3, %v1962_v2  ;;  %v1905_v10 = vadd.f32 %v1656_v63, %v1457_v38  ;;  %v701_v42 = vmul.f32 %v5377_v23, %v6807_v60  ;;  %v2167_v3 = vld [vmem:[%s6598_s4 + $0xb8] sm:$0xff]  ;;  %v6811_v63 = vld [vmem:[#allocation48_spill] sm:$0xff] }
 0x231   : > { %v1025_v5 = vmul.f32 %v5385_v20, %v6808_v53  ;;  %v703_v62 = vmul.f32 %v5377_v23, %v6809_v11  ;;  %v1084_v18 = vadd.f32 %v1020_v24, %v696_v43  ;;  %v698_v56 = vmul.f32 %v5377_v23, %v5225_v48  ;;  %v2162_v48 = vld [vmem:[%s6598_s4 + $0x90] sm:$0xff]  ;;  %v6816_v43 = vld [vmem:[#allocation127_spill] sm:$0xff]  ;;  %v2171_v11 = vld [vmem:[%s6598_s4 + $0xd8] sm:$0xff] }
 0x232   : > { %v1964_v61 = vmax.f32 %v1900_v58, 0.0  ;;  %v5572_v0 = vpop.permute.xlu0 %1730  ;;  %2923 = vmatpush1.bf16.msra.mxu1 %v2117_v52  ;;  %v1027_v2 = vmul.f32 %v5385_v20, %v6810_v19  ;;  %v705_v40 = vmul.f32 %v5377_v23, %v6811_v63  ;;  %v1029_v59 = vmul.f32 %v5385_v20, %v6812_v37  ;;  %v6814_v52 = vld [vmem:[#allocation125_spill] sm:$0xff]  ;;  %v6822_v60 = vld [vmem:[#allocation52_spill] sm:$0xff] }
 0x233   : > { %v1641_v16 = vpop.permute.xlu1 %1640  ;;  %2289 = vperm.xlu0 %4070, %v2163_v44   ;;  %2924 = vmatprep.subr.bf16.mxu1 %v6736_v4  ;;  %v1408_v35 = vmul.f32 %v5387_v25, %v4956_v15  ;;  %v1022_v58 = vmul.f32 %v5385_v20, %v6813_v34  ;;  %v1409_v44 = vmul.f32 %v5387_v25, %v6814_v52  ;;  %v1969_v54 = vmax.f32 %v1905_v10, 0.0  ;;  %v6821_v10 = vld [vmem:[#allocation128_spill] sm:$0xff]  ;;  %v6827_v34 = vld [vmem:[#allocation54_spill] sm:$0xff]  ;;  %v6828_v52 = vld [vmem:[#allocation55_spill] sm:$0xff] }
 0x234   : > { %v1902_v27 = vadd.f32 %v1641_v16, %v1454_v21  ;;  %2264 = vperm.xlu1 %4071, %v2158_v29   ;;  %v2118_v51 = vpack.c.bf16 %v1965_v33, %v1964_v61  ;;  %v5628_v29 = vadd.f32 %v1009_v8, %v685_v49  ;;  %v1085_v26 = vadd.f32 %v1021_v55, %v697_v47  ;;  %v6815_v61 = vld [vmem:[#allocation126_spill] sm:$0xff]  ;;  %v2169_v16 = vld [vmem:[%s6598_s4 + $0xc8] sm:$0xff]  ;;  %v2166_v19 = vld [vmem:[%s6598_s4 + $0xb0] sm:$0xff] }
 0x235   : > { %v1087_v33 = vadd.f32 %v1023_v22, %v699_v7  ;;  %v1086_v31 = vadd.f32 %v1022_v58, %v698_v56  ;;  %v700_v50 = vmul.f32 %v5377_v23, %v6815_v61  ;;  %v1472_v17 = vadd.f32 %v1408_v35, %v1084_v18  ;;  %v6819_v22 = vld [vmem:[#allocation50_spill] sm:$0xff] }
 0x236   : > { %v1966_v12 = vmax.f32 %v1902_v27, 0.0  ;;  %v5597_v32 = vpop.permute.xlu0 %1740  ;;  %2925 = vmatpush1.bf16.msra.mxu1 %v2118_v51  ;;  %v1089_v49 = vadd.f32 %v1025_v5, %v701_v42  ;;  %v5638_v8 = vadd.f32 %v1027_v2, %v703_v62  ;;  %v5640_v47 = vadd.f32 %v1029_v59, %v705_v40  ;;  %v2164_v27 = vld [vmem:[%s6598_s4 + $0xa0] sm:$0xff]  ;;  %v6817_v51 = vld [vmem:[#allocation88_spill] sm:$0xff]  ;;  %v6823_v62 = vld [vmem:[#allocation53_spill] sm:$0xff] }
 0x237   : > { %v1651_v46 = vpop.permute.xlu1 %1650  ;;  %2299 = vperm.xlu0 %4070, %v2165_v57   ;;  %2926 = vmatprep.subr.bf16.mxu1 %v6736_v4  ;;  %v1411_v38 = vmul.f32 %v5387_v25, %v6816_v43  ;;  %v1410_v57 = vmul.f32 %v5387_v25, %v6817_v51  ;;  %v1024_v55 = vmul.f32 %v5385_v20, %v6818_v36  ;;  %v6824_v18 = vld [vmem:[#allocation90_spill] sm:$0xff]  ;;  %v6826_v2 = vld [vmem:[#allocation129_spill] sm:$0xff]  ;;  %v6831_v43 = vld [vmem:[#allocation95_spill] sm:$0xff] }
 0x238   : > { %v1904_v14 = vadd.f32 %v1651_v46, %v1456_v13  ;;  %2274 = vperm.xlu1 %4071, %v2160_v28   ;;  %v2119_v45 = vpack.c.bf16 %v1967_v41, %v1966_v12  ;;  %v1920_v9 = vadd.f32 %v5572_v0, %v1472_v17  ;;  %v1473_v30 = vadd.f32 %v1409_v44, %v1085_v26  ;;  %v6820_v28 = vld [vmem:[#allocation51_spill] sm:$0xff]  ;;  %v6829_v26 = vld [vmem:[#allocation130_spill] sm:$0xff] }
 0x239   : > { %v707_v24 = vmul.f32 %v5377_v23, %v6819_v22  ;;  %v1031_v41 = vmul.f32 %v5385_v20, %v6820_v28  ;;  %v702_v12 = vmul.f32 %v5377_v23, %v6821_v10  ;;  %v709_v0 = vmul.f32 %v5377_v23, %v6822_v60  ;;  %v6833_v28 = vld [vmem:[#allocation56_spill] sm:$0xff] }
 0x23a   : > { %v1968_v39 = vmax.f32 %v1904_v14, 0.0  ;;  %v5626_v21 = vpop.permute.xlu0 %1750  ;;  %2927 = vmatpush1.bf16.msra.mxu1 %v2119_v45  ;;  %v1088_v42 = vadd.f32 %v1024_v55, %v700_v50  ;;  %v1474_v53 = vadd.f32 %v1410_v57, %v1086_v31  ;;  %v1033_v46 = vmul.f32 %v5385_v20, %v6823_v62  ;;  %v6825_v14 = vld [vmem:[#allocation93_spill] sm:$0xff]  ;;  %v2173_v50 = vld [vmem:[%s6598_s4 + $0xe8] sm:$0xff]  ;;  %v2168_v57 = vld [vmem:[%s6598_s4 + $0xc0] sm:$0xff] }
 0x23b   : > { %v5630_v15 = vpop.permute.xlu1 %1660  ;;  %2309 = vperm.xlu0 %4070, %v2167_v3   ;;  %2928 = vmatprep.subr.bf16.mxu1 %v6736_v4  ;;  %v1412_v56 = vmul.f32 %v5387_v25, %v6824_v18  ;;  %v1026_v45 = vmul.f32 %v5385_v20, %v6825_v14  ;;  %v1475_v3 = vadd.f32 %v1411_v38, %v1087_v33  ;;  %v1984_v40 = vmax.f32 %v1920_v9, 0.0  ;;  %v6834_v60 = vld [vmem:[#allocation132_spill] sm:$0xff] }
 0x23c   : > { %2284 = vperm.xlu1 %4071, %v2162_v48   ;;  %v2120_v1 = vpack.c.bf16 %v1969_v54, %v1968_v39  ;;  %v1413_v63 = vmul.f32 %v5387_v25, %v6826_v2  ;;  %v1922_v37 = vadd.f32 %v5597_v32, %v1474_v53  ;;  %v5680_v48 = vadd.f32 %v1031_v41, %v707_v24  ;;  %v6835_v53 = vld [vmem:[#allocation57_spill] sm:$0xff] }
 0x23d   : > { %v711_v58 = vmul.f32 %v5377_v23, %v6827_v34  ;;  %v1035_v44 = vmul.f32 %v5385_v20, %v6828_v52  ;;  %v1090_v54 = vadd.f32 %v1026_v45, %v702_v12  ;;  %v704_v33 = vmul.f32 %v5377_v23, %v6829_v26  ;;  %v2170_v14 = vld [vmem:[%s6598_s4 + $0xd0] sm:$0xff]  ;;  %v6840_v34 = vld [vmem:[#allocation6_spill] sm:$0xff] }
 0x23e   : > { %v5652_v7 = vpop.permute.xlu0 %1760  ;;  %2929 = vmatpush1.bf16.msra.mxu1 %v2120_v1  ;;  %v1476_v31 = vadd.f32 %v1412_v56, %v1088_v42  ;;  %v5691_v17 = vadd.f32 %v1033_v46, %v709_v0  ;;  %v6830_v1 = vld [vmem:[#allocation92_spill] sm:$0xff]  ;;  %v1028_v38 = vmul.f32 %v5385_v20, %v6831_v43  ;;  %v1986_v36 = vmax.f32 %v1922_v37, 0.0  ;;  %v6837_v46 = vld [vmem:[#allocation97_spill] sm:$0xff]  ;;  %v6839_v37 = vld [vmem:[#allocation58_spill] sm:$0xff] }
 0x23f   : > { %v1736_v13 = vpop.permute.xlu1 %1735  ;;  %2319 = vperm.xlu0 %4070, %v2169_v16   ;;  %2930 = vmatprep.subr.bf16.mxu1 %v6736_v4  ;;  %v1414_v16 = vmul.f32 %v5387_v25, %v6830_v1  ;;  %v1477_v22 = vadd.f32 %v1413_v63, %v1089_v49  ;;  %v5705_v24 = vadd.f32 %v1035_v44, %v711_v58  ;;  %v2175_v49 = vld [vmem:[%s6598_s4 + $0xf8] sm:$0xff]  ;;  %v6844_v1 = vld [vmem:[#allocation99_spill] sm:$0xff] }
 0x240   : > { %v1921_v5 = vadd.f32 %v1736_v13, %v1473_v30  ;;  %2294 = vperm.xlu1 %4071, %v2164_v27   ;;  %v6832_v27 = vld [vmem:[#allocation131_spill] sm:$0xff]  ;;  %v1924_v55 = vadd.f32 %v5626_v21, %v1476_v31  ;;  %v5709_v41 = vmul.f32 %v5377_v23, %v6833_v28  ;;  %v1092_v13 = vadd.f32 %v1028_v38, %v704_v33  ;;  %v6838_v45 = vld [vmem:[#allocation133_spill] sm:$0xff]  ;;  %v6841_v58 = vld [vmem:[#allocation134_spill] sm:$0xff] }
 0x241   : > { %v1415_v51 = vmul.f32 %v5387_v25, %v6832_v27  ;;  %v1478_v10 = vadd.f32 %v1414_v16, %v1090_v54  ;;  %v706_v21 = vmul.f32 %v5377_v23, %v6834_v60  ;;  %v1030_v18 = vmul.f32 %v5385_v20, %v6837_v46  ;;  %v2177_v33 = vld [vmem:[%s6598_s4 + $0x108] sm:$0xff]  ;;  %v2172_v27 = vld [vmem:[%s6598_s4 + $0xe0] sm:$0xff]  ;;  %v6850_v46 = vld [vmem:[#allocation113_spill] sm:$0xff] }
 0x242   : > { %v1985_v59 = vmax.f32 %v1921_v5, 0.0  ;;  %v5678_v35 = vpop.permute.xlu0 %1770  ;;  %v5719_v5 = vmul.f32 %v5385_v20, %v6835_v53  ;;  %v708_v52 = vmul.f32 %v5377_v23, %v6841_v58  ;;  %v6842_v31 = vld [vmem:[#allocation75_spill] sm:$0xff]  ;;  %v1032_v16 = vmul.f32 %v5385_v20, %v6844_v1  ;;  %v6847_v60 = vld [vmem:[#allocation136_spill] sm:$0xff] }
 0x243   : > { %v1746_v39 = vpop.permute.xlu1 %1745  ;;  %2329 = vperm.xlu0 %4070, %v2171_v11   ;;  %v6836_v11 = vld [vmem:[#allocation94_spill] sm:$0xff]  ;;  %v1479_v56 = vadd.f32 %v1415_v51, %v5638_v8  ;;  %v1926_v2 = vadd.f32 %v5652_v7, %v1478_v10  ;;  %v682_v8 = vmul.f32 %v5377_v23, %v6840_v34  ;;  %v1094_v54 = vadd.f32 %v1030_v18, %v706_v21  ;;  %v6845_v43 = vld [vmem:[#allocation135_spill] sm:$0xff]  ;;  %v6852_v34 = vld [vmem:[#allocation100_spill] sm:$0xff] }
 0x244   : > { %v1923_v61 = vadd.f32 %v1746_v39, %v1475_v3  ;;  %2304 = vperm.xlu1 %4071, %v2166_v19   ;;  %v2128_v32 = vpack.c.bf16 %v1985_v59, %v1984_v40  ;;  %v1416_v62 = vmul.f32 %v5387_v25, %v6836_v11  ;;  %v1417_v3 = vmul.f32 %v5387_v25, %v6838_v45  ;;  %v6849_v11 = vld [vmem:[#allocation101_spill] sm:$0xff] }
 0x245   : > { %v1988_v19 = vmax.f32 %v1924_v55, 0.0  ;;  %v5736_v59 = vmul.f32 %v5377_v23, %v6839_v37  ;;  %v1419_v38 = vmul.f32 %v5387_v25, %v6845_v43  ;;  %v1990_v51 = vmax.f32 %v1926_v2, 0.0  ;;  %v6851_v45 = vld [vmem:[#allocation137_spill] sm:$0xff] }
 0x246   : > { %v1987_v9 = vmax.f32 %v1923_v61, 0.0  ;;  %v5703_v30 = vpop.permute.xlu0 %1780  ;;  %3138 = vmatpush1.bf16.msra.mxu0 %v2128_v32  ;;  %v1480_v7 = vadd.f32 %v1416_v62, %v1092_v13  ;;  %v1006_v61 = vmul.f32 %v5385_v20, %v6842_v31  ;;  %v6843_v32 = vld [vmem:[#allocation96_spill] sm:$0xff]  ;;  %v710_v21 = vmul.f32 %v5377_v23, %v6847_v60 }
 0x247   : > { %v1756_v12 = vpop.permute.xlu1 %1755  ;;  %2339 = vperm.xlu0 %4070, %v2173_v50   ;;  %3139 = vmatprep.subr.bf16.mxu0 %v6736_v4  ;;  %v1418_v50 = vmul.f32 %v5387_v25, %v6843_v32  ;;  %v1034_v62 = vmul.f32 %v5385_v20, %v6849_v11  ;;  %v1395_v18 = vmul.f32 %v5387_v25, %v6850_v46  ;;  %v6858_v60 = vld [vmem:[#allocation140_spill] sm:$0xff] }
 0x248   : > { %v1925_v0 = vadd.f32 %v1756_v12, %v1477_v22  ;;  %2314 = vperm.xlu1 %4071, %v2168_v57   ;;  %v2129_v42 = vpack.c.bf16 %v1987_v9, %v1986_v36  ;;  %v1928_v57 = vadd.f32 %v5678_v35, %v1480_v7  ;;  %v1481_v9 = vadd.f32 %v1417_v3, %v5640_v47  ;;  %v6846_v22 = vld [vmem:[#allocation74_spill] sm:$0xff] }
 0x249   : > { %v1394_v28 = vmul.f32 %v5387_v25, %v6846_v22  ;;  %v1070_v10 = vadd.f32 %v1006_v61, %v682_v8  ;;  %v1096_v12 = vadd.f32 %v1032_v16, %v708_v52  ;;  %v2179_v47 = vld [vmem:[%s6598_s4 + $0x118] sm:$0xff]  ;;  %v1421_v3 = vmul.f32 %v5387_v25, %v6851_v45  ;;  %v6855_v61 = vld [vmem:[#allocation139_spill] sm:$0xff] }
 0x24a   : > { %v1989_v63 = vmax.f32 %v1925_v0, 0.0  ;;  %v5732_v40 = vpop.permute.xlu0 %1790  ;;  %3140 = vmatpush1.bf16.msra.mxu0 %v2129_v42  ;;  %v1482_v0 = vadd.f32 %v1418_v50, %v1094_v54  ;;  %v1422_v8 = vmul.f32 %v5387_v25, %v6852_v34  ;;  %v6853_v54 = vld [vmem:[#allocation138_spill] sm:$0xff]  ;;  %v1423_v32 = vmul.f32 %v5387_v25, %v6855_v61  ;;  %v6865_v61 = vld [vmem:[#allocation77_spill] sm:$0xff] }
 0x24b   : > { %v1766_v44 = vpop.permute.xlu1 %1765  ;;  %2349 = vperm.xlu0 %4070, %v2175_v49   ;;  %3141 = vmatprep.subr.bf16.mxu0 %v6736_v4  ;;  %v6848_v49 = vld [vmem:[#allocation98_spill] sm:$0xff]  ;;  %v1458_v58 = vadd.f32 %v1394_v28, %v1070_v10  ;;  %v712_v7 = vmul.f32 %v5377_v23, %v6853_v54  ;;  %v1459_v1 = vadd.f32 %v1395_v18, %v5565_v6 }
 0x24c   : > { %v1927_v39 = vadd.f32 %v1766_v44, %v1479_v56  ;;  %2324 = vperm.xlu1 %4071, %v2170_v14   ;;  %v2130_v26 = vpack.c.bf16 %v1989_v63, %v1988_v19  ;;  %v1420_v53 = vmul.f32 %v5387_v25, %v6848_v49  ;;  %v1483_v56 = vadd.f32 %v1419_v38, %v5680_v48  ;;  %v2174_v14 = vld [vmem:[%s6598_s4 + $0xf0] sm:$0xff]  ;;  %v2176_v16 = vld [vmem:[%s6598_s4 + $0x100] sm:$0xff] }
 0x24d   : > { %v1992_v19 = vmax.f32 %v1928_v57, 0.0  ;;  %v1930_v2 = vadd.f32 %v5703_v30, %v1482_v0  ;;  %v1098_v44 = vadd.f32 %v1034_v62, %v710_v21  ;;  %v1906_v50 = vadd.f32 %v5630_v15, %v1458_v58  ;;  %v6857_v22 = vld [vmem:[#allocation102_spill] sm:$0xff]  ;;  %v6859_v49 = vld [vmem:[#allocation141_spill] sm:$0xff] }
 0x24e   : > { %v1991_v36 = vmax.f32 %v1927_v39, 0.0  ;;  %v5758_v55 = vpop.permute.xlu0 %1800  ;;  %3142 = vmatpush1.bf16.msra.mxu0 %v2130_v26  ;;  %v1484_v52 = vadd.f32 %v1420_v53, %v1096_v12  ;;  %v2181_v26 = vld [vmem:[%s6598_s4 + $0x128] sm:$0xff]  ;;  %v1485_v57 = vadd.f32 %v1421_v3, %v5691_v17  ;;  %v1424_v15 = vmul.f32 %v5387_v25, %v6857_v22  ;;  %v2183_v17 = vld [vmem:[%s6598_s4 + $0x138] sm:$0xff]  ;;  %v2180_v54 = vld [vmem:[%s6598_s4 + $0x120] sm:$0xff] }
 0x24f   : > { %v1776_v13 = vpop.permute.xlu1 %1775  ;;  %2359 = vperm.xlu0 %4070, %v2177_v33   ;;  %3143 = vmatprep.subr.bf16.mxu0 %v6736_v4  ;;  %v6854_v33 = vld [vmem:[#allocation103_spill] sm:$0xff]  ;;  %v1994_v43 = vmax.f32 %v1930_v2, 0.0  ;;  %v1486_v12 = vadd.f32 %v1422_v8, %v1098_v44  ;;  %v714_v21 = vmul.f32 %v5377_v23, %v6858_v60  ;;  %v1970_v0 = vmax.f32 %v1906_v50, 0.0  ;;  %v6866_v50 = vld [vmem:[#allocation104_spill] sm:$0xff]  ;;  %v6869_v22 = vld [vmem:[#allocation61_spill] sm:$0xff] }
 0x250   : > { %v1929_v35 = vadd.f32 %v1776_v13, %v1481_v9  ;;  %2334 = vperm.xlu1 %4071, %v2172_v27   ;;  %v2131_v42 = vpack.c.bf16 %v1991_v36, %v1990_v51  ;;  %v1036_v31 = vmul.f32 %v5385_v20, %v6854_v33  ;;  %v1932_v38 = vadd.f32 %v5732_v40, %v1484_v52  ;;  %v6856_v36 = vld [vmem:[#allocation59_spill] sm:$0xff] }
 0x251   : > { %v1039_v9 = vmul.f32 %v5385_v20, %v6856_v36  ;;  %v1425_v53 = vmul.f32 %v5387_v25, %v6859_v49  ;;  %v1934_v62 = vadd.f32 %v5758_v55, %v1486_v12  ;;  %v2185_v8 = vld [vmem:[%s6598_s4 + $0x148] sm:$0xff]  ;;  %v2182_v12 = vld [vmem:[%s6598_s4 + $0x130] sm:$0xff] }
 0x252   : > { %v1993_v63 = vmax.f32 %v1929_v35, 0.0  ;;  %v5782_v37 = vpop.permute.xlu0 %1810  ;;  %3144 = vmatpush1.bf16.msra.mxu0 %v2131_v42  ;;  %v1100_v10 = vadd.f32 %v1036_v31, %v712_v7  ;;  %v1487_v42 = vadd.f32 %v1423_v32, %v5705_v24  ;;  %v1996_v11 = vmax.f32 %v1932_v38, 0.0  ;;  %v6863_v52 = vld [vmem:[#allocation7_spill] sm:$0xff]  ;;  %v6868_v36 = vld [vmem:[#allocation60_spill] sm:$0xff] }
 0x253   : > { %v1786_v48 = vpop.permute.xlu1 %1785  ;;  %2369 = vperm.xlu0 %4070, %v2179_v47   ;;  %3145 = vmatprep.subr.bf16.mxu0 %v6736_v4  ;;  %v2178_v47 = vld [vmem:[%s6598_s4 + $0x110] sm:$0xff]  ;;  %v1103_v58 = vadd.f32 %v1039_v9, %v5736_v59  ;;  %v1998_v7 = vmax.f32 %v1934_v62, 0.0  ;;  %v6864_v31 = vld [vmem:[#allocation31_spill] sm:$0xff]  ;;  %v1008_v32 = vmul.f32 %v5385_v20, %v6865_v61  ;;  %v717_v9 = vmul.f32 %v5377_v23, %v6868_v36  ;;  %v2191_v61 = vld [vmem:[%s6598_s4 + $0x178] sm:$0xff] }
 0x254   : > { %v1931_v39 = vadd.f32 %v1786_v48, %v1483_v56  ;;  %2344 = vperm.xlu1 %4071, %v2174_v14   ;;  %v2132_v30 = vpack.c.bf16 %v1993_v63, %v1992_v19  ;;  %v1101_v56 = vadd.f32 %v5719_v5, %v5709_v41  ;;  %v6860_v14 = vld [vmem:[#allocation105_spill] sm:$0xff]  ;;  %v6861_v19 = vld [vmem:[#allocation143_spill] sm:$0xff]  ;;  %v1488_v63 = vadd.f32 %v1424_v15, %v1100_v10  ;;  %v6862_v41 = vld [vmem:[#allocation30_spill] sm:$0xff] }
 0x255   : > { %v1038_v45 = vmul.f32 %v5385_v20, %v6860_v14  ;;  %v1427_v2 = vmul.f32 %v5387_v25, %v6861_v19  ;;  %v687_v5 = vmul.f32 %v5377_v23, %v6862_v41  ;;  %v684_v48 = vmul.f32 %v5377_v23, %v6863_v52  ;;  %v2189_v14 = vld [vmem:[%s6598_s4 + $0x168] sm:$0xff]  ;;  %v6875_v19 = vld [vmem:[#allocation114_spill] sm:$0xff] }
 0x256   : > { %v1995_v27 = vmax.f32 %v1931_v39, 0.0  ;;  %v1666_v51 = vpop.permute.xlu0 %1665  ;;  %3146 = vmatpush1.bf16.msra.mxu0 %v2132_v30  ;;  %v1936_v39 = vadd.f32 %v5782_v37, %v1488_v63  ;;  %v1489_v33 = vadd.f32 %v1425_v53, %v1101_v56  ;;  %v1011_v59 = vmul.f32 %v5385_v20, %v6864_v31  ;;  %v6867_v37 = vld [vmem:[#allocation115_spill] sm:$0xff] }
 0x257   : > { %v1907_v28 = vadd.f32 %v1666_v51, %v1459_v1  ;;  %v1796_v6 = vpop.permute.xlu1 %1795  ;;  %2379 = vperm.xlu0 %4070, %v2181_v26   ;;  %3147 = vmatprep.subr.bf16.mxu0 %v6736_v4  ;;  %v1102_v44 = vadd.f32 %v1038_v45, %v714_v21  ;;  %v1426_v1 = vmul.f32 %v5387_v25, %v6866_v50  ;;  %v6874_v45 = vld [vmem:[#allocation32_spill] sm:$0xff] }
 0x258   : > { %v1933_v13 = vadd.f32 %v1796_v6, %v1485_v57  ;;  %2354 = vperm.xlu1 %4071, %v2176_v16   ;;  %v2133_v40 = vpack.c.bf16 %v1995_v27, %v1994_v43  ;;  %v1397_v43 = vmul.f32 %v5387_v25, %v6867_v37  ;;  %v1491_v38 = vadd.f32 %v1427_v2, %v1103_v58  ;;  %v2187_v57 = vld [vmem:[%s6598_s4 + $0x158] sm:$0xff] }
 0x259   : > { %v1971_v35 = vmax.f32 %v1907_v28, 0.0  ;;  %v1041_v15 = vmul.f32 %v5385_v20, %v6869_v22  ;;  %v1072_v28 = vadd.f32 %v1008_v32, %v684_v48  ;;  %v6870_v6 = vld [vmem:[#allocation142_spill] sm:$0xff]  ;;  %v1490_v21 = vadd.f32 %v1426_v1, %v1102_v44  ;;  %v6876_v58 = vld [vmem:[#allocation33_spill] sm:$0xff]  ;;  %v6877_v48 = vld [vmem:[#allocation79_spill] sm:$0xff] }
 0x25a   : > { %v1997_v46 = vmax.f32 %v1933_v13, 0.0  ;;  %v1826_v18 = vpop.permute.xlu0 %1825  ;;  %3148 = vmatpush1.bf16.msra.mxu0 %v2133_v40  ;;  %v716_v10 = vmul.f32 %v5377_v23, %v6870_v6  ;;  %v2000_v13 = vmax.f32 %v1936_v39, 0.0  ;;  %v686_v2 = vmul.f32 %v5377_v23, %v6875_v19  ;;  %v6880_v32 = vld [vmem:[#allocation63_spill] sm:$0xff]  ;;  %v6881_v1 = vld [vmem:[#allocation64_spill] sm:$0xff] }
 0x25b   : > { %v1806_v24 = vpop.permute.xlu1 %1805  ;;  %2389 = vperm.xlu0 %4070, %v2183_v17   ;;  %v2121_v3 = vpack.c.bf16 %v1971_v35, %v1970_v0  ;;  %3149 = vmatprep.subr.bf16.mxu0 %v6736_v4  ;;  %v1939_v40 = vadd.f32 %v1826_v18, %v1491_v38  ;;  %v1075_v0 = vadd.f32 %v1011_v59, %v687_v5  ;;  %v6871_v35 = vld [vmem:[#allocation76_spill] sm:$0xff] }
 0x25c   : > { %v1935_v34 = vadd.f32 %v1806_v24, %v1487_v42  ;;  %2364 = vperm.xlu1 %4071, %v2178_v47   ;;  %v2134_v55 = vpack.c.bf16 %v1997_v46, %v1996_v11  ;;  %v1396_v42 = vmul.f32 %v5387_v25, %v6871_v35  ;;  %v6872_v47 = vld [vmem:[#allocation107_spill] sm:$0xff]  ;;  %v6873_v11 = vld [vmem:[#allocation145_spill] sm:$0xff]  ;;  %v1461_v46 = vadd.f32 %v1397_v43, %v5628_v29  ;;  %v6882_v43 = vld [vmem:[#allocation144_spill] sm:$0xff] }
 0x25d   : > { %2931 = vmatpush1.bf16.msra.mxu1 %v2121_v3  ;;  %v1040_v49 = vmul.f32 %v5385_v20, %v6872_v47  ;;  %v1429_v62 = vmul.f32 %v5387_v25, %v6873_v11  ;;  %v689_v24 = vmul.f32 %v5377_v23, %v6874_v45  ;;  %v1105_v3 = vadd.f32 %v1041_v15, %v717_v9  ;;  %v6886_v47 = vld [vmem:[#allocation34_spill] sm:$0xff]  ;;  %v6887_v11 = vld [vmem:[#allocation116_spill] sm:$0xff] }
 0x25e   : > { %v1999_v30 = vmax.f32 %v1935_v34, 0.0  ;;  %v1676_v26 = vpop.permute.xlu0 %1675  ;;  %3150 = vmatpush1.bf16.msra.mxu0 %v2134_v55  ;;  %2932 = vmatprep.subr.bf16.mxu1 %v6736_v4  ;;  %v1460_v63 = vadd.f32 %v1396_v42, %v1072_v28  ;;  %v2184_v34 = vld [vmem:[%s6598_s4 + $0x140] sm:$0xff]  ;;  %v2003_v55 = vmax.f32 %v1939_v40, 0.0  ;;  %v1013_v52 = vmul.f32 %v5385_v20, %v6876_v58  ;;  %v3411_v42 = vld [vmem:[%s6599_s5 + $0x8] sm:$0xff] }
 0x25f   : > { %v1816_v16 = vpop.permute.xlu1 %1815  ;;  %2399 = vperm.xlu0 %4070, %v2185_v8   ;;  %3151 = vmatprep.subr.bf16.mxu0 %v6736_v4  ;;  %v1104_v29 = vadd.f32 %v1040_v49, %v716_v10  ;;  %v1909_v8 = vadd.f32 %v1676_v26, %v1461_v46  ;;  %v1010_v44 = vmul.f32 %v5385_v20, %v6877_v48  ;;  %v6883_v28 = vld [vmem:[#allocation78_spill] sm:$0xff]  ;;  %v6884_v10 = vld [vmem:[#allocation109_spill] sm:$0xff]  ;;  %v6885_v40 = vld [vmem:[#allocation147_spill] sm:$0xff] }
 0x260   : > { %v1937_v27 = vadd.f32 %v1816_v16, %v1489_v33  ;;  %2374 = vperm.xlu1 %4071, %v2180_v54   ;;  %v2135_v51 = vpack.c.bf16 %v1999_v30, %v1998_v7  ;;  %v6878_v54 = vld [vmem:[#allocation106_spill] sm:$0xff]  ;;  %v6879_v30 = vld [vmem:[#allocation117_spill] sm:$0xff]  ;;  %v1493_v26 = vadd.f32 %v1429_v62, %v1105_v3  ;;  %v719_v50 = vmul.f32 %v5377_v23, %v6880_v32  ;;  %v6888_v3 = vld [vmem:[#allocation35_spill] sm:$0xff] }
 0x261   : > { %v1428_v7 = vmul.f32 %v5387_v25, %v6878_v54  ;;  %v1399_v33 = vmul.f32 %v5387_v25, %v6879_v30  ;;  %v1043_v16 = vmul.f32 %v5385_v20, %v6881_v1  ;;  %v1074_v37 = vadd.f32 %v1010_v44, %v686_v2  ;;  %v6889_v2 = vld [vmem:[#allocation81_spill] sm:$0xff]  ;;  %v6892_v44 = vld [vmem:[#allocation66_spill] sm:$0xff] }
 0x262   : > { %v2001_v17 = vmax.f32 %v1937_v27, 0.0  ;;  %v1836_v60 = vpop.permute.xlu0 %1835  ;;  %3152 = vmatpush1.bf16.msra.mxu0 %v2135_v51  ;;  %v718_v38 = vmul.f32 %v5377_v23, %v6882_v43  ;;  %v2186_v27 = vld [vmem:[%s6598_s4 + $0x150] sm:$0xff]  ;;  %v1973_v51 = vmax.f32 %v1909_v8, 0.0  ;;  %v1077_v15 = vadd.f32 %v1013_v52, %v689_v24  ;;  %v6891_v8 = vld [vmem:[#allocation119_spill] sm:$0xff]  ;;  %v3413_v48 = vld [vmem:[%s6599_s5 + $0x18] sm:$0xff] }
 0x263   : > { %v1821_v53 = vpop.permute.xlu1 %1820  ;;  %2409 = vperm.xlu0 %4070, %v2187_v57   ;;  %3153 = vmatprep.subr.bf16.mxu0 %v6736_v4  ;;  %v1941_v57 = vadd.f32 %v1836_v60, %v1493_v26  ;;  %v1492_v22 = vadd.f32 %v1428_v7, %v1104_v29  ;;  %v1398_v6 = vmul.f32 %v5387_v25, %v6883_v28  ;;  %v6893_v7 = vld [vmem:[#allocation67_spill] sm:$0xff] }
 0x264   : > { %v1938_v18 = vadd.f32 %v1821_v53, %v1490_v21  ;;  %2384 = vperm.xlu1 %4071, %v2182_v12   ;;  %v2136_v56 = vpack.c.bf16 %v2001_v17, %v2000_v13  ;;  %v1042_v12 = vmul.f32 %v5385_v20, %v6884_v10  ;;  %v1431_v17 = vmul.f32 %v5387_v25, %v6885_v40  ;;  %v6898_v10 = vld [vmem:[#allocation36_spill] sm:$0xff]  ;;  %v6899_v40 = vld [vmem:[#allocation118_spill] sm:$0xff] }
 0x265   : > { %v1463_v21 = vadd.f32 %v1399_v33, %v1075_v0  ;;  %v691_v49 = vmul.f32 %v5377_v23, %v6886_v47  ;;  %v1107_v53 = vadd.f32 %v1043_v16, %v719_v50  ;;  %v688_v62 = vmul.f32 %v5377_v23, %v6887_v11  ;;  %v6894_v33 = vld [vmem:[#allocation146_spill] sm:$0xff] }
 0x266   : > { %v2002_v41 = vmax.f32 %v1938_v18, 0.0  ;;  %v1686_v5 = vpop.permute.xlu0 %1685  ;;  %3154 = vmatpush1.bf16.msra.mxu0 %v2136_v56  ;;  %v1462_v46 = vadd.f32 %v1398_v6, %v1074_v37  ;;  %v2188_v18 = vld [vmem:[%s6598_s4 + $0x160] sm:$0xff]  ;;  %v1106_v0 = vadd.f32 %v1042_v12, %v718_v38  ;;  %v2005_v56 = vmax.f32 %v1941_v57, 0.0  ;;  %v6895_v37 = vld [vmem:[#allocation80_spill] sm:$0xff]  ;;  %v6897_v57 = vld [vmem:[#allocation149_spill] sm:$0xff] }
 0x267   : > { %v1671_v39 = vpop.permute.xlu1 %1670  ;;  %2419 = vperm.xlu0 %4070, %v2189_v14   ;;  %3155 = vmatprep.subr.bf16.mxu0 %v6736_v4  ;;  %v1911_v14 = vadd.f32 %v1686_v5, %v1463_v21  ;;  %v1015_v19 = vmul.f32 %v5385_v20, %v6888_v3  ;;  %v1495_v5 = vadd.f32 %v1431_v17, %v1107_v53  ;;  %v6896_v38 = vld [vmem:[#allocation62_spill] sm:$0xff]  ;;  %v3415_v6 = vld [vmem:[%s6599_s5 + $0x28] sm:$0xff]  ;;  %v6900_v53 = vld [vmem:[#allocation37_spill] sm:$0xff] }
 0x268   : > { %v1908_v31 = vadd.f32 %v1671_v39, %v1460_v63  ;;  %2394 = vperm.xlu1 %4071, %v2184_v34   ;;  %v2137_v59 = vpack.c.bf16 %v2003_v55, %v2002_v41  ;;  %v1012_v63 = vmul.f32 %v5385_v20, %v6889_v2  ;;  %v6890_v34 = vld [vmem:[#allocation108_spill] sm:$0xff]  ;;  %v1401_v41 = vmul.f32 %v5387_v25, %v6891_v8  ;;  %v3417_v2 = vld [vmem:[%s6599_s5 + $0x38] sm:$0xff] }
 0x269   : > { %v1430_v29 = vmul.f32 %v5387_v25, %v6890_v34  ;;  %v721_v54 = vmul.f32 %v5377_v23, %v6892_v44  ;;  %v1045_v39 = vmul.f32 %v5385_v20, %v6893_v7  ;;  %v720_v26 = vmul.f32 %v5377_v23, %v6894_v33  ;;  %v6908_v33 = vld [vmem:[#allocation3_spill] sm:$0xff] }
 0x26a   : > { %v1972_v36 = vmax.f32 %v1908_v31, 0.0  ;;  %v1846_v9 = vpop.permute.xlu0 %1845  ;;  %3156 = vmatpush1.bf16.msra.mxu0 %v2137_v59  ;;  %v1076_v30 = vadd.f32 %v1012_v63, %v688_v62  ;;  %v2190_v31 = vld [vmem:[%s6598_s4 + $0x170] sm:$0xff]  ;;  %v1975_v59 = vmax.f32 %v1911_v14, 0.0  ;;  %v1079_v16 = vadd.f32 %v1015_v19, %v691_v49  ;;  %v6901_v62 = vld [vmem:[#allocation83_spill] sm:$0xff] }
 0x26b   : > { %v1831_v13 = vpop.permute.xlu1 %1830  ;;  %2429 = vperm.xlu0 %4070, %v2191_v61   ;;  %3157 = vmatprep.subr.bf16.mxu0 %v6736_v4  ;;  %v1943_v61 = vadd.f32 %v1846_v9, %v1495_v5  ;;  %v1494_v1 = vadd.f32 %v1430_v29, %v1106_v0  ;;  %v1400_v43 = vmul.f32 %v5387_v25, %v6895_v37  ;;  %v6903_v14 = vld [vmem:[#allocation121_spill] sm:$0xff]  ;;  %v6904_v63 = vld [vmem:[#allocation68_spill] sm:$0xff] }
 0x26c   : > { %v1940_v60 = vadd.f32 %v1831_v13, %v1492_v22  ;;  %2404 = vperm.xlu1 %4071, %v2186_v27   ;;  %v2122_v35 = vpack.c.bf16 %v1973_v51, %v1972_v36  ;;  %v1044_v27 = vmul.f32 %v5385_v20, %v6896_v38  ;;  %v1433_v36 = vmul.f32 %v5387_v25, %v6897_v57  ;;  %v6905_v29 = vld [vmem:[#allocation69_spill] sm:$0xff]  ;;  %v3419_v37 = vld [vmem:[%s6599_s5 + $0x48] sm:$0xff] }
 0x26d   : > { %v1465_v22 = vadd.f32 %v1401_v41, %v1077_v15  ;;  %v693_v12 = vmul.f32 %v5377_v23, %v6898_v10  ;;  %v1109_v13 = vadd.f32 %v1045_v39, %v721_v54  ;;  %v690_v17 = vmul.f32 %v5377_v23, %v6899_v40  ;;  %v6906_v41 = vld [vmem:[#allocation148_spill] sm:$0xff]  ;;  %v6907_v39 = vld [vmem:[#allocation82_spill] sm:$0xff]  ;;  %v6912_v40 = vld [vmem:[#allocation85_spill] sm:$0xff] }
 0x26e   : > { %v2004_v45 = vmax.f32 %v1940_v60, 0.0  ;;  %v1696_v24 = vpop.permute.xlu0 %1695  ;;  %2933 = vmatpush1.bf16.msra.mxu1 %v2122_v35  ;;  %v1464_v21 = vadd.f32 %v1400_v43, %v1076_v30  ;;  %v3410_v60 = vld [vmem:[%s6599_s5] sm:$0xff]  ;;  %v1108_v15 = vadd.f32 %v1044_v27, %v720_v26  ;;  %v2007_v35 = vmax.f32 %v1943_v61, 0.0  ;;  %v6910_v27 = vld [vmem:[#allocation120_spill] sm:$0xff] }
 0x26f   : > { %v1681_v55 = vpop.permute.xlu1 %1680  ;;  %3465 = vperm.xlu0 %4070, %v3411_v42   ;;  %2934 = vmatprep.subr.bf16.mxu1 %v6736_v4  ;;  %v1913_v42 = vadd.f32 %v1696_v24, %v1465_v22  ;;  %v1017_v11 = vmul.f32 %v5385_v20, %v6900_v53  ;;  %v1497_v24 = vadd.f32 %v1433_v36, %v1109_v13  ;;  %v3414_v36 = vld [vmem:[%s6599_s5 + $0x20] sm:$0xff]  ;;  %v3421_v53 = vld [vmem:[%s6599_s5 + $0x58] sm:$0xff] }
 0x270   : > { %v1910_v58 = vadd.f32 %v1681_v55, %v1462_v46  ;;  %2414 = vperm.xlu1 %4071, %v2188_v18   ;;  %v2138_v52 = vpack.c.bf16 %v2005_v56, %v2004_v45  ;;  %v1014_v46 = vmul.f32 %v5385_v20, %v6901_v62  ;;  %v6902_v18 = vld [vmem:[#allocation110_spill] sm:$0xff]  ;;  %v1403_v45 = vmul.f32 %v5387_v25, %v6903_v14 }
 0x271   : > { %v1432_v0 = vmul.f32 %v5387_v25, %v6902_v18  ;;  %v723_v34 = vmul.f32 %v5377_v23, %v6904_v63  ;;  %v1047_v55 = vmul.f32 %v5385_v20, %v6905_v29  ;;  %v722_v5 = vmul.f32 %v5377_v23, %v6906_v41  ;;  %v6911_v10 = vld [vmem:[#allocation38_spill] sm:$0xff]  ;;  %v6918_v63 = vld [vmem:[#allocation39_spill] sm:$0xff]  ;;  %v6919_v29 = vld [vmem:[#allocation84_spill] sm:$0xff] }
 0x272   : > { %v1974_v32 = vmax.f32 %v1910_v58, 0.0  ;;  %v1856_v50 = vpop.permute.xlu0 %1855  ;;  %3158 = vmatpush1.bf16.msra.mxu0 %v2138_v52  ;;  %v1078_v8 = vadd.f32 %v1014_v46, %v690_v17  ;;  %v3412_v58 = vld [vmem:[%s6599_s5 + $0x10] sm:$0xff]  ;;  %v1977_v52 = vmax.f32 %v1913_v42, 0.0  ;;  %v1402_v30 = vmul.f32 %v5387_v25, %v6907_v39  ;;  %v6913_v17 = vld [vmem:[#allocation111_spill] sm:$0xff] }
 0x273   : > { %v1841_v51 = vpop.permute.xlu1 %1840  ;;  %3475 = vperm.xlu0 %4070, %v3413_v48   ;;  %3159 = vmatprep.subr.bf16.mxu0 %v6736_v4  ;;  %v1945_v48 = vadd.f32 %v1856_v50, %v1497_v24  ;;  %v1496_v7 = vadd.f32 %v1432_v0, %v1108_v15  ;;  %v1046_v26 = vmul.f32 %v5385_v20, %v6908_v33  ;;  %v6914_v15 = vld [vmem:[#allocation123_spill] sm:$0xff]  ;;  %v6922_v33 = vld [vmem:[#allocation122_spill] sm:$0xff] }
 0x274   : > { %v1942_v9 = vadd.f32 %v1841_v51, %v1494_v1  ;;  %2424 = vperm.xlu1 %4071, %v2190_v31   ;;  %v2123_v28 = vpack.c.bf16 %v1975_v59, %v1974_v32  ;;  %v6909_v59 = vld [vmem:[#allocation151_spill] sm:$0xff]  ;;  %v1467_v32 = vadd.f32 %v1403_v45, %v1079_v16  ;;  %v1081_v43 = vadd.f32 %v1017_v11, %v693_v12  ;;  %v6915_v11 = vld [vmem:[#allocation70_spill] sm:$0xff]  ;;  %v3416_v45 = vld [vmem:[%s6599_s5 + $0x30] sm:$0xff] }
 0x275   : > { %v1435_v61 = vmul.f32 %v5387_v25, %v6909_v59  ;;  %v1111_v38 = vadd.f32 %v1047_v55, %v723_v34  ;;  %v692_v51 = vmul.f32 %v5377_v23, %v6910_v27  ;;  %v1466_v57 = vadd.f32 %v1402_v30, %v1078_v8  ;;  %v6916_v46 = vld [vmem:[#allocation71_spill] sm:$0xff]  ;;  %v6920_v8 = vld [vmem:[#allocation4_spill] sm:$0xff]  ;;  %v6924_v27 = vld [vmem:[#allocation65_spill] sm:$0xff] }
 0x276   : > { %v2006_v47 = vmax.f32 %v1942_v9, 0.0  ;;  %v1706_v49 = vpop.permute.xlu0 %1705  ;;  %2935 = vmatpush1.bf16.msra.mxu1 %v2123_v28  ;;  %v1110_v22 = vadd.f32 %v1046_v26, %v722_v5  ;;  %v2009_v9 = vmax.f32 %v1945_v48, 0.0  ;;  %v695_v13 = vmul.f32 %v5377_v23, %v6911_v10  ;;  %v3423_v39 = vld [vmem:[%s6599_s5 + $0x68] sm:$0xff]  ;;  %v3418_v59 = vld [vmem:[%s6599_s5 + $0x40] sm:$0xff] }
 0x277   : > { %v1691_v56 = vpop.permute.xlu1 %1690  ;;  %3485 = vperm.xlu0 %4070, %v3415_v6   ;;  %2936 = vmatprep.subr.bf16.mxu1 %v6736_v4  ;;  %v1915_v16 = vadd.f32 %v1706_v49, %v1467_v32  ;;  %v1016_v12 = vmul.f32 %v5385_v20, %v6912_v40  ;;  %v1499_v42 = vadd.f32 %v1435_v61, %v1111_v38  ;;  %v6926_v10 = vld [vmem:[#allocation72_spill] sm:$0xff]  ;;  %v6927_v40 = vld [vmem:[#allocation73_spill] sm:$0xff] }
 0x278   : > { %v1912_v3 = vadd.f32 %v1691_v56, %v1464_v21  ;;  %3460 = vperm.xlu1 %4071, %v3410_v60   ;;  %v2139_v19 = vpack.c.bf16 %v2007_v35, %v2006_v47  ;;  %v1434_v21 = vmul.f32 %v5387_v25, %v6913_v17  ;;  %v1405_v35 = vmul.f32 %v5387_v25, %v6914_v15  ;;  %v6917_v56 = vld [vmem:[#allocation150_spill] sm:$0xff] }
 0x279   : > { %v725_v62 = vmul.f32 %v5377_v23, %v6915_v11  ;;  %v1049_v18 = vmul.f32 %v5385_v20, %v6916_v46  ;;  %v1080_v0 = vadd.f32 %v1016_v12, %v692_v51  ;;  %v724_v14 = vmul.f32 %v5377_v23, %v6917_v56  ;;  %v6929_v11 = vld [vmem:[#allocation86_spill] sm:$0xff]  ;;  %v6930_v46 = vld [vmem:[#allocation5_spill] sm:$0xff] }
 0x27a   : > { %v1976_v44 = vmax.f32 %v1912_v3, 0.0  ;;  %v1866_v54 = vpop.permute.xlu0 %1865  ;;  %3160 = vmatpush1.bf16.msra.mxu0 %v2139_v19  ;;  %v1979_v24 = vmax.f32 %v1915_v16, 0.0  ;;  %v1019_v34 = vmul.f32 %v5385_v20, %v6918_v63  ;;  %v1404_v55 = vmul.f32 %v5387_v25, %v6919_v29 }
 0x27b   : > { %v1851_v31 = vpop.permute.xlu1 %1850  ;;  %3495 = vperm.xlu0 %4070, %v3417_v2   ;;  %3161 = vmatprep.subr.bf16.mxu0 %v6736_v4  ;;  %v1947_v3 = vadd.f32 %v1866_v54, %v1499_v42  ;;  %v1498_v2 = vadd.f32 %v1434_v21, %v1110_v22  ;;  %v1048_v41 = vmul.f32 %v5385_v20, %v6920_v8  ;;  %v6928_v21 = vld [vmem:[#allocation152_spill] sm:$0xff] }
 0x27c   : > { %v1944_v1 = vadd.f32 %v1851_v31, %v1496_v7  ;;  %3470 = vperm.xlu1 %4071, %v3412_v58   ;;  %v2124_v50 = vpack.c.bf16 %v1977_v52, %v1976_v44  ;;  %v6921_v52 = vld [vmem:[#allocation153_spill] sm:$0xff]  ;;  %v1469_v44 = vadd.f32 %v1405_v35, %v1081_v43  ;;  %v1113_v30 = vadd.f32 %v1049_v18, %v725_v62  ;;  %v6923_v43 = vld [vmem:[#allocation87_spill] sm:$0xff] }
 0x27d   : > { %v1437_v48 = vmul.f32 %v5387_v25, %v6921_v52  ;;  %v694_v26 = vmul.f32 %v5377_v23, %v6922_v33  ;;  %v1468_v31 = vadd.f32 %v1404_v55, %v1080_v0  ;;  %v1112_v61 = vadd.f32 %v1048_v41, %v724_v14  ;;  %v3420_v35 = vld [vmem:[%s6599_s5 + $0x50] sm:$0xff] }
 0x27e   : > { %v2008_v28 = vmax.f32 %v1944_v1, 0.0  ;;  %v1716_v6 = vpop.permute.xlu0 %1715  ;;  %2937 = vmatpush1.bf16.msra.mxu1 %v2124_v50  ;;  %v2011_v32 = vmax.f32 %v1947_v3, 0.0  ;;  %v1018_v38 = vmul.f32 %v5385_v20, %v6923_v43  ;;  %v1436_v51 = vmul.f32 %v5387_v25, %v6924_v27  ;;  %v3427_v3 = vld [vmem:[%s6599_s5 + $0x88] sm:$0xff] }
 0x27f   : > { %v1701_v60 = vpop.permute.xlu1 %1700  ;;  %3505 = vperm.xlu0 %4070, %v3419_v37   ;;  %2938 = vmatprep.subr.bf16.mxu1 %v6736_v4  ;;  %v1917_v1 = vadd.f32 %v1716_v6, %v1469_v44  ;;  %v1083_v37 = vadd.f32 %v1019_v34, %v695_v13  ;;  %v3425_v6 = vld [vmem:[%s6599_s5 + $0x78] sm:$0xff]  ;;  %v727_v13 = vmul.f32 %v5377_v23, %v6926_v10 }
 0x280   : > { %v1914_v47 = vadd.f32 %v1701_v60, %v1466_v57  ;;  %3480 = vperm.xlu1 %4071, %v3414_v36   ;;  %v2140_v49 = vpack.c.bf16 %v2009_v9, %v2008_v28  ;;  %v6925_v36 = vld [vmem:[#allocation124_spill] sm:$0xff]  ;;  %v1501_v9 = vadd.f32 %v1437_v48, %v1113_v30  ;;  %v1051_v12 = vmul.f32 %v5385_v20, %v6927_v40 }
 0x281   : > { %v1407_v22 = vmul.f32 %v5387_v25, %v6925_v36  ;;  %v1082_v17 = vadd.f32 %v1018_v38, %v694_v26  ;;  %v726_v60 = vmul.f32 %v5377_v23, %v6928_v21  ;;  %v1981_v42 = vmax.f32 %v1917_v1, 0.0  ;;  %v6931_v23 = vld [vmem:[#allocation9_spill] sm:$0xff]  ;;  %v3426_v1 = vld [vmem:[%s6599_s5 + $0x80] sm:$0xff]  ;;  %v3435_v36 = vld [vmem:[%s6599_s5 + $0xc8] sm:$0xff] }
 0x282   : > { %v1978_v19 = vmax.f32 %v1914_v47, 0.0  ;;  %3162 = vmatpush1.bf16.msra.mxu0 %v2140_v49  ;;  %v1876_v5 = vpop.permute.xlu0 %1875  ;;  %v1406_v62 = vmul.f32 %v5387_v25, %v6929_v11  ;;  %v1050_v18 = vmul.f32 %v5385_v20, %v6930_v46  ;;  %v1439_v56 = vmul.f32 %v5387_v25, %v6931_v23  ;;  %v3422_v20 = vld [vmem:[%s6599_s5 + $0x60] sm:$0xff]  ;;  %v3433_v38 = vld [vmem:[%s6599_s5 + $0xb8] sm:$0xff]  ;;  %v3439_v40 = vld [vmem:[%s6599_s5 + $0xe8] sm:$0xff] }
 0x283   : > { %v1861_v58 = vpop.permute.xlu1 %1860  ;;  %3515 = vperm.xlu0 %4070, %v3421_v53   ;;  %3163 = vmatprep.subr.bf16.mxu0 %v6736_v4  ;;  %v1949_v47 = vadd.f32 %v1876_v5, %v1501_v9  ;;  %v1500_v53 = vadd.f32 %v1436_v51, %v1112_v61  ;;  %v1471_v14 = vadd.f32 %v1407_v22, %v1083_v37  ;;  %v6932_v5 = vld [vmem:[#allocation112_spill] sm:$0xff]  ;;  %v3430_v22 = vld [vmem:[%s6599_s5 + $0xa0] sm:$0xff] }
 0x284   : > { %v1946_v54 = vadd.f32 %v1861_v58, %v1498_v2  ;;  %3490 = vperm.xlu1 %4071, %v3416_v45   ;;  %v2125_v7 = vpack.c.bf16 %v1979_v24, %v1978_v19  ;;  %v1115_v19 = vadd.f32 %v1051_v12, %v727_v13  ;;  %v1470_v2 = vadd.f32 %v1406_v62, %v1082_v17  ;;  %v3431_v61 = vld [vmem:[%s6599_s5 + $0xa8] sm:$0xff]  ;;  %v3428_v51 = vld [vmem:[%s6599_s5 + $0x90] sm:$0xff]  ;;  %v3434_v12 = vld [vmem:[%s6599_s5 + $0xc0] sm:$0xff] }
 0x285   : > { %v1114_v63 = vadd.f32 %v1050_v18, %v726_v60  ;;  %v2013_v34 = vmax.f32 %v1949_v47, 0.0  ;;  %v1438_v58 = vmul.f32 %v5387_v25, %v6932_v5  ;;  %v4075_v27 = vld [vmem:[%s6597_s3 + $0x8] ss:$16 sps:$4 sm:$0xff]   ;;  %v4080_v9 = vld [vmem:[%s6597_s3 + $0x20] ss:$16 sps:$4 sm:$0xff]  }
 0x286   : > { %v2010_v50 = vmax.f32 %v1946_v54, 0.0  ;;  %2939 = vmatpush1.bf16.msra.mxu1 %v2125_v7  ;;  %v1726_v15 = vpop.permute.xlu0 %1725  ;;  %v1503_v52 = vadd.f32 %v1439_v56, %v1115_v19  ;;  %v3429_v54 = vld [vmem:[%s6599_s5 + $0x98] sm:$0xff]  ;;  %v3424_v7 = vld [vmem:[%s6599_s5 + $0x70] sm:$0xff]  ;;  %v3443_v47 = vld [vmem:[%s6599_s5 + $0x108] sm:$0xff] }
 0x287   : > { %v1711_v57 = vpop.permute.xlu1 %1710  ;;  %3525 = vperm.xlu0 %4070, %v3423_v39   ;;  %2940 = vmatprep.subr.bf16.mxu1 %v6736_v4  ;;  %v1919_v29 = vadd.f32 %v1726_v15, %v1471_v14  ;;  %v1502_v26 = vadd.f32 %v1438_v58, %v1114_v63  ;;  %v4083_v10 = vld [vmem:[%s6597_s3 + $0x28] ss:$16 sps:$4 sm:$0xff]   ;;  %v4087_v13 = vld [vmem:[%s6597_s3 + $0x4c] ss:$16 sps:$4 sm:$0xff]   ;;  %v4086_v17 = vld [vmem:[%s6597_s3 + $0x40] ss:$16 sps:$4 sm:$0xff]  }
 0x288   : > { %v1916_v16 = vadd.f32 %v1711_v57, %v1468_v31  ;;  %3500 = vperm.xlu1 %4071, %v3418_v59   ;;  %v2141_v28 = vpack.c.bf16 %v2011_v32, %v2010_v50  ;;  %v4072_v32 = vld [vmem:[%s6597_s3] ss:$16 sps:$4 sm:$0xff]   ;;  %v4081_v57 = vld [vmem:[%s6597_s3 + $0x2c] ss:$16 sps:$4 sm:$0xff]   ;;  %v4090_v21 = vld [vmem:[%s6597_s3 + $0x64] ss:$16 sps:$4 sm:$0xff]  }
 0x289   : > { %v1983_v39 = vmax.f32 %v1919_v29, 0.0  ;;  %v3441_v60 = vld [vmem:[%s6599_s5 + $0xf8] sm:$0xff]  ;;  %v3436_v15 = vld [vmem:[%s6599_s5 + $0xd0] sm:$0xff]  ;;  %v3447_v23 = vld [vmem:[%s6599_s5 + $0x128] sm:$0xff] }
 0x28a   : > { %v1980_v49 = vmax.f32 %v1916_v16, 0.0  ;;  %3164 = vmatpush1.bf16.msra.mxu0 %v2141_v28  ;;  %v1886_v8 = vpop.permute.xlu0 %1885  ;;  %v4084_v16 = vld [vmem:[%s6597_s3 + $0x44] ss:$16 sps:$4 sm:$0xff]   ;;  %v3437_v28 = vld [vmem:[%s6599_s5 + $0xd8] sm:$0xff]  ;;  %v4098_v14 = vld [vmem:[%s6597_s3 + $0x80] ss:$16 sps:$4 sm:$0xff]  }
 0x28b   : > { %v1871_v0 = vpop.permute.xlu1 %1870  ;;  %3535 = vperm.xlu0 %4070, %v3425_v6   ;;  %3165 = vmatprep.subr.bf16.mxu0 %v6736_v4  ;;  %v1951_v30 = vadd.f32 %v1886_v8, %v1503_v52  ;;  %v3432_v6 = vld [vmem:[%s6599_s5 + $0xb0] sm:$0xff]  ;;  %v3445_v62 = vld [vmem:[%s6599_s5 + $0x118] sm:$0xff]  ;;  %v3442_v56 = vld [vmem:[%s6599_s5 + $0x100] sm:$0xff] }
 0x28c   : > { %v1948_v45 = vadd.f32 %v1871_v0, %v1500_v53  ;;  %3510 = vperm.xlu1 %4071, %v3420_v35   ;;  %v2126_v24 = vpack.c.bf16 %v1981_v42, %v1980_v49  ;;  %v4089_v35 = vld [vmem:[%s6597_s3 + $0x48] ss:$16 sps:$4 sm:$0xff]   ;;  %v4093_v42 = vld [vmem:[%s6597_s3 + $0x6c] ss:$16 sps:$4 sm:$0xff]   ;;  %v3438_v49 = vld [vmem:[%s6599_s5 + $0xe0] sm:$0xff] }
 0x28d   : > { %v2015_v50 = vmax.f32 %v1951_v30, 0.0  ;;  %v4092_v53 = vld [vmem:[%s6597_s3 + $0x60] ss:$16 sps:$4 sm:$0xff]   ;;  %v4096_v11 = vld [vmem:[%s6597_s3 + $0x84] ss:$16 sps:$4 sm:$0xff]   ;;  %v3455_v58 = vld [vmem:[%s6599_s5 + $0x168] sm:$0xff] }
 0x28e   : > { %v2012_v55 = vmax.f32 %v1948_v45, 0.0  ;;  %2941 = vmatpush1.bf16.msra.mxu1 %v2126_v24  ;;  %v3440_v46 = vld [vmem:[%s6599_s5 + $0xf0] sm:$0xff]  ;;  %v4095_v18 = vld [vmem:[%s6597_s3 + $0x68] ss:$16 sps:$4 sm:$0xff]   ;;  %v4099_v0 = vld [vmem:[%s6597_s3 + $0x8c] ss:$16 sps:$4 sm:$0xff]  }
 0x28f   : > { %v1721_v41 = vpop.permute.xlu1 %1720  ;;  %3545 = vperm.xlu0 %4070, %v3427_v3   ;;  %2942 = vmatprep.subr.bf16.mxu1 %v6736_v4  ;;  %v4102_v45 = vld [vmem:[%s6597_s3 + $0xa4] ss:$16 sps:$4 sm:$0xff]   ;;  %v3449_v24 = vld [vmem:[%s6599_s5 + $0x138] sm:$0xff] }
 0x290   : > { %v1918_v48 = vadd.f32 %v1721_v41, %v1470_v2  ;;  %3520 = vperm.xlu1 %4071, %v3422_v20   ;;  %v2142_v44 = vpack.c.bf16 %v2013_v34, %v2012_v55  ;;  %v3444_v3 = vld [vmem:[%s6599_s5 + $0x110] sm:$0xff]  ;;  %v4101_v19 = vld [vmem:[%s6597_s3 + $0x88] ss:$16 sps:$4 sm:$0xff]   ;;  %v4105_v2 = vld [vmem:[%s6597_s3 + $0xac] ss:$16 sps:$4 sm:$0xff]  }
 0x291   : > { %v3451_v20 = vld [vmem:[%s6599_s5 + $0x148] sm:$0xff]  ;;  %v3446_v63 = vld [vmem:[%s6599_s5 + $0x120] sm:$0xff]  ;;  %v3453_v55 = vld [vmem:[%s6599_s5 + $0x158] sm:$0xff] }
 0x292   : > { %v1982_v33 = vmax.f32 %v1918_v48, 0.0  ;;  %3166 = vmatpush1.bf16.msra.mxu0 %v2142_v44  ;;  %v4104_v34 = vld [vmem:[%s6597_s3 + $0xa0] ss:$16 sps:$4 sm:$0xff]   ;;  %v4108_v29 = vld [vmem:[%s6597_s3 + $0xc4] ss:$16 sps:$4 sm:$0xff]  }
 0x293   : > { %v1881_v31 = vpop.permute.xlu1 %1880  ;;  %3555 = vperm.xlu0 %4070, %v3429_v54   ;;  %3167 = vmatprep.subr.bf16.mxu0 %v6736_v4  ;;  %v4078_v4 = vld [vmem:[%s6597_s3 + $0x24] ss:$16 sps:$4 sm:$0xff]   ;;  %v4107_v41 = vld [vmem:[%s6597_s3 + $0xa8] ss:$16 sps:$4 sm:$0xff]   ;;  %v4111_v5 = vld [vmem:[%s6597_s3 + $0xcc] ss:$16 sps:$4 sm:$0xff]  }
 0x294   : > { %v1950_v25 = vadd.f32 %v1881_v31, %v1502_v26  ;;  %3530 = vperm.xlu1 %4071, %v3424_v7   ;;  %v2127_v59 = vpack.c.bf16 %v1983_v39, %v1982_v33  ;;  %v3448_v8 = vld [vmem:[%s6599_s5 + $0x130] sm:$0xff]  ;;  %v3450_v52 = vld [vmem:[%s6599_s5 + $0x140] sm:$0xff]  ;;  %v3457_v54 = vld [vmem:[%s6599_s5 + $0x178] sm:$0xff] }
 0x295   : > { %v4110_v48 = vld [vmem:[%s6597_s3 + $0xc0] ss:$16 sps:$4 sm:$0xff]   ;;  %v4114_v44 = vld [vmem:[%s6597_s3 + $0xe4] ss:$16 sps:$4 sm:$0xff]   ;;  %v4113_v39 = vld [vmem:[%s6597_s3 + $0xc8] ss:$16 sps:$4 sm:$0xff]  }
 0x296   : > { %v2014_v37 = vmax.f32 %v1950_v25, 0.0  ;;  %2943 = vmatpush1.bf16.msra.mxu1 %v2127_v59  ;;  %v3452_v7 = vld [vmem:[%s6599_s5 + $0x150] sm:$0xff]  ;;  %v4117_v30 = vld [vmem:[%s6597_s3 + $0xec] ss:$16 sps:$4 sm:$0xff]   ;;  %v3454_v33 = vld [vmem:[%s6599_s5 + $0x160] sm:$0xff] }
 0x297   : > { %3565 = vperm.xlu0 %4070, %v3431_v61   ;;  %v4116_v26 = vld [vmem:[%s6597_s3 + $0xe0] ss:$16 sps:$4 sm:$0xff]   ;;  %v4120_v31 = vld [vmem:[%s6597_s3 + $0x104] ss:$16 sps:$4 sm:$0xff]   ;;  %v4119_v59 = vld [vmem:[%s6597_s3 + $0xe8] ss:$16 sps:$4 sm:$0xff]  }
 0x298   : > { %v2143_v43 = vpack.c.bf16 %v2015_v50, %v2014_v37  ;;  %3540 = vperm.xlu1 %4071, %v3426_v1   ;;  %v3456_v25 = vld [vmem:[%s6599_s5 + $0x170] sm:$0xff]  ;;  %v4123_v61 = vld [vmem:[%s6597_s3 + $0x10c] ss:$16 sps:$4 sm:$0xff]   ;;  %v4125_v50 = vld [vmem:[%s6597_s3 + $0x108] ss:$16 sps:$4 sm:$0xff]  }
 0x299   : > { %2945 = vmatmul.mubr.bf16.vlgmr.msra.gmra.mrb[0].mxu1 %v4072_v32  ;;  %v4122_v32 = vld [vmem:[%s6597_s3 + $0x100] ss:$16 sps:$4 sm:$0xff]   ;;  %v4126_v1 = vld [vmem:[%s6597_s3 + $0x124] ss:$16 sps:$4 sm:$0xff]   ;;  %v4129_v37 = vld [vmem:[%s6597_s3 + $0x12c] ss:$16 sps:$4 sm:$0xff]  }
 0x29a   : > { %3168 = vmatpush1.bf16.msra.mxu0 %v2143_v43  ;;  %2952 = vmatprep.mubr.bf16.mxu1 %v4078_v4  ;;  %v4128_v4 = vld [vmem:[%s6597_s3 + $0x120] ss:$16 sps:$4 sm:$0xff]   ;;  %v4132_v43 = vld [vmem:[%s6597_s3 + $0x144] ss:$16 sps:$4 sm:$0xff]  }
 0x29b   : > { %3575 = vperm.xlu0 %4070, %v3433_v38   ;;  %v4131_v38 = vld [vmem:[%s6597_s3 + $0x128] ss:$16 sps:$4 sm:$0xff]  }
 0x29c   : > { %3550 = vperm.xlu1 %4071, %v3428_v51   ;;  %v6281_v51 = vpop.permute.xlu0 %2199 }
 0x29d   : > { %3170 = vmatmul.mubr.bf16.vlgmr.msra.gmra.mrb[0].mxu0 %v4075_v27  ;;  %v4135_v27 = vld [vmem:[%s6597_s3 + $0x14c] ss:$16 sps:$4 sm:$0xff]  }
 0x29e   : > { %3177 = vmatprep.mubr.bf16.mxu0 %v4081_v57  ;;  %v4134_v57 = vld [vmem:[%s6597_s3 + $0x140] ss:$16 sps:$4 sm:$0xff]  }
 0x29f   : > { %3585 = vperm.xlu0 %4070, %v3435_v36   ;;  %v6286_v36 = vpop.permute.xlu1 %2194 }
 0x2a0   : > { %3560 = vperm.xlu1 %4071, %v3430_v22   ;;  %v4138_v22 = vld [vmem:[%s6597_s3 + $0x164] ss:$16 sps:$4 sm:$0xff]  }
 0x2a1   : > { %2953 = vmatmul.mubr.bf16.gmra.mrb[4].mxu1 %v4080_v9  ;;  %v4137_v9 = vld [vmem:[%s6597_s3 + $0x148] ss:$16 sps:$4 sm:$0xff]  }
 0x2a2   : > { %2960 = vmatprep.mubr.bf16.mxu1 %v4084_v16  ;;  %v4141_v16 = vld [vmem:[%s6597_s3 + $0x16c] ss:$16 sps:$4 sm:$0xff]  }
 0x2a3   : > { %3595 = vperm.xlu0 %4070, %v3437_v28   ;;  %v6297_v28 = vpop.permute.xlu0 %2209 }
 0x2a4   : > { %3570 = vperm.xlu1 %4071, %v3432_v6   ;;  %v6299_v6 = vpop.permute.xlu1 %2204 }
 0x2a5   : > { %3178 = vmatmul.mubr.bf16.gmra.mrb[4].mxu0 %v4083_v10  ;;  %v4140_v10 = vld [vmem:[%s6597_s3 + $0x160] ss:$16 sps:$4 sm:$0xff]  }
 0x2a6   : > { %3185 = vmatprep.mubr.bf16.mxu0 %v4087_v13  ;;  %v4144_v13 = vld [vmem:[%s6597_s3 + $0x184] ss:$16 sps:$4 sm:$0xff]  }
 0x2a7   : > { %3605 = vperm.xlu0 %4070, %v3439_v40   ;;  %v6307_v40 = vpop.permute.xlu0 %2219 }
 0x2a8   : > { %3580 = vperm.xlu1 %4071, %v3434_v12   ;;  %v4143_v12 = vld [vmem:[%s6597_s3 + $0x168] ss:$16 sps:$4 sm:$0xff]  }
 0x2a9   : > { %2961 = vmatmul.mubr.bf16.gmra.mrb[8].mxu1 %v4086_v17  ;;  %v6312_v17 = vpop.permute.xlu1 %2214 }
 0x2aa   : > { %2968 = vmatprep.mubr.bf16.mxu1 %v4090_v21  ;;  %v4147_v21 = vld [vmem:[%s6597_s3 + $0x18c] ss:$16 sps:$4 sm:$0xff]  }
 0x2ab   : > { %3615 = vperm.xlu0 %4070, %v3441_v60   ;;  %v4146_v60 = vld [vmem:[%s6597_s3 + $0x180] ss:$16 sps:$4 sm:$0xff]  }
 0x2ac   : > { %3590 = vperm.xlu1 %4071, %v3436_v15   ;;  %v4150_v15 = vld [vmem:[%s6597_s3 + $0x1a4] ss:$16 sps:$4 sm:$0xff]  }
 0x2ad   : > { %3186 = vmatmul.mubr.bf16.gmra.mrb[8].mxu0 %v4089_v35  ;;  %v6323_v35 = vpop.permute.xlu0 %2229 }
 0x2ae   : > { %3193 = vmatprep.mubr.bf16.mxu0 %v4093_v42  ;;  %v6325_v42 = vpop.permute.xlu1 %2224 }
 0x2af   : > { %3625 = vperm.xlu0 %4070, %v3443_v47   ;;  %v4149_v47 = vld [vmem:[%s6597_s3 + $0x188] ss:$16 sps:$4 sm:$0xff]  }
 0x2b0   : > { %3600 = vperm.xlu1 %4071, %v3438_v49   ;;  %v4153_v49 = vld [vmem:[%s6597_s3 + $0x1ac] ss:$16 sps:$4 sm:$0xff]  }
 0x2b1   : > { %2969 = vmatmul.mubr.bf16.gmra.mrb[12].mxu1 %v4092_v53  ;;  %v6333_v53 = vpop.permute.xlu0 %2239 }
 0x2b2   : > { %2976 = vmatprep.mubr.bf16.mxu1 %v4096_v11  ;;  %v4152_v11 = vld [vmem:[%s6597_s3 + $0x1a0] ss:$16 sps:$4 sm:$0xff]  }
 0x2b3   : > { %3635 = vperm.xlu0 %4070, %v3445_v62   ;;  %v6338_v62 = vpop.permute.xlu1 %2234 }
 0x2b4   : > { %3610 = vperm.xlu1 %4071, %v3440_v46   ;;  %v4156_v46 = vld [vmem:[%s6597_s3 + $0x1c4] ss:$16 sps:$4 sm:$0xff]  }
 0x2b5   : > { %3194 = vmatmul.mubr.bf16.gmra.mrb[12].mxu0 %v4095_v18  ;;  %v4155_v18 = vld [vmem:[%s6597_s3 + $0x1a8] ss:$16 sps:$4 sm:$0xff]  }
 0x2b6   : > { %3201 = vmatprep.mubr.bf16.mxu0 %v4099_v0  ;;  %v4159_v0 = vld [vmem:[%s6597_s3 + $0x1cc] ss:$16 sps:$4 sm:$0xff]  }
 0x2b7   : > { %3645 = vperm.xlu0 %4070, %v3447_v23   ;;  %v6349_v23 = vpop.permute.xlu0 %2249 }
 0x2b8   : > { %3620 = vperm.xlu1 %4071, %v3442_v56   ;;  %v6351_v56 = vpop.permute.xlu1 %2244 }
 0x2b9   : > { %2977 = vmatmul.mubr.bf16.gmra.mrb[16].mxu1 %v4098_v14  ;;  %v4158_v14 = vld [vmem:[%s6597_s3 + $0x1c0] ss:$16 sps:$4 sm:$0xff]  }
 0x2ba   : > { %2984 = vmatprep.mubr.bf16.mxu1 %v4102_v45  ;;  %v4162_v45 = vld [vmem:[%s6597_s3 + $0x1e4] ss:$16 sps:$4 sm:$0xff]  }
 0x2bb   : > { %3655 = vperm.xlu0 %4070, %v3449_v24   ;;  %v6359_v24 = vpop.permute.xlu0 %2259 }
 0x2bc   : > { %3630 = vperm.xlu1 %4071, %v3444_v3   ;;  %v4161_v3 = vld [vmem:[%s6597_s3 + $0x1c8] ss:$16 sps:$4 sm:$0xff]  }
 0x2bd   : > { %3202 = vmatmul.mubr.bf16.gmra.mrb[16].mxu0 %v4101_v19  ;;  %v6364_v19 = vpop.permute.xlu1 %2254 }
 0x2be   : > { %3209 = vmatprep.mubr.bf16.mxu0 %v4105_v2  ;;  %v4165_v2 = vld [vmem:[%s6597_s3 + $0x1ec] ss:$16 sps:$4 sm:$0xff]  }
 0x2bf   : > { %3665 = vperm.xlu0 %4070, %v3451_v20   ;;  %v4164_v20 = vld [vmem:[%s6597_s3 + $0x1e0] ss:$16 sps:$4 sm:$0xff]  }
 0x2c0   : > { %3640 = vperm.xlu1 %4071, %v3446_v63   ;;  %v4168_v63 = vld [vmem:[%s6597_s3 + $0x204] ss:$16 sps:$4 sm:$0xff]  }
 0x2c1   : > { %2985 = vmatmul.mubr.bf16.gmra.mrb[20].mxu1 %v4104_v34  ;;  %v6375_v34 = vpop.permute.xlu0 %2269 }
 0x2c2   : > { %2992 = vmatprep.mubr.bf16.mxu1 %v4108_v29  ;;  %v6377_v29 = vpop.permute.xlu1 %2264 }
 0x2c3   : > { %3675 = vperm.xlu0 %4070, %v3453_v55   ;;  %v4167_v55 = vld [vmem:[%s6597_s3 + $0x1e8] ss:$16 sps:$4 sm:$0xff]  }
 0x2c4   : > { %3650 = vperm.xlu1 %4071, %v3448_v8   ;;  %v4171_v8 = vld [vmem:[%s6597_s3 + $0x20c] ss:$16 sps:$4 sm:$0xff]  }
 0x2c5   : > { %3210 = vmatmul.mubr.bf16.gmra.mrb[20].mxu0 %v4107_v41  ;;  %v6385_v41 = vpop.permute.xlu0 %2279 }
 0x2c6   : > { %3217 = vmatprep.mubr.bf16.mxu0 %v4111_v5  ;;  %v4170_v5 = vld [vmem:[%s6597_s3 + $0x200] ss:$16 sps:$4 sm:$0xff]  }
 0x2c7   : > { %3685 = vperm.xlu0 %4070, %v3455_v58   ;;  %v6390_v58 = vpop.permute.xlu1 %2274 }
 0x2c8   : > { %3660 = vperm.xlu1 %4071, %v3450_v52   ;;  %v4174_v52 = vld [vmem:[%s6597_s3 + $0x224] ss:$16 sps:$4 sm:$0xff]  }
 0x2c9   : > { %2993 = vmatmul.mubr.bf16.gmra.mrb[24].mxu1 %v4110_v48  ;;  %v4173_v48 = vld [vmem:[%s6597_s3 + $0x208] ss:$16 sps:$4 sm:$0xff]  }
 0x2ca   : > { %3000 = vmatprep.mubr.bf16.mxu1 %v4114_v44  ;;  %v4177_v44 = vld [vmem:[%s6597_s3 + $0x22c] ss:$16 sps:$4 sm:$0xff]  }
 0x2cb   : > { %3695 = vperm.xlu0 %4070, %v3457_v54   ;;  %v6401_v54 = vpop.permute.xlu0 %2289 }
 0x2cc   : > { %3670 = vperm.xlu1 %4071, %v3452_v7   ;;  %v6403_v7 = vpop.permute.xlu1 %2284 }
 0x2cd   : > { %3218 = vmatmul.mubr.bf16.gmra.mrb[24].mxu0 %v4113_v39  ;;  %v4176_v39 = vld [vmem:[%s6597_s3 + $0x220] ss:$16 sps:$4 sm:$0xff]  }
 0x2ce   : > { %3225 = vmatprep.mubr.bf16.mxu0 %v4117_v30  ;;  %v4180_v30 = vld [vmem:[%s6597_s3 + $0x244] ss:$16 sps:$4 sm:$0xff]  }
 0x2d0   : > { %3680 = vperm.xlu1 %4071, %v3454_v33   ;;  %v6411_v33 = vpop.permute.xlu0 %2299 }
 0x2d1   : > { %3001 = vmatmul.mubr.bf16.gmra.mrb[28].mxu1 %v4116_v26  ;;  %v4179_v26 = vld [vmem:[%s6597_s3 + $0x228] ss:$16 sps:$4 sm:$0xff]  }
 0x2d2   : > { %3008 = vmatprep.mubr.bf16.mxu1 %v4120_v31  ;;  %v6416_v31 = vpop.permute.xlu1 %2294 }
 0x2d4   : > { %3690 = vperm.xlu1 %4071, %v3456_v25   ;;  %v4183_v25 = vld [vmem:[%s6597_s3 + $0x24c] ss:$16 sps:$4 sm:$0xff]  }
 0x2d5   : > { %3226 = vmatmul.mubr.bf16.gmra.mrb[28].mxu0 %v4119_v59  ;;  %v4182_v59 = vld [vmem:[%s6597_s3 + $0x240] ss:$16 sps:$4 sm:$0xff]  }
 0x2d6   : > { %3233 = vmatprep.mubr.bf16.mxu0 %v4123_v61  ;;  %v4186_v61 = vld [vmem:[%s6597_s3 + $0x264] ss:$16 sps:$4 sm:$0xff]  }
 0x2d9   : > { %3009 = vmatmul.mubr.bf16.gmra.mrb[32].mxu1 %v4122_v32  ;;  %v6427_v32 = vpop.permute.xlu0 %2309 }
 0x2da   : > { %3016 = vmatprep.mubr.bf16.mxu1 %v4126_v1  ;;  %v6429_v1 = vpop.permute.xlu1 %2304 }
 0x2dd   : > { %3234 = vmatmul.mubr.bf16.gmra.mrb[32].mxu0 %v4125_v50  ;;  %v4185_v50 = vld [vmem:[%s6597_s3 + $0x248] ss:$16 sps:$4 sm:$0xff]  }
 0x2de   : > { %3241 = vmatprep.mubr.bf16.mxu0 %v4129_v37  ;;  %v4189_v37 = vld [vmem:[%s6597_s3 + $0x26c] ss:$16 sps:$4 sm:$0xff]  }
 0x2e1   : > { %3017 = vmatmul.mubr.bf16.gmra.mrb[36].mxu1 %v4128_v4  ;;  %v6437_v4 = vpop.permute.xlu0 %2319 }
 0x2e2   : > { %3024 = vmatprep.mubr.bf16.mxu1 %v4132_v43  ;;  %v4188_v43 = vld [vmem:[%s6597_s3 + $0x260] ss:$16 sps:$4 sm:$0xff]  }
 0x2e5   : > { %3242 = vmatmul.mubr.bf16.gmra.mrb[36].mxu0 %v4131_v38  ;;  %v6442_v38 = vpop.permute.xlu1 %2314 }
 0x2e6   : > { %3249 = vmatprep.mubr.bf16.mxu0 %v4135_v27  ;;  %v4192_v27 = vld [vmem:[%s6597_s3 + $0x284] ss:$16 sps:$4 sm:$0xff]  }
 0x2e9   : > { %3025 = vmatmul.mubr.bf16.gmra.mrb[40].mxu1 %v4134_v57  ;;  %v4191_v57 = vld [vmem:[%s6597_s3 + $0x268] ss:$16 sps:$4 sm:$0xff]  }
 0x2ea   : > { %3032 = vmatprep.mubr.bf16.mxu1 %v4138_v22  ;;  %v4195_v22 = vld [vmem:[%s6597_s3 + $0x28c] ss:$16 sps:$4 sm:$0xff]  }
 0x2ed   : > { %3250 = vmatmul.mubr.bf16.gmra.mrb[40].mxu0 %v4137_v9  ;;  %v6453_v9 = vpop.permute.xlu0 %2329 }
 0x2ee   : > { %3257 = vmatprep.mubr.bf16.mxu0 %v4141_v16  ;;  %v6455_v16 = vpop.permute.xlu1 %2324 }
 0x2f1   : > { %3033 = vmatmul.mubr.bf16.gmra.mrb[44].mxu1 %v4140_v10  ;;  %v4194_v10 = vld [vmem:[%s6597_s3 + $0x280] ss:$16 sps:$4 sm:$0xff]  }
 0x2f2   : > { %3040 = vmatprep.mubr.bf16.mxu1 %v4144_v13  ;;  %v4198_v13 = vld [vmem:[%s6597_s3 + $0x2a4] ss:$16 sps:$4 sm:$0xff]  }
 0x2f5   : > { %3258 = vmatmul.mubr.bf16.gmra.mrb[44].mxu0 %v4143_v12  ;;  %v6463_v12 = vpop.permute.xlu0 %2339 }
 0x2f6   : > { %3265 = vmatprep.mubr.bf16.mxu0 %v4147_v21  ;;  %v4197_v21 = vld [vmem:[%s6597_s3 + $0x288] ss:$16 sps:$4 sm:$0xff]  }
 0x2f9   : > { %3041 = vmatmul.mubr.bf16.gmra.mrb[48].mxu1 %v4146_v60  ;;  %v6468_v60 = vpop.permute.xlu1 %2334 }
 0x2fa   : > { %3048 = vmatprep.mubr.bf16.mxu1 %v4150_v15  ;;  %v4201_v15 = vld [vmem:[%s6597_s3 + $0x2ac] ss:$16 sps:$4 sm:$0xff]  }
 0x2fd   : > { %3266 = vmatmul.mubr.bf16.gmra.mrb[48].mxu0 %v4149_v47  ;;  %v4200_v47 = vld [vmem:[%s6597_s3 + $0x2a0] ss:$16 sps:$4 sm:$0xff]  }
 0x2fe   : > { %3273 = vmatprep.mubr.bf16.mxu0 %v4153_v49  ;;  %v4204_v49 = vld [vmem:[%s6597_s3 + $0x2c4] ss:$16 sps:$4 sm:$0xff]  }
 0x301   : > { %3049 = vmatmul.mubr.bf16.gmra.mrb[52].mxu1 %v4152_v11  ;;  %v6479_v11 = vpop.permute.xlu0 %2349 }
 0x302   : > { %3056 = vmatprep.mubr.bf16.mxu1 %v4156_v46  ;;  %v6481_v46 = vpop.permute.xlu1 %2344 }
 0x305   : > { %3274 = vmatmul.mubr.bf16.gmra.mrb[52].mxu0 %v4155_v18  ;;  %v4203_v18 = vld [vmem:[%s6597_s3 + $0x2a8] ss:$16 sps:$4 sm:$0xff]  }
 0x306   : > { %3281 = vmatprep.mubr.bf16.mxu0 %v4159_v0  ;;  %v4207_v0 = vld [vmem:[%s6597_s3 + $0x2cc] ss:$16 sps:$4 sm:$0xff]  }
 0x309   : > { %3057 = vmatmul.mubr.bf16.gmra.mrb[56].mxu1 %v4158_v14  ;;  %v6489_v14 = vpop.permute.xlu0 %2359 }
 0x30a   : > { %3064 = vmatprep.mubr.bf16.mxu1 %v4162_v45  ;;  %v4206_v45 = vld [vmem:[%s6597_s3 + $0x2c0] ss:$16 sps:$4 sm:$0xff]  }
 0x30d   : > { %3282 = vmatmul.mubr.bf16.gmra.mrb[56].mxu0 %v4161_v3  ;;  %v6494_v3 = vpop.permute.xlu1 %2354 }
 0x30e   : > { %3289 = vmatprep.mubr.bf16.mxu0 %v4165_v2  ;;  %v4210_v2 = vld [vmem:[%s6597_s3 + $0x2e4] ss:$16 sps:$4 sm:$0xff]  }
 0x311   : > { %3065 = vmatmul.mubr.bf16.gmra.mrb[60].mxu1 %v4164_v20  ;;  %v4209_v20 = vld [vmem:[%s6597_s3 + $0x2c8] ss:$16 sps:$4 sm:$0xff]  }
 0x312   : > { %3072 = vmatprep.mubr.bf16.mxu1 %v4168_v63  ;;  %v4213_v63 = vld [vmem:[%s6597_s3 + $0x2ec] ss:$16 sps:$4 sm:$0xff]  }
 0x315   : > { %3290 = vmatmul.mubr.bf16.gmra.mrb[60].mxu0 %v4167_v55  ;;  %v6505_v55 = vpop.permute.xlu0 %2369 }
 0x316   : > { %3297 = vmatprep.mubr.bf16.mxu0 %v4171_v8  ;;  %v6507_v8 = vpop.permute.xlu1 %2364 }
 0x319   : > { %3073 = vmatmul.mubr.bf16.gmra.mrb[64].mxu1 %v4170_v5  ;;  %v4212_v5 = vld [vmem:[%s6597_s3 + $0x2e0] ss:$16 sps:$4 sm:$0xff]  }
 0x31a   : > { %3080 = vmatprep.mubr.bf16.mxu1 %v4174_v52  ;;  %v6512_v52 = vpop.permute.xlu0 %2379 }
 0x31d   : > { %3298 = vmatmul.mubr.bf16.gmra.mrb[64].mxu0 %v4173_v48  ;;  %v4215_v48 = vld [vmem:[%s6597_s3 + $0x2e8] ss:$16 sps:$4 sm:$0xff]  }
 0x31e   : > { %3305 = vmatprep.mubr.bf16.mxu0 %v4177_v44  ;;  %v6517_v44 = vpop.permute.xlu1 %2374 }
 0x321   : > { %3081 = vmatmul.mubr.bf16.gmra.mrb[68].mxu1 %v4176_v39  ;;  %v6519_v39 = vpop.permute.xlu0 %2389 }
 0x322   : > { %3088 = vmatprep.mubr.bf16.mxu1 %v4180_v30  ;;  %v6521_v30 = vpop.permute.xlu1 %2384 }
 0x325   : > { %3306 = vmatmul.mubr.bf16.gmra.mrb[68].mxu0 %v4179_v26  ;;  %v6523_v26 = vpop.permute.xlu0 %2399 }
 0x326   : > { %3313 = vmatprep.mubr.bf16.mxu0 %v4183_v25  ;;  %v6525_v25 = vpop.permute.xlu1 %2394 }
 0x329   : > { %3089 = vmatmul.mubr.bf16.gmra.mrb[72].mxu1 %v4182_v59  ;;  %v6527_v59 = vpop.permute.xlu0 %2409 }
 0x32a   : > { %3096 = vmatprep.mubr.bf16.mxu1 %v4186_v61  ;;  %6933 = vst [vmem:[#allocation10_spill] sm:$0xff] %v6527_v59  ;;  %v6529_v61 = vpop.permute.xlu1 %2404 }
 0x32b   : > { %6934 = vst [vmem:[#allocation11_spill] sm:$0xff] %v6529_v61 }
 0x32d   : > { %3314 = vmatmul.mubr.bf16.gmra.mrb[72].mxu0 %v4185_v50  ;;  %v6531_v50 = vpop.permute.xlu0 %2419 }
 0x32e   : > { %3321 = vmatprep.mubr.bf16.mxu0 %v4189_v37  ;;  %6935 = vst [vmem:[#allocation12_spill] sm:$0xff] %v6531_v50  ;;  %v6533_v37 = vpop.permute.xlu1 %2414 }
 0x32f   : > { %6936 = vst [vmem:[#allocation13_spill] sm:$0xff] %v6533_v37 }
 0x331   : > { %3097 = vmatmul.mubr.bf16.gmra.mrb[76].mxu1 %v4188_v43 }
 0x332   : > { %3104 = vmatprep.mubr.bf16.mxu1 %v4192_v27 }
 0x335   : > { %3322 = vmatmul.mubr.bf16.gmra.mrb[76].mxu0 %v4191_v57 }
 0x336   : > { %3329 = vmatprep.mubr.bf16.mxu0 %v4195_v22  ;;  %v6535_v22 = vpop.permute.xlu0 %2429 }
 0x337   : > { %6937 = vst [vmem:[#allocation8_spill] sm:$0xff] %v6535_v22 }
 0x339   : > { %3105 = vmatmul.mubr.bf16.gmra.mrb[80].mxu1 %v4194_v10 }
 0x33a   : > { %3112 = vmatprep.mubr.bf16.mxu1 %v4198_v13 }
 0x33d   : > { %3330 = vmatmul.mubr.bf16.gmra.mrb[80].mxu0 %v4197_v21  ;;  %v6538_v21 = vpop.permute.xlu1 %2424 }
 0x33e   : > { %3337 = vmatprep.mubr.bf16.mxu0 %v4201_v15  ;;  %6938 = vst [vmem:[#allocation14_spill] sm:$0xff] %v6538_v21 }
 0x341   : > { %3113 = vmatmul.mubr.bf16.gmra.mrb[84].mxu1 %v4200_v47  ;;  %v3461_v50 = vpop.permute.xlu1 %3460 }
 0x342   : > { %3120 = vmatprep.mubr.bf16.mxu1 %v4204_v49 }
 0x345   : > { %3338 = vmatmul.mubr.bf16.gmra.mrb[84].mxu0 %v4203_v18 }
 0x346   : > { %3345 = vmatprep.mubr.bf16.mxu0 %v4207_v0 }
 0x349   : > { %3121 = vmatmul.mubr.bf16.gmra.mrb[88].mxu1 %v4206_v45 }
 0x34a   : > { %3128 = vmatprep.mubr.bf16.mxu1 %v4210_v2 }
 0x34d   : > { %3346 = vmatmul.mubr.bf16.gmra.mrb[88].mxu0 %v4209_v20 }
 0x34e   : > { %3353 = vmatprep.mubr.bf16.mxu0 %v4213_v63 }
 0x351   : > { %3129 = vmatmul.mubr.bf16.gmra.mrb[92].mxu1 %v4212_v5  ;;  %v3466_v5 = vpop.permute.xlu0 %3465 }
 0x355   : > { %3354 = vmatmul.mubr.bf16.gmra.mrb[92].mxu0 %v4215_v48 }
 0x36c   : > { %v2946_v43 = vpop.f32.mrb[0].mxu1 }
 0x36d   : > { %v2948_v27 = vpop.f32.mrb[1].mxu1  ;;  %v2947_v10 = vadd.f32 %v2946_v43, %v6286_v36 }
 0x36e   : > { %v2949_v57 = vpop.f32.mrb[2].mxu1 }
 0x36f   : > { %v2951_v13 = vpop.f32.mrb[3].mxu1  ;;  %v2950_v47 = vadd.f32 %v2949_v57, %v6281_v51 }
 0x370   : > { %v3171_v15 = vpop.f32.mrb[0].mxu0 }
 0x371   : > { %v3172_v49 = vadd.f32 %v3171_v15, %v2947_v10  ;;  %v3173_v18 = vpop.f32.mrb[1].mxu0 }
 0x372   : > { %v3174_v0 = vpop.f32.mrb[2].mxu0 }
 0x373   : > { %v3362_v45 = vmax.f32 %v3172_v49, 0.0  ;;  %v3175_v2 = vadd.f32 %v3174_v0, %v2950_v47  ;;  %v3176_v20 = vpop.f32.mrb[3].mxu0  ;;  %v3471_v0 = vpop.permute.xlu1 %3470 }
 0x374   : > { %v2954_v63 = vpop.f32.mrb[4].mxu1 }
 0x375   : > { %v3363_v48 = vmax.f32 %v3175_v2, 0.0  ;;  %v2956_v27 = vpop.f32.mrb[5].mxu1  ;;  %v3698_v37 = vmul.f32 %v3461_v50, %v3362_v45  ;;  %v2955_v43 = vadd.f32 %v2954_v63, %v6299_v6  ;;  %v3476_v50 = vpop.permute.xlu0 %3475 }
 0x376   : > { %v2957_v22 = vpop.f32.mrb[6].mxu1 }
 0x377   : > { %v3699_v36 = vmul.f32 %v3466_v5, %v3363_v48  ;;  %v2959_v13 = vpop.f32.mrb[7].mxu1  ;;  %v2958_v51 = vadd.f32 %v2957_v22, %v6297_v28 }
 0x378   : > { %v3179_v21 = vpop.f32.mrb[4].mxu0 }
 0x379   : > { %v3746_v59 = vadd.f32 %v3699_v36, %v3698_v37  ;;  %v3180_v57 = vadd.f32 %v3179_v21, %v2955_v43  ;;  %v3181_v10 = vpop.f32.mrb[5].mxu0 }
 0x37a   : > { %v3182_v15 = vpop.f32.mrb[6].mxu0  ;;  %v3481_v10 = vpop.permute.xlu1 %3480 }
 0x37b   : > { %v3364_v47 = vmax.f32 %v3180_v57, 0.0  ;;  %v3183_v49 = vadd.f32 %v3182_v15, %v2958_v51  ;;  %v3184_v18 = vpop.f32.mrb[7].mxu0 }
 0x37c   : > { %v2962_v2 = vpop.f32.mrb[8].mxu1 }
 0x37d   : > { %v3700_v20 = vmul.f32 %v3471_v0, %v3364_v47  ;;  %v3365_v27 = vmax.f32 %v3183_v49, 0.0  ;;  %v2964_v61 = vpop.f32.mrb[9].mxu1  ;;  %v2963_v63 = vadd.f32 %v2962_v2, %v6312_v17 }
 0x37e   : > { %v2965_v45 = vpop.f32.mrb[10].mxu1 }
 0x37f   : > { %v3747_v5 = vadd.f32 %v3746_v59, %v3700_v20  ;;  %v3701_v6 = vmul.f32 %v3476_v50, %v3365_v27  ;;  %v2967_v37 = vpop.f32.mrb[11].mxu1  ;;  %v2966_v22 = vadd.f32 %v2965_v45, %v6307_v40  ;;  %v3486_v59 = vpop.permute.xlu0 %3485 }
 0x380   : > { %v3187_v48 = vpop.f32.mrb[8].mxu0 }
 0x381   : > { %v3748_v28 = vadd.f32 %v3747_v5, %v3701_v6  ;;  %v3188_v21 = vadd.f32 %v3187_v48, %v2963_v63  ;;  %v3189_v36 = vpop.f32.mrb[9].mxu0 }
 0x382   : > { %v3190_v43 = vpop.f32.mrb[10].mxu0 }
 0x383   : > { %v3366_v13 = vmax.f32 %v3188_v21, 0.0  ;;  %v3191_v51 = vadd.f32 %v3190_v43, %v2966_v22  ;;  %v3192_v57 = vpop.f32.mrb[11].mxu0  ;;  %v3799_v22 = vld [vmem:[#allocation2] sm:$0x1]  ;;  %v3491_v21 = vpop.permute.xlu1 %3490 }
 0x384   : > { %v2970_v15 = vpop.f32.mrb[12].mxu1  ;;  %4052 = vpush %v3799_v22 }
 0x385   : > { %v3702_v61 = vmul.f32 %v3481_v10, %v3366_v13  ;;  %v3367_v47 = vmax.f32 %v3191_v51, 0.0  ;;  %v2972_v49 = vpop.f32.mrb[13].mxu1  ;;  %v2971_v2 = vadd.f32 %v2970_v15, %v6325_v42  ;;  %v3496_v51 = vpop.permute.xlu0 %3495 }
 0x386   : > { %v2973_v18 = vpop.f32.mrb[14].mxu1 }
 0x387   : > { %v3749_v0 = vadd.f32 %v3748_v28, %v3702_v61  ;;  %v3703_v17 = vmul.f32 %v3486_v59, %v3367_v47  ;;  %v2975_v20 = vpop.f32.mrb[15].mxu1  ;;  %v2974_v50 = vadd.f32 %v2973_v18, %v6323_v35 }
 0x388   : > { %v3195_v27 = vpop.f32.mrb[12].mxu0 }
 0x389   : > { %v3750_v40 = vadd.f32 %v3749_v0, %v3703_v17  ;;  %v3196_v45 = vadd.f32 %v3195_v27, %v2971_v2  ;;  %v3197_v5 = vpop.f32.mrb[13].mxu0  ;;  %v3501_v27 = vpop.permute.xlu1 %3500 }
 0x38a   : > { %v3198_v6 = vpop.f32.mrb[14].mxu0 }
 0x38b   : > { %v3368_v63 = vmax.f32 %v3196_v45, 0.0  ;;  %v3199_v37 = vadd.f32 %v3198_v6, %v2974_v50  ;;  %v3200_v48 = vpop.f32.mrb[15].mxu0 }
 0x38c   : > { %v2978_v36 = vpop.f32.mrb[16].mxu1 }
 0x38d   : > { %v3704_v43 = vmul.f32 %v3491_v21, %v3368_v63  ;;  %v3369_v28 = vmax.f32 %v3199_v37, 0.0  ;;  %v2980_v13 = vpop.f32.mrb[17].mxu1  ;;  %v2979_v15 = vadd.f32 %v2978_v36, %v6338_v62 }
 0x38e   : > { %v2981_v42 = vpop.f32.mrb[18].mxu1 }
 0x38f   : > { %v3751_v57 = vadd.f32 %v3750_v40, %v3704_v43  ;;  %v3705_v10 = vmul.f32 %v3496_v51, %v3369_v28  ;;  %v2983_v35 = vpop.f32.mrb[19].mxu1  ;;  %v2982_v49 = vadd.f32 %v2981_v42, %v6333_v53  ;;  %v3506_v40 = vpop.permute.xlu0 %3505 }
 0x390   : > { %v3203_v61 = vpop.f32.mrb[16].mxu0 }
 0x391   : > { %v3752_v47 = vadd.f32 %v3751_v57, %v3705_v10  ;;  %v3204_v59 = vadd.f32 %v3203_v61, %v2979_v15  ;;  %v3205_v18 = vpop.f32.mrb[17].mxu0  ;;  %v3511_v10 = vpop.permute.xlu1 %3510 }
 0x392   : > { %v3206_v0 = vpop.f32.mrb[18].mxu0 }
 0x393   : > { %v3370_v17 = vmax.f32 %v3204_v59, 0.0  ;;  %v3207_v2 = vadd.f32 %v3206_v0, %v2982_v49  ;;  %v3208_v20 = vpop.f32.mrb[19].mxu0 }
 0x394   : > { %v2986_v50 = vpop.f32.mrb[20].mxu1 }
 0x395   : > { %v3706_v45 = vmul.f32 %v3501_v27, %v3370_v17  ;;  %v3371_v5 = vmax.f32 %v3207_v2, 0.0  ;;  %v2988_v6 = vpop.f32.mrb[21].mxu1  ;;  %v2987_v48 = vadd.f32 %v2986_v50, %v6351_v56 }
 0x396   : > { %v2989_v63 = vpop.f32.mrb[22].mxu1 }
 0x397   : > { %v3753_v37 = vadd.f32 %v3752_v47, %v3706_v45  ;;  %v3707_v62 = vmul.f32 %v3506_v40, %v3371_v5  ;;  %v2991_v22 = vpop.f32.mrb[23].mxu1  ;;  %v2990_v36 = vadd.f32 %v2989_v63, %v6349_v23  ;;  %v3516_v47 = vpop.permute.xlu0 %3515 }
 0x398   : > { %v3211_v21 = vpop.f32.mrb[20].mxu0  ;;  %v3521_v63 = vpop.permute.xlu1 %3520 }
 0x399   : > { %v3754_v53 = vadd.f32 %v3753_v37, %v3707_v62  ;;  %v3212_v43 = vadd.f32 %v3211_v21, %v2987_v48  ;;  %v3213_v28 = vpop.f32.mrb[21].mxu0 }
 0x39a   : > { %v3214_v13 = vpop.f32.mrb[22].mxu0 }
 0x39b   : > { %v3372_v51 = vmax.f32 %v3212_v43, 0.0  ;;  %v3215_v42 = vadd.f32 %v3214_v13, %v2990_v36  ;;  %v3216_v57 = vpop.f32.mrb[23].mxu0  ;;  %v3526_v21 = vpop.permute.xlu0 %3525 }
 0x39c   : > { %v2994_v15 = vpop.f32.mrb[24].mxu1 }
 0x39d   : > { %v3708_v35 = vmul.f32 %v3511_v10, %v3372_v51  ;;  %v3373_v61 = vmax.f32 %v3215_v42, 0.0  ;;  %v2996_v49 = vpop.f32.mrb[25].mxu1  ;;  %v2995_v0 = vadd.f32 %v2994_v15, %v6364_v19 }
 0x39e   : > { %v2997_v59 = vpop.f32.mrb[26].mxu1  ;;  %v3531_v49 = vpop.permute.xlu1 %3530 }
 0x39f   : > { %v3755_v18 = vadd.f32 %v3754_v53, %v3708_v35  ;;  %v3709_v56 = vmul.f32 %v3516_v47, %v3373_v61  ;;  %v2999_v17 = vpop.f32.mrb[27].mxu1  ;;  %v2998_v20 = vadd.f32 %v2997_v59, %v6359_v24 }
 0x3a0   : > { %v3219_v2 = vpop.f32.mrb[24].mxu0 }
 0x3a1   : > { %v3756_v23 = vadd.f32 %v3755_v18, %v3709_v56  ;;  %v3220_v27 = vadd.f32 %v3219_v2, %v2995_v0  ;;  %v3221_v50 = vpop.f32.mrb[25].mxu0  ;;  %v3536_v0 = vpop.permute.xlu0 %3535 }
 0x3a2   : > { %v3222_v45 = vpop.f32.mrb[26].mxu0 }
 0x3a3   : > { %v3374_v5 = vmax.f32 %v3220_v27, 0.0  ;;  %v3223_v6 = vadd.f32 %v3222_v45, %v2998_v20  ;;  %v3224_v40 = vpop.f32.mrb[27].mxu0 }
 0x3a4   : > { %v3002_v37 = vpop.f32.mrb[28].mxu1 }
 0x3a5   : > { %v3710_v62 = vmul.f32 %v3521_v63, %v3374_v5  ;;  %v3375_v48 = vmax.f32 %v3223_v6, 0.0  ;;  %v3004_v22 = vpop.f32.mrb[29].mxu1  ;;  %v3003_v43 = vadd.f32 %v3002_v37, %v6377_v29 }
 0x3a6   : > { %v3005_v53 = vpop.f32.mrb[30].mxu1 }
 0x3a7   : > { %v3757_v36 = vadd.f32 %v3756_v23, %v3710_v62  ;;  %v3711_v19 = vmul.f32 %v3526_v21, %v3375_v48  ;;  %v3007_v28 = vpop.f32.mrb[31].mxu1  ;;  %v3006_v51 = vadd.f32 %v3005_v53, %v6375_v34  ;;  %v3541_v62 = vpop.permute.xlu1 %3540 }
 0x3a8   : > { %v3227_v13 = vpop.f32.mrb[28].mxu0 }
 0x3a9   : > { %v3758_v24 = vadd.f32 %v3757_v36, %v3711_v19  ;;  %v3228_v42 = vadd.f32 %v3227_v13, %v3003_v43  ;;  %v3229_v57 = vpop.f32.mrb[29].mxu0  ;;  %v3546_v36 = vpop.permute.xlu0 %3545 }
 0x3aa   : > { %v3230_v10 = vpop.f32.mrb[30].mxu0 }
 0x3ab   : > { %v3376_v15 = vmax.f32 %v3228_v42, 0.0  ;;  %v3231_v35 = vadd.f32 %v3230_v10, %v3006_v51  ;;  %v3232_v61 = vpop.f32.mrb[31].mxu0 }
 0x3ac   : > { %v3010_v47 = vpop.f32.mrb[32].mxu1 }
 0x3ad   : > { %v3712_v59 = vmul.f32 %v3531_v49, %v3376_v15  ;;  %v3377_v18 = vmax.f32 %v3231_v35, 0.0  ;;  %v3012_v56 = vpop.f32.mrb[33].mxu1  ;;  %v3011_v23 = vadd.f32 %v3010_v47, %v6390_v58  ;;  %v3551_v49 = vpop.permute.xlu1 %3550 }
 0x3ae   : > { %v3013_v17 = vpop.f32.mrb[34].mxu1 }
 0x3af   : > { %v3759_v2 = vadd.f32 %v3758_v24, %v3712_v59  ;;  %v3713_v29 = vmul.f32 %v3536_v0, %v3377_v18  ;;  %v3015_v20 = vpop.f32.mrb[35].mxu1  ;;  %v3014_v50 = vadd.f32 %v3013_v17, %v6385_v41  ;;  %v3556_v0 = vpop.permute.xlu0 %3555 }
 0x3b0   : > { %v3235_v27 = vpop.f32.mrb[32].mxu0 }
 0x3b1   : > { %v3760_v34 = vadd.f32 %v3759_v2, %v3713_v29  ;;  %v3236_v45 = vadd.f32 %v3235_v27, %v3011_v23  ;;  %v3237_v5 = vpop.f32.mrb[33].mxu0 }
 0x3b2   : > { %v3238_v6 = vpop.f32.mrb[34].mxu0 }
 0x3b3   : > { %v3378_v40 = vmax.f32 %v3236_v45, 0.0  ;;  %v3239_v63 = vadd.f32 %v3238_v6, %v3014_v50  ;;  %v3240_v37 = vpop.f32.mrb[35].mxu0 }
 0x3b4   : > { %v3018_v48 = vpop.f32.mrb[36].mxu1 }
 0x3b5   : > { %v3714_v22 = vmul.f32 %v3541_v62, %v3378_v40  ;;  %v3379_v21 = vmax.f32 %v3239_v63, 0.0  ;;  %v3020_v53 = vpop.f32.mrb[37].mxu1  ;;  %v3019_v28 = vadd.f32 %v3018_v48, %v6403_v7  ;;  %v3561_v63 = vpop.permute.xlu1 %3560  ;;  %s4053_s10 = spop %4052 }
 0x3b6   : > { %v3021_v19 = vpop.f32.mrb[38].mxu1 }
 0x3b7   : > { %v3761_v43 = vadd.f32 %v3760_v34, %v3714_v22  ;;  %v3715_v58 = vmul.f32 %v3546_v36, %v3379_v21  ;;  %v3023_v13 = vpop.f32.mrb[39].mxu1  ;;  %v3022_v51 = vadd.f32 %v3021_v19, %v6401_v54  ;;  %v3566_v21 = vpop.permute.xlu0 %3565 }
 0x3b8   : > { %v3243_v24 = vpop.f32.mrb[36].mxu0 }
 0x3b9   : > { %v3762_v41 = vadd.f32 %v3761_v43, %v3715_v58  ;;  %v3244_v42 = vadd.f32 %v3243_v24, %v3019_v28  ;;  %v3245_v57 = vpop.f32.mrb[37].mxu0 }
 0x3ba   : > { %v3246_v10 = vpop.f32.mrb[38].mxu0 }
 0x3bb   : > { %v3380_v15 = vmax.f32 %v3244_v42, 0.0  ;;  %v3247_v35 = vadd.f32 %v3246_v10, %v3022_v51  ;;  %v3248_v61 = vpop.f32.mrb[39].mxu0  ;;  %v3571_v10 = vpop.permute.xlu1 %3570 }
 0x3bc   : > { %v3026_v47 = vpop.f32.mrb[40].mxu1 }
 0x3bd   : > { %v3716_v59 = vmul.f32 %v3551_v49, %v3380_v15  ;;  %v3381_v18 = vmax.f32 %v3247_v35, 0.0  ;;  %v3028_v56 = vpop.f32.mrb[41].mxu1  ;;  %v3027_v29 = vadd.f32 %v3026_v47, %v6416_v31  ;;  %v3576_v47 = vpop.permute.xlu0 %3575 }
 0x3be   : > { %v3029_v17 = vpop.f32.mrb[42].mxu1 }
 0x3bf   : > { %v3763_v2 = vadd.f32 %v3762_v41, %v3716_v59  ;;  %v3717_v7 = vmul.f32 %v3556_v0, %v3381_v18  ;;  %v3031_v23 = vpop.f32.mrb[43].mxu1  ;;  %v3030_v27 = vadd.f32 %v3029_v17, %v6411_v33 }
 0x3c0   : > { %v3251_v20 = vpop.f32.mrb[40].mxu0 }
 0x3c1   : > { %v3764_v54 = vadd.f32 %v3763_v2, %v3717_v7  ;;  %v3252_v34 = vadd.f32 %v3251_v20, %v3027_v29  ;;  %v3253_v50 = vpop.f32.mrb[41].mxu0 }
 0x3c2   : > { %v3254_v45 = vpop.f32.mrb[42].mxu0 }
 0x3c3   : > { %v3382_v5 = vmax.f32 %v3252_v34, 0.0  ;;  %v3255_v6 = vadd.f32 %v3254_v45, %v3030_v27  ;;  %v3256_v40 = vpop.f32.mrb[43].mxu0  ;;  %v3581_v34 = vpop.permute.xlu1 %3580 }
 0x3c4   : > { %v3034_v37 = vpop.f32.mrb[44].mxu1  ;;  %v3586_v40 = vpop.permute.xlu0 %3585 }
 0x3c5   : > { %v3718_v62 = vmul.f32 %v3561_v63, %v3382_v5  ;;  %v3383_v48 = vmax.f32 %v3255_v6, 0.0  ;;  %v3036_v22 = vpop.f32.mrb[45].mxu1  ;;  %v3035_v19 = vadd.f32 %v3034_v37, %v6429_v1 }
 0x3c6   : > { %v3037_v53 = vpop.f32.mrb[46].mxu1 }
 0x3c7   : > { %v3765_v36 = vadd.f32 %v3764_v54, %v3718_v62  ;;  %v3719_v31 = vmul.f32 %v3566_v21, %v3383_v48  ;;  %v3039_v43 = vpop.f32.mrb[47].mxu1  ;;  %v3038_v28 = vadd.f32 %v3037_v53, %v6427_v32 }
 0x3c8   : > { %v3259_v58 = vpop.f32.mrb[44].mxu0 }
 0x3c9   : > { %v3766_v33 = vadd.f32 %v3765_v36, %v3719_v31  ;;  %v3260_v13 = vadd.f32 %v3259_v58, %v3035_v19  ;;  %v3261_v24 = vpop.f32.mrb[45].mxu0 }
 0x3ca   : > { %v3262_v41 = vpop.f32.mrb[46].mxu0 }
 0x3cb   : > { %v3384_v51 = vmax.f32 %v3260_v13, 0.0  ;;  %v3263_v42 = vadd.f32 %v3262_v41, %v3038_v28  ;;  %v3264_v57 = vpop.f32.mrb[47].mxu0 }
 0x3cc   : > { %v3042_v15 = vpop.f32.mrb[48].mxu1 }
 0x3cd   : > { %v3720_v35 = vmul.f32 %v3571_v10, %v3384_v51  ;;  %v3385_v61 = vmax.f32 %v3263_v42, 0.0  ;;  %v3044_v49 = vpop.f32.mrb[49].mxu1  ;;  %v3043_v56 = vadd.f32 %v3042_v15, %v6442_v38  ;;  %v3596_v51 = vpop.permute.xlu0 %3595 }
 0x3ce   : > { %v3045_v59 = vpop.f32.mrb[50].mxu1 }
 0x3cf   : > { %v3767_v18 = vadd.f32 %v3766_v33, %v3720_v35  ;;  %v3721_v1 = vmul.f32 %v3576_v47, %v3385_v61  ;;  %v3047_v0 = vpop.f32.mrb[51].mxu1  ;;  %v3046_v2 = vadd.f32 %v3045_v59, %v6437_v4  ;;  %v3591_v33 = vpop.permute.xlu1 %3590 }
 0x3d0   : > { %v3267_v17 = vpop.f32.mrb[48].mxu0 }
 0x3d1   : > { %v3768_v32 = vadd.f32 %v3767_v18, %v3721_v1  ;;  %v3268_v7 = vadd.f32 %v3267_v17, %v3043_v56  ;;  %v3269_v29 = vpop.f32.mrb[49].mxu0 }
 0x3d2   : > { %v3270_v23 = vpop.f32.mrb[50].mxu0  ;;  %v3606_v29 = vpop.permute.xlu0 %3605 }
 0x3d3   : > { %v3386_v20 = vmax.f32 %v3268_v7, 0.0  ;;  %v3271_v54 = vadd.f32 %v3270_v23, %v3046_v2  ;;  %v3272_v27 = vpop.f32.mrb[51].mxu0  ;;  %v3601_v0 = vpop.permute.xlu1 %3600 }
 0x3d4   : > { %v3050_v50 = vpop.f32.mrb[52].mxu1 }
 0x3d5   : > { %v3722_v45 = vmul.f32 %v3581_v34, %v3386_v20  ;;  %v3387_v5 = vmax.f32 %v3271_v54, 0.0  ;;  %v3052_v6 = vpop.f32.mrb[53].mxu1  ;;  %v3051_v62 = vadd.f32 %v3050_v50, %v6455_v16 }
 0x3d6   : > { %v3053_v63 = vpop.f32.mrb[54].mxu1 }
 0x3d7   : > { %v3769_v37 = vadd.f32 %v3768_v32, %v3722_v45  ;;  %v3723_v38 = vmul.f32 %v3586_v40, %v3387_v5  ;;  %v3055_v48 = vpop.f32.mrb[55].mxu1  ;;  %v3054_v21 = vadd.f32 %v3053_v63, %v6453_v9 }
 0x3d8   : > { %v3275_v22 = vpop.f32.mrb[52].mxu0 }
 0x3d9   : > { %v3770_v4 = vadd.f32 %v3769_v37, %v3723_v38  ;;  %v3276_v53 = vadd.f32 %v3275_v22, %v3051_v62  ;;  %v3277_v36 = vpop.f32.mrb[53].mxu0  ;;  %v3611_v38 = vpop.permute.xlu1 %3610 }
 0x3da   : > { %v3278_v31 = vpop.f32.mrb[54].mxu0 }
 0x3db   : > { %v3388_v19 = vmax.f32 %v3276_v53, 0.0  ;;  %v3279_v43 = vadd.f32 %v3278_v31, %v3054_v21  ;;  %v3280_v58 = vpop.f32.mrb[55].mxu0  ;;  %v3616_v21 = vpop.permute.xlu0 %3615 }
 0x3dc   : > { %v3058_v28 = vpop.f32.mrb[56].mxu1 }
 0x3dd   : > { %v3724_v13 = vmul.f32 %v3591_v33, %v3388_v19  ;;  %v3389_v24 = vmax.f32 %v3279_v43, 0.0  ;;  %v3060_v41 = vpop.f32.mrb[57].mxu1  ;;  %v3059_v10 = vadd.f32 %v3058_v28, %v6468_v60 }
 0x3de   : > { %v3061_v42 = vpop.f32.mrb[58].mxu1 }
 0x3df   : > { %v3771_v57 = vadd.f32 %v3770_v4, %v3724_v13  ;;  %v3725_v16 = vmul.f32 %v3596_v51, %v3389_v24  ;;  %v3063_v15 = vpop.f32.mrb[59].mxu1  ;;  %v3062_v61 = vadd.f32 %v3061_v42, %v6463_v12  ;;  %v3621_v42 = vpop.permute.xlu1 %3620 }
 0x3e0   : > { %v3283_v35 = vpop.f32.mrb[56].mxu0 }
 0x3e1   : > { %v3772_v9 = vadd.f32 %v3771_v57, %v3725_v16  ;;  %v3284_v49 = vadd.f32 %v3283_v35, %v3059_v10  ;;  %v3285_v47 = vpop.f32.mrb[57].mxu0  ;;  %v3626_v35 = vpop.permute.xlu0 %3625 }
 0x3e2   : > { %v3286_v59 = vpop.f32.mrb[58].mxu0 }
 0x3e3   : > { %v3390_v18 = vmax.f32 %v3284_v49, 0.0  ;;  %v3287_v1 = vadd.f32 %v3286_v59, %v3062_v61  ;;  %v3288_v56 = vpop.f32.mrb[59].mxu0 }
 0x3e4   : > { %v3066_v17 = vpop.f32.mrb[60].mxu1 }
 0x3e5   : > { %v3726_v32 = vmul.f32 %v3601_v0, %v3390_v18  ;;  %v3391_v2 = vmax.f32 %v3287_v1, 0.0  ;;  %v3068_v7 = vpop.f32.mrb[61].mxu1  ;;  %v3067_v54 = vadd.f32 %v3066_v17, %v6481_v46 }
 0x3e6   : > { %v3069_v23 = vpop.f32.mrb[62].mxu1  ;;  %v3631_v7 = vpop.permute.xlu1 %3630 }
 0x3e7   : > { %v3773_v20 = vadd.f32 %v3772_v9, %v3726_v32  ;;  %v3727_v60 = vmul.f32 %v3606_v29, %v3391_v2  ;;  %v3071_v27 = vpop.f32.mrb[63].mxu1  ;;  %v3070_v50 = vadd.f32 %v3069_v23, %v6479_v11 }
 0x3e8   : > { %v3291_v34 = vpop.f32.mrb[60].mxu0 }
 0x3e9   : > { %v3774_v12 = vadd.f32 %v3773_v20, %v3727_v60  ;;  %v3292_v45 = vadd.f32 %v3291_v34, %v3067_v54  ;;  %v3293_v5 = vpop.f32.mrb[61].mxu0  ;;  %v3636_v54 = vpop.permute.xlu0 %3635 }
 0x3ea   : > { %v3294_v6 = vpop.f32.mrb[62].mxu0 }
 0x3eb   : > { %v3392_v40 = vmax.f32 %v3292_v45, 0.0  ;;  %v3295_v63 = vadd.f32 %v3294_v6, %v3070_v50  ;;  %v3296_v37 = vpop.f32.mrb[63].mxu0 }
 0x3ec   : > { %v3074_v62 = vpop.f32.mrb[64].mxu1 }
 0x3ed   : > { %v3728_v48 = vmul.f32 %v3611_v38, %v3392_v40  ;;  %v3393_v22 = vmax.f32 %v3295_v63, 0.0  ;;  %v3076_v4 = vpop.f32.mrb[65].mxu1  ;;  %v3075_v31 = vadd.f32 %v3074_v62, %v6494_v3 }
 0x3ee   : > { %v3077_v53 = vpop.f32.mrb[66].mxu1 }
 0x3ef   : > { %v3775_v36 = vadd.f32 %v3774_v12, %v3728_v48  ;;  %v3729_v46 = vmul.f32 %v3616_v21, %v3393_v22  ;;  %v3079_v19 = vpop.f32.mrb[67].mxu1  ;;  %v3078_v58 = vadd.f32 %v3077_v53, %v6489_v14  ;;  %v3641_v48 = vpop.permute.xlu1 %3640 }
 0x3f0   : > { %v3299_v43 = vpop.f32.mrb[64].mxu0 }
 0x3f1   : > { %v3776_v11 = vadd.f32 %v3775_v36, %v3729_v46  ;;  %v3300_v33 = vadd.f32 %v3299_v43, %v3075_v31  ;;  %v3301_v28 = vpop.f32.mrb[65].mxu0  ;;  %v3646_v36 = vpop.permute.xlu0 %3645 }
 0x3f2   : > { %v3302_v13 = vpop.f32.mrb[66].mxu0 }
 0x3f3   : > { %v3394_v24 = vmax.f32 %v3300_v33, 0.0  ;;  %v3303_v41 = vadd.f32 %v3302_v13, %v3078_v58  ;;  %v3304_v51 = vpop.f32.mrb[67].mxu0 }
 0x3f4   : > { %v3082_v57 = vpop.f32.mrb[68].mxu1 }
 0x3f5   : > { %v3730_v16 = vmul.f32 %v3621_v42, %v3394_v24  ;;  %v3395_v10 = vmax.f32 %v3303_v41, 0.0  ;;  %v3084_v15 = vpop.f32.mrb[69].mxu1  ;;  %v3083_v49 = vadd.f32 %v3082_v57, %v6507_v8  ;;  %v3651_v42 = vpop.permute.xlu1 %3650 }
 0x3f6   : > { %v3085_v9 = vpop.f32.mrb[70].mxu1 }
 0x3f7   : > { %v3777_v61 = vadd.f32 %v3776_v11, %v3730_v16  ;;  %v3731_v3 = vmul.f32 %v3626_v35, %v3395_v10  ;;  %v3087_v47 = vpop.f32.mrb[71].mxu1  ;;  %v3086_v18 = vadd.f32 %v3085_v9, %v6505_v55  ;;  %v3656_v35 = vpop.permute.xlu0 %3655 }
 0x3f8   : > { %v3307_v59 = vpop.f32.mrb[68].mxu0 }
 0x3f9   : > { %v3778_v14 = vadd.f32 %v3777_v61, %v3731_v3  ;;  %v3308_v1 = vadd.f32 %v3307_v59, %v3083_v49  ;;  %v3309_v56 = vpop.f32.mrb[69].mxu0 }
 0x3fa   : > { %v3310_v0 = vpop.f32.mrb[70].mxu0 }
 0x3fb   : > { %v3396_v17 = vmax.f32 %v3308_v1, 0.0  ;;  %v3311_v32 = vadd.f32 %v3310_v0, %v3086_v18  ;;  %v3312_v2 = vpop.f32.mrb[71].mxu0 }
 0x3fc   : > { %v3090_v29 = vpop.f32.mrb[72].mxu1 }
 0x3fd   : > { %v3732_v23 = vmul.f32 %v3631_v7, %v3396_v17  ;;  %v3397_v20 = vmax.f32 %v3311_v32, 0.0  ;;  %v3092_v60 = vpop.f32.mrb[73].mxu1  ;;  %v3091_v12 = vadd.f32 %v3090_v29, %v6517_v44  ;;  %v3661_v32 = vpop.permute.xlu1 %3660 }
 0x3fe   : > { %v3093_v27 = vpop.f32.mrb[74].mxu1 }
 0x3ff   : > { %v3779_v34 = vadd.f32 %v3778_v14, %v3732_v23  ;;  %v3733_v8 = vmul.f32 %v3636_v54, %v3397_v20  ;;  %v3095_v50 = vpop.f32.mrb[75].mxu1  ;;  %v3094_v5 = vadd.f32 %v3093_v27, %v6512_v52  ;;  %v3666_v20 = vpop.permute.xlu0 %3665  ;;  %v6939_v27 = vld [vmem:[#allocation11_spill] sm:$0xff] }
 0x400   : > { %v3315_v45 = vpop.f32.mrb[72].mxu0  ;;  %v6940_v50 = vld [vmem:[#allocation10_spill] sm:$0xff] }
 0x401   : > { %v3780_v55 = vadd.f32 %v3779_v34, %v3733_v8  ;;  %v3316_v6 = vadd.f32 %v3315_v45, %v3091_v12  ;;  %v3317_v40 = vpop.f32.mrb[73].mxu0 }
 0x402   : > { %v3318_v63 = vpop.f32.mrb[74].mxu0 }
 0x403   : > { %v3398_v37 = vmax.f32 %v3316_v6, 0.0  ;;  %v3319_v38 = vadd.f32 %v3318_v63, %v3094_v5  ;;  %v3320_v62 = vpop.f32.mrb[75].mxu0 }
 0x404   : > { %v3098_v22 = vpop.f32.mrb[76].mxu1 }
 0x405   : > { %v3734_v4 = vmul.f32 %v3641_v48, %v3398_v37  ;;  %v3399_v21 = vmax.f32 %v3319_v38, 0.0  ;;  %v3100_v53 = vpop.f32.mrb[77].mxu1  ;;  %v3099_v19 = vadd.f32 %v3098_v22, %v6521_v30  ;;  %v3671_v38 = vpop.permute.xlu1 %3670 }
 0x406   : > { %v3101_v46 = vpop.f32.mrb[78].mxu1 }
 0x407   : > { %v3781_v31 = vadd.f32 %v3780_v55, %v3734_v4  ;;  %v3735_v44 = vmul.f32 %v3646_v36, %v3399_v21  ;;  %v3103_v43 = vpop.f32.mrb[79].mxu1  ;;  %v3102_v58 = vadd.f32 %v3101_v46, %v6519_v39  ;;  %v3676_v21 = vpop.permute.xlu0 %3675 }
 0x408   : > { %v3323_v11 = vpop.f32.mrb[76].mxu0 }
 0x409   : > { %v3782_v52 = vadd.f32 %v3781_v31, %v3735_v44  ;;  %v3324_v33 = vadd.f32 %v3323_v11, %v3099_v19  ;;  %v3325_v28 = vpop.f32.mrb[77].mxu0  ;;  %v6941_v31 = vld [vmem:[#allocation13_spill] sm:$0xff] }
 0x40a   : > { %v3326_v13 = vpop.f32.mrb[78].mxu0 }
 0x40b   : > { %v3400_v24 = vmax.f32 %v3324_v33, 0.0  ;;  %v3327_v41 = vadd.f32 %v3326_v13, %v3102_v58  ;;  %v3328_v51 = vpop.f32.mrb[79].mxu0 }
 0x40c   : > { %v3106_v57 = vpop.f32.mrb[80].mxu1 }
 0x40d   : > { %v3736_v16 = vmul.f32 %v3651_v42, %v3400_v24  ;;  %v3401_v10 = vmax.f32 %v3327_v41, 0.0  ;;  %v3108_v15 = vpop.f32.mrb[81].mxu1  ;;  %v3107_v3 = vadd.f32 %v3106_v57, %v6525_v25  ;;  %v3681_v42 = vpop.permute.xlu1 %3680 }
 0x40e   : > { %v3109_v9 = vpop.f32.mrb[82].mxu1 }
 0x40f   : > { %v3783_v61 = vadd.f32 %v3782_v52, %v3736_v16  ;;  %v3737_v30 = vmul.f32 %v3656_v35, %v3401_v10  ;;  %v3111_v49 = vpop.f32.mrb[83].mxu1  ;;  %v3110_v59 = vadd.f32 %v3109_v9, %v6523_v26  ;;  %v6942_v52 = vld [vmem:[#allocation12_spill] sm:$0xff]  ;;  %v3686_v35 = vpop.permute.xlu0 %3685 }
 0x410   : > { %v3331_v47 = vpop.f32.mrb[80].mxu0 }
 0x411   : > { %v3784_v39 = vadd.f32 %v3783_v61, %v3737_v30  ;;  %v3332_v14 = vadd.f32 %v3331_v47, %v3107_v3  ;;  %v3333_v18 = vpop.f32.mrb[81].mxu0  ;;  %v6943_v3 = vld [vmem:[#allocation14_spill] sm:$0xff] }
 0x412   : > { %v3334_v1 = vpop.f32.mrb[82].mxu0 }
 0x413   : > { %v3402_v56 = vmax.f32 %v3332_v14, 0.0  ;;  %v3335_v0 = vadd.f32 %v3334_v1, %v3110_v59  ;;  %v3336_v17 = vpop.f32.mrb[83].mxu0  ;;  %v6944_v14 = vld [vmem:[#allocation8_spill] sm:$0xff] }
 0x414   : > { %v3114_v2 = vpop.f32.mrb[84].mxu1 }
 0x415   : > { %v3738_v7 = vmul.f32 %v3661_v32, %v3402_v56  ;;  %v3403_v29 = vmax.f32 %v3335_v0, 0.0  ;;  %v3116_v23 = vpop.f32.mrb[85].mxu1  ;;  %v3115_v34 = vadd.f32 %v3114_v2, %v6939_v27 }
 0x416   : > { %v3117_v60 = vpop.f32.mrb[86].mxu1 }
 0x417   : > { %v3785_v54 = vadd.f32 %v3784_v39, %v3738_v7  ;;  %v3739_v25 = vmul.f32 %v3666_v20, %v3403_v29  ;;  %v3119_v8 = vpop.f32.mrb[87].mxu1  ;;  %v3118_v45 = vadd.f32 %v3117_v60, %v6940_v50  ;;  %v3691_v7 = vpop.permute.xlu1 %3690  ;;  %v3801_v50 = vstv %s4053_s10 }
 0x418   : > { %v3339_v12 = vpop.f32.mrb[84].mxu0  ;;  %v3696_v20 = vpop.permute.xlu0 %3695 }
 0x419   : > { %v3786_v26 = vadd.f32 %v3785_v54, %v3739_v25  ;;  %v3340_v55 = vadd.f32 %v3339_v12, %v3115_v34  ;;  %v3341_v5 = vpop.f32.mrb[85].mxu0 }
 0x41a   : > { %v3342_v6 = vpop.f32.mrb[86].mxu0 }
 0x41b   : > { %v3404_v40 = vmax.f32 %v3340_v55, 0.0  ;;  %v3343_v63 = vadd.f32 %v3342_v6, %v3118_v45  ;;  %v3344_v37 = vpop.f32.mrb[87].mxu0 }
 0x41c   : > { %v3122_v62 = vpop.f32.mrb[88].mxu1 }
 0x41d   : > { %v3740_v48 = vmul.f32 %v3671_v38, %v3404_v40  ;;  %v3405_v22 = vmax.f32 %v3343_v63, 0.0  ;;  %v3124_v4 = vpop.f32.mrb[89].mxu1  ;;  %v3123_v44 = vadd.f32 %v3122_v62, %v6941_v31 }
 0x41e   : > { %v3125_v53 = vpop.f32.mrb[90].mxu1 }
 0x41f   : > { %v3787_v36 = vadd.f32 %v3786_v26, %v3740_v48  ;;  %v3741_v46 = vmul.f32 %v3676_v21, %v3405_v22  ;;  %v3127_v19 = vpop.f32.mrb[91].mxu1  ;;  %v3126_v58 = vadd.f32 %v3125_v53, %v6942_v52 }
 0x420   : > { %v3347_v43 = vpop.f32.mrb[88].mxu0 }
 0x421   : > { %v3788_v11 = vadd.f32 %v3787_v36, %v3741_v46  ;;  %v3348_v33 = vadd.f32 %v3347_v43, %v3123_v44  ;;  %v3349_v28 = vpop.f32.mrb[89].mxu0 }
 0x422   : > { %v3350_v13 = vpop.f32.mrb[90].mxu0 }
 0x423   : > { %v3406_v24 = vmax.f32 %v3348_v33, 0.0  ;;  %v3351_v41 = vadd.f32 %v3350_v13, %v3126_v58  ;;  %v3352_v51 = vpop.f32.mrb[91].mxu0 }
 0x424   : > { %v3130_v57 = vpop.f32.mrb[92].mxu1 }
 0x425   : > { %v3742_v16 = vmul.f32 %v3681_v42, %v3406_v24  ;;  %v3407_v10 = vmax.f32 %v3351_v41, 0.0  ;;  %v3132_v15 = vpop.f32.mrb[93].mxu1  ;;  %v3131_v49 = vadd.f32 %v3130_v57, %v6943_v3 }
 0x426   : > { %v3133_v9 = vpop.f32.mrb[94].mxu1 }
 0x427   : > { %v3789_v61 = vadd.f32 %v3788_v11, %v3742_v16  ;;  %v3743_v30 = vmul.f32 %v3686_v35, %v3407_v10  ;;  %v3135_v47 = vpop.f32.mrb[95].mxu1  ;;  %v3134_v18 = vadd.f32 %v3133_v9, %v6944_v14 }
 0x428   : > { %v3355_v39 = vpop.f32.mrb[92].mxu0 }
 0x429   : > { %v3790_v59 = vadd.f32 %v3789_v61, %v3743_v30  ;;  %v3356_v1 = vadd.f32 %v3355_v39, %v3131_v49  ;;  %v3357_v56 = vpop.f32.mrb[93].mxu0 }
 0x42a   : > { %v3358_v0 = vpop.f32.mrb[94].mxu0 }
 0x42b   : > { %v3408_v17 = vmax.f32 %v3356_v1, 0.0  ;;  %v3359_v32 = vadd.f32 %v3358_v0, %v3134_v18  ;;  %v3360_v2 = vpop.f32.mrb[95].mxu0 }
 0x42d   : > { %v3744_v29 = vmul.f32 %v3691_v7, %v3408_v17  ;;  %v3409_v23 = vmax.f32 %v3359_v32, 0.0 }
 0x42f   : > { %v3791_v60 = vadd.f32 %v3790_v59, %v3744_v29  ;;  %v3745_v54 = vmul.f32 %v3696_v20, %v3409_v23 }
 0x431   : > { %v3792_v25 = vadd.f32 %v3791_v60, %v3745_v54 }
 0x433   : > { %v3793_v27 = vrot.slane %v3792_v25, 4 }
 0x435   : > { %v3794_v34 = vadd.f32 %v3793_v27, %v3792_v25 }
 0x437   : > { %v3795_v8 = vrot.slane %v3794_v34, 2 }
 0x439   : > { %v3796_v12 = vadd.f32 %v3795_v8, %v3794_v34 }
 0x43b   : > { %v3797_v26 = vrot.slane %v3796_v12, 1 }
 0x43d   : > { %v3798_v45 = vadd.f32 %v3797_v26, %v3796_v12 }
 0x43f   : > { %v3802_v55 = vadd.f32 %v3801_v50, %v3798_v45 }
 0x441   : > { %4216 = vtanh.f32 %v3802_v55 }
 0x44b   : > { %v4217_v5 = vpop.eup %4216 }
 0x44c   : > { %3804 = vst [vmem:[%s273_s13] sm:$0x1] %v4217_v5 }
 0x44d PF: > { %s19_s26 = sadd.s32 1, %s4224_s26  }
 0x44e   : > { %p16_p4 = scmp.ge.s32.totalorder %s19_s26, 4  }
 0x450   :  { %18 = sbr.rel (!%p16_p4) target bundleno = 3 (0x3), region = 78 }

</bundles_post_ra>
